<compile_context>
chip_gen: v5e
topology: v5e:2x2
jax: 0.10.0
libtpu: 0.0.40
codegen_flags: <defaults>
</compile_context>

<pallas_src>
import jax
import jax.numpy as jnp
from jax.experimental import pallas as pl
from jax.experimental.pallas import tpu as pltpu


def _dense_edge_encoder_kernel(a_ref, e_ref, emb_ref, o_ref):
    """One grid step == one (graph, row-tile) pair.

    a_ref   : (1, TI, N)     int8      edge-type matrix, values in {0, 1, 2}
    e_ref   : (1, TI, N, D)  f32/bf16  dense edge features (0 where no edge)
    emb_ref : (2, D)         f32       embedding rows for class 1 (diag) and 2 (far)
    o_ref   : (1, TI, N, D)  f32/bf16  output (aliased with edge_dense in HBM)
    """
    f32 = jnp.float32
    a = a_ref[0].astype(jnp.int32)[..., None]     # (TI, N, 1) class id per pair
    e = e_ref[0].astype(f32)                      # (TI, N, D)
    emb_diag = emb_ref[0, :].astype(f32)          # (D,)  class 1: i == j
    emb_far = emb_ref[1, :].astype(f32)           # (D,)  class 2: disconnected

    # 3-class embedding lookup as a select chain (class 0 / padding row is zero).
    bias = jnp.where(a == 1, emb_diag, jnp.where(a == 2, emb_far, 0.0))

    o_ref[0] = (e + bias).astype(o_ref.dtype)


def _pick_row_tile(n_nodes, row_bytes, target_bytes=2 << 20):
    """Largest row tile TI that divides N, is a multiple of 32 (or == N), and keeps
    one (TI, N, D) block at/under ~2 MiB (the measured 0.5-4 MiB sweet spot for
    mem-bound streaming; multiples of 32 keep the int8 adjacency natively tiled)."""
    cap = max(1, target_bytes // max(row_bytes, 1))
    candidates = [t for t in range(1, n_nodes + 1)
                  if n_nodes % t == 0 and (t % 32 == 0 or t == n_nodes)]
    fitting = [t for t in candidates if t <= cap]
    return max(fitting) if fitting else min(candidates)


def dense_edge_encoder(edge_dense, a_dense, emb_table, *, row_tile=None):
    """edge_dense: (B, N, N, D) f32/bf16, a_dense: (B, N, N) int, emb_table: (3, D).

    Returns edge_dense + Embedding(3, D, padding_idx=0)(a_dense), dtype of edge_dense.
    """
    B, N, N2, D = edge_dense.shape
    assert N == N2, "edge_dense must be (B, N, N, D)"
    assert a_dense.shape == (B, N, N)
    assert emb_table.shape == (3, D)

    # padding_idx=0 semantics: class-0 bias is exactly zero, so only the rows for
    # class 1 (diagonal) and class 2 (disconnected) ever reach the kernel.
    emb_rows = emb_table[1:3].astype(jnp.float32)          # (2, D)

    # Adjacency classes only span {0,1,2}: ship as int8 (4x less HBM traffic).
    a_dense = a_dense.astype(jnp.int8)

    if row_tile is None:
        row_tile = _pick_row_tile(N, N * D * edge_dense.dtype.itemsize)
    assert N % row_tile == 0 and (row_tile % 32 == 0 or row_tile == N), \
        "row_tile must divide N and be a multiple of 32 (or N itself)"
    grid = (B, N // row_tile)

    # TODO(synk): for emb_dim < 128 the trailing lane axis is under-filled (masked
    # vst, up to 4x vreg waste at D=32).  A fully lane-dense (j, D)-flattened layout
    # needs an in-kernel (TI, N, D) -> (TI, N*D) relayout of the per-pair class,
    # which Mosaic reshape does not reliably support; the select-chain lookup keeps
    # the VALU path cheap enough to stay HBM-bound with the robust (..., N, D) layout.
    grid_spec = pltpu.PrefetchScalarGridSpec(
        num_scalar_prefetch=0,
        grid=grid,
        in_specs=[
            pl.BlockSpec((1, row_tile, N), lambda b, i: (b, i, 0)),
            pl.BlockSpec((1, row_tile, N, D), lambda b, i: (b, i, 0, 0)),
            pl.BlockSpec((2, D), lambda b, i: (0, 0)),
        ],
        out_specs=pl.BlockSpec((1, row_tile, N, D), lambda b, i: (b, i, 0, 0)),
    )
    return pl.pallas_call(
        _dense_edge_encoder_kernel,
        out_shape=jax.ShapeDtypeStruct((B, N, N, D), edge_dense.dtype),
        grid_spec=grid_spec,
        # edge_dense (operand index 1) shares its HBM buffer with the output:
        # pure in-place "+= bias", no extra B*N*N*D allocation / copy.
        input_output_aliases={1: 0},
        compiler_params=pltpu.CompilerParams(
            dimension_semantics=("parallel", "parallel"),
        ),
    )(a_dense, edge_dense, emb_rows)


if __name__ == "__main__":
    key = jax.random.PRNGKey(0)
    k_adj, k_attr, k_emb = jax.random.split(key, 3)

    B, N, D = 2, 64, 32   # small demo: batch of graphs, (padded) nodes/graph, emb_dim

    # ---- plain-JAX glue: build dense inputs (PyG to_dense_adj equivalents) ----
    # Random adjacency, no self loops.
    adj = (jax.random.uniform(k_adj, (B, N, N)) < 0.2).astype(jnp.int32)
    adj = adj * (1 - jnp.eye(N, dtype=jnp.int32))

    # get_dense_edge_types: edges get attr 2, self loops attr 1, A = 2 - dense
    #   => 0 if connected, 1 on the diagonal, 2 otherwise.
    a_dense = (2 - (2 * adj + jnp.eye(N, dtype=jnp.int32))).astype(jnp.int32)

    # batch.edge_dense = to_dense_adj(edge_index, edge_attr): features where an
    # edge exists, zero elsewhere.
    edge_feats = jax.random.normal(k_attr, (B, N, N, D), dtype=jnp.float32)
    edge_dense = edge_feats * adj[..., None].astype(jnp.float32)

    # Embedding(3, D, padding_idx=0): row 0 fixed to zeros.
    emb_table = jax.random.normal(k_emb, (3, D), dtype=jnp.float32)
    emb_table = emb_table.at[0].set(0.0)

    # Reference (pure JAX) computed first (kernel aliases edge_dense with output).
    ref = edge_dense + emb_table[a_dense]

    # ---- Pallas kernel: row_tile=32 -> grid (B, 2), exercises the tiled path ----
    out = dense_edge_encoder(edge_dense, a_dense, emb_table, row_tile=32)
    out = jax.block_until_ready(out)

    assert out.shape == (B, N, N, D)
    assert out.dtype == edge_dense.dtype
    assert jnp.allclose(out, ref, atol=1e-6), "mismatch vs reference"

    print("KERNEL_OK")
</pallas_src>

<mosaic_0001>
module attributes {stable_mosaic.version = 11 : i64} {
  func.func @_dense_edge_encoder_kernel(%arg0: i32, %arg1: i32, %arg2: memref<1x32x64xi8, #tpu.memory_space<vmem>>, %arg3: memref<1x32x64x32xf32, #tpu.memory_space<vmem>>, %arg4: memref<2x32xf32, #tpu.memory_space<vmem>>, %arg5: memref<1x32x64x32xf32, #tpu.memory_space<vmem>>) attributes {dimension_semantics = [#tpu.dimension_semantics<parallel>, #tpu.dimension_semantics<parallel>], iteration_bounds = array<i64: 2, 2>, scalar_prefetch = 0 : i64, scratch_operands = 0 : i64, tpu.core_type = #tpu.core_type<tc>, window_params = [{transform_indices = @transform_0, window_bounds = array<i64: 1, 32, 64>}, {transform_indices = @transform_1, window_bounds = array<i64: 1, 32, 64, 32>}, {pipeline_mode = #tpu.pipeline_mode<synchronous>, transform_indices = @transform_2, window_bounds = array<i64: 2, 32>}, {transform_indices = @transform_3, window_bounds = array<i64: 1, 32, 64, 32>}]} {
    %c0 = arith.constant 0 : index
    %c0_0 = arith.constant 0 : index
    %c0_1 = arith.constant 0 : index
    %0 = vector.load %arg2[%c0, %c0_0, %c0_1] : memref<1x32x64xi8, #tpu.memory_space<vmem>>, vector<1x32x64xi8>
    %1 = vector.shape_cast %0 : vector<1x32x64xi8> to vector<32x64xi8>
    %2 = arith.extsi %1 : vector<32x64xi8> to vector<32x64xi32>
    %3 = vector.shape_cast %2 : vector<32x64xi32> to vector<32x64x1xi32>
    %c0_2 = arith.constant 0 : index
    %c0_3 = arith.constant 0 : index
    %c0_4 = arith.constant 0 : index
    %c0_5 = arith.constant 0 : index
    %4 = vector.load %arg3[%c0_2, %c0_3, %c0_4, %c0_5] : memref<1x32x64x32xf32, #tpu.memory_space<vmem>>, vector<1x32x64x32xf32>
    %5 = vector.shape_cast %4 : vector<1x32x64x32xf32> to vector<32x64x32xf32>
    %c0_6 = arith.constant 0 : index
    %c0_7 = arith.constant 0 : index
    %6 = vector.load %arg4[%c0_6, %c0_7] : memref<2x32xf32, #tpu.memory_space<vmem>>, vector<1x32xf32>
    %7 = vector.shape_cast %6 : vector<1x32xf32> to vector<32xf32>
    %c1 = arith.constant 1 : index
    %c0_8 = arith.constant 0 : index
    %8 = vector.load %arg4[%c1, %c0_8] : memref<2x32xf32, #tpu.memory_space<vmem>>, vector<1x32xf32>
    %9 = vector.shape_cast %8 : vector<1x32xf32> to vector<32xf32>
    %c1_i32 = arith.constant 1 : i32
    %10 = vector.broadcast %c1_i32 : i32 to vector<32x64x1xi32>
    %11 = arith.cmpi eq, %3, %10 : vector<32x64x1xi32>
    %c2_i32 = arith.constant 2 : i32
    %12 = vector.broadcast %c2_i32 : i32 to vector<32x64x1xi32>
    %13 = arith.cmpi eq, %3, %12 : vector<32x64x1xi32>
    %cst = arith.constant 0.000000e+00 : f32
    %14 = vector.shape_cast %13 : vector<32x64x1xi1> to vector<32x64x1xi1>
    %15 = vector.broadcast %14 : vector<32x64x1xi1> to vector<32x64x32xi1>
    %16 = vector.shape_cast %9 : vector<32xf32> to vector<1x1x32xf32>
    %17 = vector.broadcast %16 : vector<1x1x32xf32> to vector<32x64x32xf32>
    %18 = vector.broadcast %cst : f32 to vector<32x64x32xf32>
    %19 = arith.select %15, %17, %18 : vector<32x64x32xi1>, vector<32x64x32xf32>
    %20 = vector.shape_cast %11 : vector<32x64x1xi1> to vector<32x64x1xi1>
    %21 = vector.broadcast %20 : vector<32x64x1xi1> to vector<32x64x32xi1>
    %22 = vector.shape_cast %7 : vector<32xf32> to vector<1x1x32xf32>
    %23 = vector.broadcast %22 : vector<1x1x32xf32> to vector<32x64x32xf32>
    %24 = arith.select %21, %23, %19 : vector<32x64x32xi1>, vector<32x64x32xf32>
    %25 = arith.addf %5, %24 : vector<32x64x32xf32>
    %c0_9 = arith.constant 0 : index
    %c0_10 = arith.constant 0 : index
    %c0_11 = arith.constant 0 : index
    %c0_12 = arith.constant 0 : index
    %26 = vector.load %arg5[%c0_9, %c0_10, %c0_11, %c0_12] : memref<1x32x64x32xf32, #tpu.memory_space<vmem>>, vector<1x32x64x32xf32>
    %27 = vector.shape_cast %26 : vector<1x32x64x32xf32> to vector<32x64x32xf32>
    %28 = vector.shape_cast %25 : vector<32x64x32xf32> to vector<1x32x64x32xf32>
    tpu.vector_store %arg5[%c0_9, %c0_10, %c0_11, %c0_12], %28 {strides = array<i32>} : memref<1x32x64x32xf32, #tpu.memory_space<vmem>>, vector<1x32x64x32xf32>,
    return
  }
  func.func @transform_0(%arg0: i32, %arg1: i32) -> (i32, i32, i32) {
    %c0_i32 = arith.constant 0 : i32
    %c0_i32_0 = arith.constant 0 : i32
    return %arg0, %arg1, %c0_i32 : i32, i32, i32
  }
  func.func @transform_1(%arg0: i32, %arg1: i32) -> (i32, i32, i32, i32) {
    %c0_i32 = arith.constant 0 : i32
    %c0_i32_0 = arith.constant 0 : i32
    %c0_i32_1 = arith.constant 0 : i32
    return %arg0, %arg1, %c0_i32, %c0_i32_0 : i32, i32, i32, i32
  }
  func.func @transform_2(%arg0: i32, %arg1: i32) -> (i32, i32) {
    %c0_i32 = arith.constant 0 : i32
    %c0_i32_0 = arith.constant 0 : i32
    %c0_i32_1 = arith.constant 0 : i32
    return %c0_i32, %c0_i32_0 : i32, i32
  }
  func.func @transform_3(%arg0: i32, %arg1: i32) -> (i32, i32, i32, i32) {
    %c0_i32 = arith.constant 0 : i32
    %c0_i32_0 = arith.constant 0 : i32
    %c0_i32_1 = arith.constant 0 : i32
    return %arg0, %arg1, %c0_i32, %c0_i32_0 : i32, i32, i32, i32
  }
}

</mosaic_0001>

<bundles_post_ra>
// kernel: tpu_custom_call.1
= control target key start
LH: loop header
LB: loop body
LE: loop exit
PB: predicated region body
PF: predicated region fallthrough
CT: control target
= control target key end

     0   :  { %s5099_s12 = smov 0   ;;  %s5101_s13 = smov 0   ;;  %s7930_s0 = inlined_call_operand.vmem [shape: s8[2,64,64], index: 0, kind: input, shape index: {}]   ;;  %s7931_s1 = inlined_call_operand.vmem [shape: f32[2,64,64,32], index: 1, kind: input, shape index: {}, may-alias: {1,3}]   ;;  %s7932_s2 = inlined_call_operand.vmem [shape: f32[2,32], index: 2, kind: input, shape index: {}]   ;;  %s7933_s3 = inlined_call_operand.vmem [shape: f32[2,64,64,32], index: 3, kind: output, shape index: {}, may-alias: {1,3}]  }
   0x1   :  { %s5103_s14 = smov 0   ;;  %s5105_s15 = smov 0  }
   0x2   :  { %s5107_s16 = smov 0  }
   0x3 LB: > { %s22_s17 = sadd.s32 1, %s5069_s14  ;;  %s25_s18 = sadd.s32 1, %s5073_s15  ;;  %s5077_s16 = sphi %s5107_s16, %s13_s16   ;;  %s5073_s15 = sphi %s5105_s15, %s8384_s15   ;;  %s5069_s14 = sphi %s5103_s14, %s8383_s14   ;;  %s5065_s13 = sphi %s5101_s13, %s8382_s13   ;;  %s5061_s12 = sphi %s5099_s12, %s8381_s12  }
   0x4   : > { %p23_p0 = scmp.ge.s32.totalorder %s22_s17, 2  ;;  %p4761_p1 = scmp.ge.s32.totalorder %s5077_s16, 1 }
   0x5   : > { %p174_p2 = scmp.lt.s32.totalorder %s5077_s16, 5 }
   0x6   : > { %s8386_s17 = smov (%p23_p0, %s22_s17), 0  ;;  %s8388_s18 = smov (!%p23_p0, %s25_s18), %s5073_s15 }
   0x7   : > { %p175_p3 = pnand %p4761_p1, %p174_p2  ;;  %p27_p4 = scmp.ge.s32.totalorder %s8388_s18, 2 }
   0x9   : > { %s8390_s18 = smov (%p27_p4, %s8388_s18), 0  ;;  %178 = sbr.rel (%p175_p3) target bundleno = 1835 (0x72b), region = 32 }
   0xe   : > { %v252_v0 = vlaneseq  ;;  %p216_p5 = scmp.lt.s32.totalorder %s5065_s13, 1  ;;  %p218_p6 = scmp.lt.s32.totalorder %s5061_s12, 1  ;;  %v5236_v22 = vld [vmem:[%s7932_s2 + $0x1] ss:$0 sm:$0xff]  ;;  %v5242_v23 = vld [vmem:[%s7932_s2] ss:$0 sm:$0xff] }
   0xf   : > { %s4764_s26 = sshll.u32 %s5061_s12, 5 }
  0x10   : > { %v5132_v1 = vshrl.u32 %v252_v0, 7  ;;  %s8392_s13 = smov (!%p216_p5, %s5065_s13), 1  ;;  %p227_p7 = scmp.lt.s32.totalorder %s4764_s26, 63 }
  0x11   : > { %s219_s19 = scalar_select %p218_p6, %s5061_s12, 1 }
  0x12   : > { %v5138_v2 = vadd.s32 16, %v5132_v1  ;;  %s4762_s20 = sshll.u32 %s8392_s13, 1  ;;  %v5142_v3 = vadd.s32 32, %v5132_v1  ;;  %v5161_v7 = vadd.s32 24, %v5132_v1  ;;  %v5164_v8 = vadd.s32 40, %v5132_v1  ;;  %s8394_s26 = smov (!%p227_p7, %s4764_s26), 63 }
  0x13   : > { %s221_s21 = sadd.s32 %s4762_s20, %s219_s19  ;;  %v5171_v9 = vadd.s32 48, %v5132_v1  ;;  %v5174_v10 = vadd.s32 56, %v5132_v1  ;;  %v5181_v11 = vadd.s32 8, %v5132_v1  ;;  %s4765_s27 = sshll.u32 %s8394_s26, 3 }
  0x14   : > { %4814 = vset.pattern.permute.xlu1 %v5138_v2  ;;  %s4763_s22 = sshll.u32 %s221_s21, 3  ;;  %4816 = vset.pattern.permute.xlu2 %v5142_v3  ;;  %s4766_s28 = sshll.u32 %s8392_s13, 9 }
  0x15   : > { %s5149_s25 = scalar_lea.vmem %s7930_s0, %s4763_s22  ;;  %4828 = vset.pattern.permute.xlu0 %v5138_v2  ;;  %s5231_s29 = sadd.s32 %s4766_s28, %s4765_s27 }
  0x16   : > { %v246_v4 = vld [vmem:[%s5149_s25] sm:$0xff]  ;;  %s4767_s5 = sshll.u32 %s5231_s29, 3 }
  0x17   : > { %v5153_v5 = vunpack.c.0.s8 %v246_v4  ;;  %s5251_s10 = scalar_lea.vmem %s7931_s1, %s4767_s5  ;;  %s6043_s13 = scalar_lea.vmem %s7933_s3, %s4767_s5 }
  0x18   : > { %v5264_v30 = vld [vmem:[%s5251_s10 + $0x10] sm:$0xff]  ;;  %v5274_v33 = vld [vmem:[%s5251_s10 + $0x20] sm:$0xff]  ;;  %v5280_v35 = vld [vmem:[%s5251_s10 + $0x18] sm:$0xff] }
  0x19   : > { %v5156_v6 = vperm.slane %v5153_v5, 0  ;;  %v5186_v12 = vperm.slane %v5153_v5, 1  ;;  %v5193_v13 = vperm.slane %v5153_v5, 2  ;;  %v5217_v17 = vperm.slane %v5153_v5, 3  ;;  %v5288_v37 = vld [vmem:[%s5251_s10 + $0x28] sm:$0xff]  ;;  %v5294_v39 = vld [vmem:[%s5251_s10 + $0x38] sm:$0xff] }
  0x1a   : > { %v5301_v41 = vld [vmem:[%s5251_s10 + $0x30] sm:$0xff]  ;;  %v5307_v43 = vld [vmem:[%s5251_s10 + $0x48] sm:$0xff]  ;;  %v5310_v44 = vld [vmem:[%s5251_s10 + $0x60] sm:$0xff] }
  0x1b   : > { %7939 = vst [vmem:[#allocation2_spill] sm:$0xff] %v5156_v6  ;;  %v5304_v42 = vld [vmem:[%s5251_s10 + $0x50] sm:$0xff]  ;;  %v5314_v45 = vld [vmem:[%s5251_s10 + $0x58] sm:$0xff]  ;;  %v5323_v48 = vld [vmem:[%s5251_s10 + $0x88] sm:$0xff] }
  0x1c   : > { %268 = vperm.xlu1 %4814, %v5156_v6   ;;  %280 = vperm.xlu2 %4816, %v5156_v6   ;;  %7940 = vst [vmem:[#allocation3_spill] sm:$0xff] %v5186_v12  ;;  %v5317_v46 = vld [vmem:[%s5251_s10 + $0x78] sm:$0xff]  ;;  %v5320_v47 = vld [vmem:[%s5251_s10 + $0x70] sm:$0xff]  ;;  %v5326_v49 = vld [vmem:[%s5251_s10 + $0x80] sm:$0xff] }
  0x1d   : > { %7941 = vst [vmem:[#allocation4_spill] sm:$0xff] %v5193_v13  ;;  %366 = vperm.xlu0 %4828, %v5193_v13   ;;  %v5329_v50 = vld [vmem:[%s5251_s10 + $0xa0] sm:$0xff]  ;;  %v5332_v51 = vld [vmem:[%s5251_s10 + $0x98] sm:$0xff]  ;;  %v5335_v52 = vld [vmem:[%s5251_s10 + $0xb0] sm:$0xff] }
  0x1e   : > { %v5338_v53 = vld [vmem:[%s5251_s10 + $0xa8] sm:$0xff]  ;;  %v5344_v55 = vld [vmem:[%s5251_s10 + $0xc0] sm:$0xff]  ;;  %v5347_v56 = vld [vmem:[%s5251_s10 + $0xd8] sm:$0xff] }
  0x1f   : > { %v5341_v54 = vld [vmem:[%s5251_s10 + $0xc8] sm:$0xff]  ;;  %v5350_v57 = vld [vmem:[%s5251_s10 + $0xd0] sm:$0xff]  ;;  %v5359_v60 = vld [vmem:[%s5251_s10 + $0x100] sm:$0xff] }
  0x20   : > { %v5353_v58 = vld [vmem:[%s5251_s10 + $0xf0] sm:$0xff]  ;;  %v5356_v59 = vld [vmem:[%s5251_s10 + $0xe8] sm:$0xff]  ;;  %v5362_v61 = vld [vmem:[%s5251_s10 + $0xf8] sm:$0xff] }
  0x21   : > { %v5365_v62 = vld [vmem:[%s5251_s10 + $0x118] sm:$0xff]  ;;  %v5368_v63 = vld [vmem:[%s5251_s10 + $0x110] sm:$0xff]  ;;  %v5371_v0 = vld [vmem:[%s5251_s10 + $0x128] sm:$0xff] }
  0x22   : > { %v5374_v4 = vld [vmem:[%s5251_s10 + $0x120] sm:$0xff] }
  0x24   : > { %4815 = vset.pattern.permute.xlu1 %v5161_v7  ;;  %4817 = vset.pattern.permute.xlu2 %v5164_v8 }
  0x2c   : > { %274 = vperm.xlu1 %4815, %v5156_v6   ;;  %286 = vperm.xlu2 %4817, %v5156_v6  }
  0x34   : > { %4818 = vset.pattern.permute.xlu1 %v5171_v9  ;;  %4819 = vset.pattern.permute.xlu2 %v5174_v10 }
  0x3c   : > { %292 = vperm.xlu1 %4818, %v5156_v6   ;;  %298 = vperm.xlu2 %4819, %v5156_v6   ;;  %v5404_v6 = vld [vmem:[%s5251_s10 + $0x188] sm:$0xff] }
  0x3d   : > { %7949 = vst [vmem:[#allocation12_spill] sm:$0xff] %v5404_v6  ;;  %v5425_v6 = vld [vmem:[%s5251_s10 + $0x1e0] sm:$0xff] }
  0x3e   : > { %7956 = vst [vmem:[#allocation19_spill] sm:$0xff] %v5425_v6  ;;  %v5446_v6 = vld [vmem:[%s5251_s10 + $0x210] sm:$0xff] }
  0x3f   : > { %7963 = vst [vmem:[#allocation26_spill] sm:$0xff] %v5446_v6  ;;  %v5467_v6 = vld [vmem:[%s5251_s10 + $0x268] sm:$0xff] }
  0x40   : > { %7970 = vst [vmem:[#allocation33_spill] sm:$0xff] %v5467_v6  ;;  %v5488_v6 = vld [vmem:[%s5251_s10 + $0x2a0] sm:$0xff] }
  0x41   : > { %7977 = vst [vmem:[#allocation40_spill] sm:$0xff] %v5488_v6  ;;  %v5509_v6 = vld [vmem:[%s5251_s10 + $0x2f8] sm:$0xff] }
  0x42   : > { %7984 = vst [vmem:[#allocation47_spill] sm:$0xff] %v5509_v6  ;;  %v5530_v6 = vld [vmem:[%s5251_s10 + $0x328] sm:$0xff] }
  0x43   : > { %7991 = vst [vmem:[#allocation54_spill] sm:$0xff] %v5530_v6  ;;  %v5551_v6 = vld [vmem:[%s5251_s10 + $0x380] sm:$0xff] }
  0x44   : > { %4820 = vset.pattern.permute.xlu1 %v5181_v11  ;;  %4821 = vset.pattern.permute.xlu2 %v5138_v2  ;;  %7998 = vst [vmem:[#allocation61_spill] sm:$0xff] %v5551_v6  ;;  %v5572_v6 = vld [vmem:[%s5251_s10 + $0x3b8] sm:$0xff] }
  0x45   : > { %8005 = vst [vmem:[#allocation68_spill] sm:$0xff] %v5572_v6  ;;  %v5593_v6 = vld [vmem:[%s5251_s10 + $0x410] sm:$0xff] }
  0x46   : > { %8012 = vst [vmem:[#allocation75_spill] sm:$0xff] %v5593_v6  ;;  %v5614_v6 = vld [vmem:[%s5251_s10 + $0x440] sm:$0xff] }
  0x47   : > { %8019 = vst [vmem:[#allocation82_spill] sm:$0xff] %v5614_v6  ;;  %v5635_v6 = vld [vmem:[%s5251_s10 + $0x498] sm:$0xff] }
  0x48   : > { %8026 = vst [vmem:[#allocation89_spill] sm:$0xff] %v5635_v6  ;;  %v5656_v6 = vld [vmem:[%s5251_s10 + $0x4d0] sm:$0xff] }
  0x49   : > { %8033 = vst [vmem:[#allocation96_spill] sm:$0xff] %v5656_v6  ;;  %v5677_v6 = vld [vmem:[%s5251_s10 + $0x528] sm:$0xff] }
  0x4a   : > { %8040 = vst [vmem:[#allocation103_spill] sm:$0xff] %v5677_v6  ;;  %v5698_v6 = vld [vmem:[%s5251_s10 + $0x558] sm:$0xff] }
  0x4b   : > { %8047 = vst [vmem:[#allocation110_spill] sm:$0xff] %v5698_v6  ;;  %v5719_v6 = vld [vmem:[%s5251_s10 + $0x310] sm:$0xff] }
  0x4c   : > { %311 = vperm.xlu1 %4820, %v5186_v12   ;;  %317 = vperm.xlu2 %4821, %v5186_v12   ;;  %8054 = vst [vmem:[#allocation117_spill] sm:$0xff] %v5719_v6  ;;  %v5740_v6 = vld [vmem:[%s5251_s10 + $0x5a8] sm:$0xff] }
  0x4d   : > { %8061 = vst [vmem:[#allocation124_spill] sm:$0xff] %v5740_v6  ;;  %v5761_v6 = vld [vmem:[%s5251_s10 + $0x5d0] sm:$0xff] }
  0x4e   : > { %8068 = vst [vmem:[#allocation131_spill] sm:$0xff] %v5761_v6  ;;  %v5782_v6 = vld [vmem:[%s5251_s10 + $0x5f8] sm:$0xff] }
  0x4f   : > { %8075 = vst [vmem:[#allocation138_spill] sm:$0xff] %v5782_v6  ;;  %v5803_v6 = vld [vmem:[%s5251_s10 + $0x628] sm:$0xff] }
  0x50   : > { %8082 = vst [vmem:[#allocation145_spill] sm:$0xff] %v5803_v6  ;;  %v5824_v6 = vld [vmem:[%s5251_s10 + $0x108] sm:$0xff] }
  0x51   : > { %8089 = vst [vmem:[#allocation152_spill] sm:$0xff] %v5824_v6  ;;  %v5845_v6 = vld [vmem:[%s5251_s10 + $0x4c8] sm:$0xff] }
  0x52   : > { %8096 = vst [vmem:[#allocation159_spill] sm:$0xff] %v5845_v6  ;;  %v5866_v6 = vld [vmem:[%s5251_s10 + $0x130] sm:$0xff] }
  0x53   : > { %8103 = vst [vmem:[#allocation166_spill] sm:$0xff] %v5866_v6  ;;  %v5887_v6 = vld [vmem:[%s5251_s10 + $0x4f0] sm:$0xff] }
  0x54   : > { %4822 = vset.pattern.permute.xlu1 %v5161_v7  ;;  %4823 = vset.pattern.permute.xlu2 %v5142_v3  ;;  %8110 = vst [vmem:[#allocation173_spill] sm:$0xff] %v5887_v6  ;;  %v5908_v6 = vld [vmem:[%s5251_s10 + $0x6d8] sm:$0xff] }
  0x55   : > { %8117 = vst [vmem:[#allocation180_spill] sm:$0xff] %v5908_v6  ;;  %v5929_v6 = vld [vmem:[%s5251_s10 + $0x708] sm:$0xff] }
  0x56   : > { %8124 = vst [vmem:[#allocation187_spill] sm:$0xff] %v5929_v6  ;;  %v5950_v6 = vld [vmem:[%s5251_s10 + $0x180] sm:$0xff] }
  0x57   : > { %8131 = vst [vmem:[#allocation194_spill] sm:$0xff] %v5950_v6  ;;  %v5971_v6 = vld [vmem:[%s5251_s10 + $0x540] sm:$0xff] }
  0x58   : > { %8138 = vst [vmem:[#allocation201_spill] sm:$0xff] %v5971_v6  ;;  %v5998_v6 = vld [vmem:[%s5251_s10 + $0x778] sm:$0xff] }
  0x59   : > { %8147 = vst [vmem:[#allocation210_spill] sm:$0xff] %v5998_v6 }
  0x5c   : > { %323 = vperm.xlu1 %4822, %v5186_v12   ;;  %329 = vperm.xlu2 %4823, %v5186_v12  }
  0x64   : > { %4824 = vset.pattern.permute.xlu1 %v5171_v9  ;;  %4825 = vset.pattern.permute.xlu2 %v5174_v10 }
  0x6c   : > { %341 = vperm.xlu1 %4824, %v5186_v12   ;;  %347 = vperm.xlu2 %4825, %v5186_v12   ;;  %v5401_v12 = vld [vmem:[%s5251_s10 + $0x190] sm:$0xff] }
  0x6d   : > { %7948 = vst [vmem:[#allocation11_spill] sm:$0xff] %v5401_v12  ;;  %v5422_v12 = vld [vmem:[%s5251_s10 + $0x1c0] sm:$0xff] }
  0x6e   : > { %7955 = vst [vmem:[#allocation18_spill] sm:$0xff] %v5422_v12  ;;  %v5443_v12 = vld [vmem:[%s5251_s10 + $0x218] sm:$0xff] }
  0x6f   : > { %7962 = vst [vmem:[#allocation25_spill] sm:$0xff] %v5443_v12  ;;  %v5464_v12 = vld [vmem:[%s5251_s10 + $0x250] sm:$0xff] }
  0x70   : > { %7969 = vst [vmem:[#allocation32_spill] sm:$0xff] %v5464_v12  ;;  %v5485_v12 = vld [vmem:[%s5251_s10 + $0x2a8] sm:$0xff] }
  0x71   : > { %7976 = vst [vmem:[#allocation39_spill] sm:$0xff] %v5485_v12  ;;  %v5506_v12 = vld [vmem:[%s5251_s10 + $0x2d8] sm:$0xff] }
  0x72   : > { %7983 = vst [vmem:[#allocation46_spill] sm:$0xff] %v5506_v12  ;;  %v5527_v12 = vld [vmem:[%s5251_s10 + $0x330] sm:$0xff] }
  0x73   : > { %7990 = vst [vmem:[#allocation53_spill] sm:$0xff] %v5527_v12  ;;  %v5548_v12 = vld [vmem:[%s5251_s10 + $0x368] sm:$0xff] }
  0x74   : > { %4826 = vset.pattern.permute.xlu1 %v5132_v1  ;;  %4827 = vset.pattern.permute.xlu2 %v5181_v11  ;;  %7997 = vst [vmem:[#allocation60_spill] sm:$0xff] %v5548_v12  ;;  %v5569_v12 = vld [vmem:[%s5251_s10 + $0x3c0] sm:$0xff] }
  0x75   : > { %8004 = vst [vmem:[#allocation67_spill] sm:$0xff] %v5569_v12  ;;  %v5590_v12 = vld [vmem:[%s5251_s10 + $0x3f0] sm:$0xff] }
  0x76   : > { %v281_v14 = vpop.permute.xlu2 %280  ;;  %8011 = vst [vmem:[#allocation74_spill] sm:$0xff] %v5590_v12  ;;  %v5611_v12 = vld [vmem:[%s5251_s10 + $0x448] sm:$0xff] }
  0x77   : > { %vm2337_vm2 = vcmp.eq.s32.totalorder %v281_v14, 2  ;;  %vm2081_vm6 = vcmp.eq.s32.totalorder %v281_v14, 1  ;;  %v5377_v14 = vld [vmem:[%s5251_s10 + $0x140] sm:$0xff]  ;;  %8018 = vst [vmem:[#allocation81_spill] sm:$0xff] %v5611_v12 }
  0x78   : > { %v3106_v26 = vsel %vm2337_vm2, %v5236_v22, 0.0  ;;  %v5632_v12 = vld [vmem:[%s5251_s10 + $0x480] sm:$0xff] }
  0x79   : > { %v5277_v34 = vsel %vm2081_vm6, %v5242_v23, %v3106_v26  ;;  %v5395_v26 = vld [vmem:[%s5251_s10 + $0x178] sm:$0xff]  ;;  %8025 = vst [vmem:[#allocation88_spill] sm:$0xff] %v5632_v12 }
  0x7a   : > { %7946 = vst [vmem:[#allocation9_spill] sm:$0xff] %v5395_v26  ;;  %v5416_v26 = vld [vmem:[%s5251_s10 + $0x1b0] sm:$0xff]  ;;  %v5653_v12 = vld [vmem:[%s5251_s10 + $0x4d8] sm:$0xff] }
  0x7b   : > { %7953 = vst [vmem:[#allocation16_spill] sm:$0xff] %v5416_v26  ;;  %v5437_v26 = vld [vmem:[%s5251_s10 + $0x208] sm:$0xff] }
  0x7c   : > { %354 = vperm.xlu1 %4826, %v5193_v13   ;;  %360 = vperm.xlu2 %4827, %v5193_v13   ;;  %7960 = vst [vmem:[#allocation23_spill] sm:$0xff] %v5437_v26  ;;  %v5458_v26 = vld [vmem:[%s5251_s10 + $0x238] sm:$0xff] }
  0x7d   : > { %7967 = vst [vmem:[#allocation30_spill] sm:$0xff] %v5458_v26  ;;  %v5479_v26 = vld [vmem:[%s5251_s10 + $0x290] sm:$0xff] }
  0x7e   : > { %7974 = vst [vmem:[#allocation37_spill] sm:$0xff] %v5479_v26  ;;  %v5500_v26 = vld [vmem:[%s5251_s10 + $0x2c8] sm:$0xff] }
  0x7f   : > { %7981 = vst [vmem:[#allocation44_spill] sm:$0xff] %v5500_v26  ;;  %v5521_v26 = vld [vmem:[%s5251_s10 + $0x320] sm:$0xff] }
  0x80   : > { %7988 = vst [vmem:[#allocation51_spill] sm:$0xff] %v5521_v26  ;;  %v5542_v26 = vld [vmem:[%s5251_s10 + $0x350] sm:$0xff] }
  0x81   : > { %7995 = vst [vmem:[#allocation58_spill] sm:$0xff] %v5542_v26  ;;  %v5563_v26 = vld [vmem:[%s5251_s10 + $0x3a8] sm:$0xff] }
  0x82   : > { %8002 = vst [vmem:[#allocation65_spill] sm:$0xff] %v5563_v26  ;;  %v5584_v26 = vld [vmem:[%s5251_s10 + $0x3e0] sm:$0xff] }
  0x83   : > { %8009 = vst [vmem:[#allocation72_spill] sm:$0xff] %v5584_v26  ;;  %v5605_v26 = vld [vmem:[%s5251_s10 + $0x438] sm:$0xff] }
  0x84   : > { %4829 = vset.pattern.permute.xlu1 %v5161_v7  ;;  %4830 = vset.pattern.permute.xlu2 %v5142_v3  ;;  %8016 = vst [vmem:[#allocation79_spill] sm:$0xff] %v5605_v26  ;;  %v5626_v26 = vld [vmem:[%s5251_s10 + $0x468] sm:$0xff] }
  0x85   : > { %8023 = vst [vmem:[#allocation86_spill] sm:$0xff] %v5626_v26  ;;  %v5647_v26 = vld [vmem:[%s5251_s10 + $0x4c0] sm:$0xff] }
  0x86   : > { %v287_v16 = vpop.permute.xlu2 %286  ;;  %8030 = vst [vmem:[#allocation93_spill] sm:$0xff] %v5647_v26  ;;  %v5668_v26 = vld [vmem:[%s5251_s10 + $0x4f8] sm:$0xff] }
  0x87   : > { %vm2338_vm3 = vcmp.eq.s32.totalorder %v287_v16, 2  ;;  %vm2082_vm8 = vcmp.eq.s32.totalorder %v287_v16, 1  ;;  %v5383_v16 = vld [vmem:[%s5251_s10 + $0x150] sm:$0xff]  ;;  %8032 = vst [vmem:[#allocation95_spill] sm:$0xff] %v5653_v12  ;;  %v5674_v12 = vld [vmem:[%s5251_s10 + $0x508] sm:$0xff] }
  0x88   : > { %v3107_v29 = vsel %vm2338_vm3, %v5236_v22, 0.0  ;;  %8037 = vst [vmem:[#allocation100_spill] sm:$0xff] %v5668_v26  ;;  %v5689_v26 = vld [vmem:[%s5251_s10 + $0x550] sm:$0xff] }
  0x89   : > { %v5291_v38 = vsel %vm2082_vm8, %v5242_v23, %v3107_v29  ;;  %v5398_v29 = vld [vmem:[%s5251_s10 + $0x170] sm:$0xff]  ;;  %8039 = vst [vmem:[#allocation102_spill] sm:$0xff] %v5674_v12  ;;  %v5695_v12 = vld [vmem:[%s5251_s10 + $0x560] sm:$0xff] }
  0x8a   : > { %7947 = vst [vmem:[#allocation10_spill] sm:$0xff] %v5398_v29  ;;  %v5419_v29 = vld [vmem:[%s5251_s10 + $0x1c8] sm:$0xff] }
  0x8b   : > { %7954 = vst [vmem:[#allocation17_spill] sm:$0xff] %v5419_v29  ;;  %v5440_v29 = vld [vmem:[%s5251_s10 + $0x200] sm:$0xff] }
  0x8c   : > { %372 = vperm.xlu1 %4829, %v5193_v13   ;;  %378 = vperm.xlu2 %4830, %v5193_v13   ;;  %7961 = vst [vmem:[#allocation24_spill] sm:$0xff] %v5440_v29  ;;  %v5461_v29 = vld [vmem:[%s5251_s10 + $0x258] sm:$0xff] }
  0x8d   : > { %7968 = vst [vmem:[#allocation31_spill] sm:$0xff] %v5461_v29  ;;  %v5482_v29 = vld [vmem:[%s5251_s10 + $0x288] sm:$0xff] }
  0x8e   : > { %v269_v15 = vpop.permute.xlu1 %268  ;;  %7975 = vst [vmem:[#allocation38_spill] sm:$0xff] %v5482_v29  ;;  %v5503_v29 = vld [vmem:[%s5251_s10 + $0x2e0] sm:$0xff] }
  0x8f   : > { %vm2335_vm0 = vcmp.eq.s32.totalorder %v269_v15, 2  ;;  %vm2079_vm4 = vcmp.eq.s32.totalorder %v269_v15, 1  ;;  %v5380_v15 = vld [vmem:[%s5251_s10 + $0x138] sm:$0xff]  ;;  %7982 = vst [vmem:[#allocation45_spill] sm:$0xff] %v5503_v29 }
  0x90   : > { %v3104_v24 = vsel %vm2335_vm0, %v5236_v22, 0.0  ;;  %7942 = vst [vmem:[#allocation5_spill] sm:$0xff] %v5380_v15  ;;  %v5524_v29 = vld [vmem:[%s5251_s10 + $0x318] sm:$0xff]  ;;  %v5986_v15 = vld [vmem:[%s5251_s10 + $0x768] sm:$0xff] }
  0x91   : > { %v5267_v31 = vsel %vm2079_vm4, %v5242_v23, %v3104_v24  ;;  %v5389_v24 = vld [vmem:[%s5251_s10 + $0x168] sm:$0xff]  ;;  %7989 = vst [vmem:[#allocation52_spill] sm:$0xff] %v5524_v29  ;;  %v5545_v29 = vld [vmem:[%s5251_s10 + $0x370] sm:$0xff] }
  0x92   : > { %7944 = vst [vmem:[#allocation7_spill] sm:$0xff] %v5389_v24  ;;  %v5977_v24 = vld [vmem:[%s5251_s10 + $0x758] sm:$0xff]  ;;  %v4129_v6 = vadd.f32 %v5267_v31, %v5264_v30 }
  0x93   : > { %7996 = vst [vmem:[#allocation59_spill] sm:$0xff] %v5545_v29  ;;  %v5566_v29 = vld [vmem:[%s5251_s10 + $0x3a0] sm:$0xff] }
  0x94   : > { %4831 = vset.pattern.permute.xlu1 %v5164_v8  ;;  %4832 = vset.pattern.permute.xlu2 %v5171_v9  ;;  %8003 = vst [vmem:[#allocation66_spill] sm:$0xff] %v5566_v29  ;;  %v5587_v29 = vld [vmem:[%s5251_s10 + $0x3f8] sm:$0xff] }
  0x95   : > { %8010 = vst [vmem:[#allocation73_spill] sm:$0xff] %v5587_v29  ;;  %v5608_v29 = vld [vmem:[%s5251_s10 + $0x430] sm:$0xff] }
  0x96   : > { %v5222_v19 = vpop.permute.xlu2 %298  ;;  %8017 = vst [vmem:[#allocation80_spill] sm:$0xff] %v5608_v29  ;;  %v5629_v29 = vld [vmem:[%s5251_s10 + $0x488] sm:$0xff] }
  0x97   : > { %vm2340_vm9 = vcmp.eq.s32.totalorder %v5222_v19, 2  ;;  %vm2084_vm13 = vcmp.eq.s32.totalorder %v5222_v19, 1  ;;  %8024 = vst [vmem:[#allocation87_spill] sm:$0xff] %v5629_v29  ;;  %v5650_v29 = vld [vmem:[%s5251_s10 + $0x4b8] sm:$0xff] }
  0x98   : > { %v5298_v40 = vsel %vm2340_vm9, %v5236_v22, 0.0  ;;  %8031 = vst [vmem:[#allocation94_spill] sm:$0xff] %v5650_v29  ;;  %v5671_v29 = vld [vmem:[%s5251_s10 + $0x510] sm:$0xff] }
  0x99   : > { %8038 = vst [vmem:[#allocation101_spill] sm:$0xff] %v5671_v29  ;;  %v5692_v29 = vld [vmem:[%s5251_s10 + $0x548] sm:$0xff] }
  0x9a   : > { %8044 = vst [vmem:[#allocation107_spill] sm:$0xff] %v5689_v26  ;;  %v5710_v26 = vld [vmem:[%s5251_s10 + $0x1d0] sm:$0xff] }
  0x9b   : > { %8045 = vst [vmem:[#allocation108_spill] sm:$0xff] %v5692_v29  ;;  %v5713_v29 = vld [vmem:[%s5251_s10 + $0x588] sm:$0xff] }
  0x9c   : > { %384 = vperm.xlu1 %4831, %v5193_v13   ;;  %390 = vperm.xlu2 %4832, %v5193_v13   ;;  %v5407_v13 = vld [vmem:[%s5251_s10 + $0x1a0] sm:$0xff]  ;;  %8046 = vst [vmem:[#allocation109_spill] sm:$0xff] %v5695_v12 }
  0x9d   : > { %7950 = vst [vmem:[#allocation13_spill] sm:$0xff] %v5407_v13  ;;  %v5428_v13 = vld [vmem:[%s5251_s10 + $0x1d8] sm:$0xff]  ;;  %v5716_v12 = vld [vmem:[%s5251_s10 + $0x580] sm:$0xff] }
  0x9e   : > { %v275_v18 = vpop.permute.xlu1 %274  ;;  %7957 = vst [vmem:[#allocation20_spill] sm:$0xff] %v5428_v13  ;;  %v5449_v13 = vld [vmem:[%s5251_s10 + $0x230] sm:$0xff] }
  0x9f   : > { %vm2336_vm1 = vcmp.eq.s32.totalorder %v275_v18, 2  ;;  %vm2080_vm5 = vcmp.eq.s32.totalorder %v275_v18, 1  ;;  %v5386_v18 = vld [vmem:[%s5251_s10 + $0x148] sm:$0xff]  ;;  %7964 = vst [vmem:[#allocation27_spill] sm:$0xff] %v5449_v13  ;;  %v5470_v13 = vld [vmem:[%s5251_s10 + $0x260] sm:$0xff] }
  0xa0   : > { %v3105_v25 = vsel %vm2336_vm1, %v5236_v22, 0.0  ;;  %7943 = vst [vmem:[#allocation6_spill] sm:$0xff] %v5386_v18  ;;  %v5410_v18 = vld [vmem:[%s5251_s10 + $0x198] sm:$0xff]  ;;  %vm4383_vm1 = vcmask 261120  }
  0xa1   : > { %v5270_v32 = vsel %vm2080_vm5, %v5242_v23, %v3105_v25  ;;  %v5392_v25 = vld [vmem:[%s5251_s10 + $0x160] sm:$0xff]  ;;  %7951 = vst [vmem:[#allocation14_spill] sm:$0xff] %v5410_v18  ;;  %v5431_v18 = vld [vmem:[%s5251_s10 + $0x1f0] sm:$0xff] }
  0xa2   : > { %7945 = vst [vmem:[#allocation8_spill] sm:$0xff] %v5392_v25  ;;  %v5413_v25 = vld [vmem:[%s5251_s10 + $0x1b8] sm:$0xff] }
  0xa3   : > { %7952 = vst [vmem:[#allocation15_spill] sm:$0xff] %v5413_v25  ;;  %v5434_v25 = vld [vmem:[%s5251_s10 + $0x1e8] sm:$0xff] }
  0xa4   : > { %4833 = vset.pattern.permute.xlu1 %v5132_v1  ;;  %4834 = vset.pattern.permute.xlu2 %v5181_v11  ;;  %7958 = vst [vmem:[#allocation21_spill] sm:$0xff] %v5431_v18  ;;  %v5452_v18 = vld [vmem:[%s5251_s10 + $0x228] sm:$0xff] }
  0xa5   : > { %7959 = vst [vmem:[#allocation22_spill] sm:$0xff] %v5434_v25  ;;  %v5455_v25 = vld [vmem:[%s5251_s10 + $0x240] sm:$0xff] }
  0xa6   : > { %v5229_v21 = vpop.permute.xlu2 %317  ;;  %7965 = vst [vmem:[#allocation28_spill] sm:$0xff] %v5452_v18  ;;  %v5473_v18 = vld [vmem:[%s5251_s10 + $0x280] sm:$0xff] }
  0xa7   : > { %vm2343_vm12 = vcmp.eq.s32.totalorder %v5229_v21, 2  ;;  %7966 = vst [vmem:[#allocation29_spill] sm:$0xff] %v5455_v25  ;;  %v5476_v25 = vld [vmem:[%s5251_s10 + $0x278] sm:$0xff]  ;;  %vm2087_vm0 = vcmp.eq.s32.totalorder %v5229_v21, 1 }
  0xa8   : > { %7971 = vst [vmem:[#allocation34_spill] sm:$0xff] %v5470_v13  ;;  %v5491_v13 = vld [vmem:[%s5251_s10 + $0x2b8] sm:$0xff]  ;;  %v3112_v31 = vsel %vm2343_vm12, %v5236_v22, 0.0 }
  0xa9   : > { %7972 = vst [vmem:[#allocation35_spill] sm:$0xff] %v5473_v18  ;;  %v5494_v18 = vld [vmem:[%s5251_s10 + $0x2b0] sm:$0xff] }
  0xaa   : > { %7973 = vst [vmem:[#allocation36_spill] sm:$0xff] %v5476_v25  ;;  %v5497_v25 = vld [vmem:[%s5251_s10 + $0x2d0] sm:$0xff] }
  0xab   : > { %7978 = vst [vmem:[#allocation41_spill] sm:$0xff] %v5491_v13  ;;  %v5512_v13 = vld [vmem:[%s5251_s10 + $0x2f0] sm:$0xff] }
  0xac   : > { %403 = vperm.xlu1 %4833, %v5217_v17   ;;  %409 = vperm.xlu2 %4834, %v5217_v17   ;;  %7979 = vst [vmem:[#allocation42_spill] sm:$0xff] %v5494_v18  ;;  %v5515_v18 = vld [vmem:[%s5251_s10 + $0x308] sm:$0xff] }
  0xad   : > { %7980 = vst [vmem:[#allocation43_spill] sm:$0xff] %v5497_v25  ;;  %v5518_v25 = vld [vmem:[%s5251_s10 + $0x300] sm:$0xff] }
  0xae   : > { %v5227_v20 = vpop.permute.xlu1 %292  ;;  %7985 = vst [vmem:[#allocation48_spill] sm:$0xff] %v5512_v13  ;;  %v5533_v13 = vld [vmem:[%s5251_s10 + $0x348] sm:$0xff] }
  0xaf   : > { %vm2339_vm7 = vcmp.eq.s32.totalorder %v5227_v20, 2  ;;  %vm2083_vm11 = vcmp.eq.s32.totalorder %v5227_v20, 1  ;;  %7986 = vst [vmem:[#allocation49_spill] sm:$0xff] %v5515_v18  ;;  %v5536_v18 = vld [vmem:[%s5251_s10 + $0x340] sm:$0xff]  ;;  %v4131_v20 = vadd.f32 %v5277_v34, %v5274_v33  ;;  %v4132_v33 = vadd.f32 %v5291_v38, %v5288_v37 }
  0xb0   : > { %v5284_v36 = vsel %vm2339_vm7, %v5236_v22, 0.0  ;;  %7987 = vst [vmem:[#allocation50_spill] sm:$0xff] %v5518_v25  ;;  %v5539_v25 = vld [vmem:[%s5251_s10 + $0x358] sm:$0xff] }
  0xb1   : > { %7992 = vst [vmem:[#allocation55_spill] sm:$0xff] %v5533_v13  ;;  %v5554_v13 = vld [vmem:[%s5251_s10 + $0x378] sm:$0xff]  ;;  %v3877_v30 = vsel %vm2083_vm11, %v5242_v23, %v5284_v36  ;;  %v3878_v36 = vsel %vm2084_vm13, %v5242_v23, %v5298_v40 }
  0xb2   : > { %7993 = vst [vmem:[#allocation56_spill] sm:$0xff] %v5536_v18  ;;  %v5557_v18 = vld [vmem:[%s5251_s10 + $0x398] sm:$0xff] }
  0xb3   : > { %7994 = vst [vmem:[#allocation57_spill] sm:$0xff] %v5539_v25  ;;  %v5560_v25 = vld [vmem:[%s5251_s10 + $0x390] sm:$0xff]  ;;  %v6089_v40 = vld [vmem:[%s5251_s10 + $0x7f8] sm:$0xff] }
  0xb4   : > { %4835 = vset.pattern.permute.xlu1 %v5138_v2  ;;  %4836 = vset.pattern.permute.xlu2 %v5161_v7  ;;  %7999 = vst [vmem:[#allocation62_spill] sm:$0xff] %v5554_v13  ;;  %v5575_v13 = vld [vmem:[%s5251_s10 + $0x3d0] sm:$0xff] }
  0xb5   : > { %8000 = vst [vmem:[#allocation63_spill] sm:$0xff] %v5557_v18  ;;  %v5578_v18 = vld [vmem:[%s5251_s10 + $0x3c8] sm:$0xff] }
  0xb6   : > { %v5259_v28 = vpop.permute.xlu2 %329  ;;  %8001 = vst [vmem:[#allocation64_spill] sm:$0xff] %v5560_v25  ;;  %v5581_v25 = vld [vmem:[%s5251_s10 + $0x3e8] sm:$0xff] }
  0xb7   : > { %vm2345_vm14 = vcmp.eq.s32.totalorder %v5259_v28, 2  ;;  %8006 = vst [vmem:[#allocation69_spill] sm:$0xff] %v5575_v13  ;;  %v5596_v13 = vld [vmem:[%s5251_s10 + $0x408] sm:$0xff]  ;;  %vm2089_vm2 = vcmp.eq.s32.totalorder %v5259_v28, 1 }
  0xb8   : > { %8007 = vst [vmem:[#allocation70_spill] sm:$0xff] %v5578_v18  ;;  %v5599_v18 = vld [vmem:[%s5251_s10 + $0x420] sm:$0xff] }
  0xb9   : > { %8008 = vst [vmem:[#allocation71_spill] sm:$0xff] %v5581_v25  ;;  %v5602_v25 = vld [vmem:[%s5251_s10 + $0x418] sm:$0xff] }
  0xba   : > { %8013 = vst [vmem:[#allocation76_spill] sm:$0xff] %v5596_v13  ;;  %v5617_v13 = vld [vmem:[%s5251_s10 + $0x460] sm:$0xff] }
  0xbb   : > { %8014 = vst [vmem:[#allocation77_spill] sm:$0xff] %v5599_v18  ;;  %v5620_v18 = vld [vmem:[%s5251_s10 + $0x458] sm:$0xff] }
  0xbc   : > { %415 = vperm.xlu1 %4835, %v5217_v17   ;;  %421 = vperm.xlu2 %4836, %v5217_v17   ;;  %8015 = vst [vmem:[#allocation78_spill] sm:$0xff] %v5602_v25  ;;  %v5623_v25 = vld [vmem:[%s5251_s10 + $0x470] sm:$0xff] }
  0xbd   : > { %8020 = vst [vmem:[#allocation83_spill] sm:$0xff] %v5617_v13  ;;  %v5638_v13 = vld [vmem:[%s5251_s10 + $0x490] sm:$0xff] }
  0xbe   : > { %v5257_v27 = vpop.permute.xlu1 %311  ;;  %8021 = vst [vmem:[#allocation84_spill] sm:$0xff] %v5620_v18  ;;  %v5641_v18 = vld [vmem:[%s5251_s10 + $0x4b0] sm:$0xff] }
  0xbf   : > { %vm2342_vm10 = vcmp.eq.s32.totalorder %v5257_v27, 2  ;;  %8022 = vst [vmem:[#allocation85_spill] sm:$0xff] %v5623_v25  ;;  %v5644_v25 = vld [vmem:[%s5251_s10 + $0x4a8] sm:$0xff]  ;;  %vm2086_vm15 = vcmp.eq.s32.totalorder %v5257_v27, 1  ;;  %v4134_v27 = vadd.f32 %v3878_v36, %v5294_v39 }
  0xc0   : > { %8027 = vst [vmem:[#allocation90_spill] sm:$0xff] %v5638_v13  ;;  %v5659_v13 = vld [vmem:[%s5251_s10 + $0x4e8] sm:$0xff] }
  0xc1   : > { %8028 = vst [vmem:[#allocation91_spill] sm:$0xff] %v5641_v18  ;;  %v5662_v18 = vld [vmem:[%s5251_s10 + $0x4e0] sm:$0xff] }
  0xc2   : > { %8029 = vst [vmem:[#allocation92_spill] sm:$0xff] %v5644_v25  ;;  %v5665_v25 = vld [vmem:[%s5251_s10 + $0x500] sm:$0xff] }
  0xc3   : > { %8034 = vst [vmem:[#allocation97_spill] sm:$0xff] %v5659_v13  ;;  %v5680_v13 = vld [vmem:[%s5251_s10 + $0x520] sm:$0xff] }
  0xc4   : > { %8035 = vst [vmem:[#allocation98_spill] sm:$0xff] %v5662_v18  ;;  %v5683_v18 = vld [vmem:[%s5251_s10 + $0x538] sm:$0xff]  ;;  %4837 = vset.pattern.permute.xlu1 %v5164_v8  ;;  %4838 = vset.pattern.permute.xlu2 %v5171_v9 }
  0xc5   : > { %8036 = vst [vmem:[#allocation99_spill] sm:$0xff] %v5665_v25  ;;  %v5686_v25 = vld [vmem:[%s5251_s10 + $0x530] sm:$0xff] }
  0xc6   : > { %8041 = vst [vmem:[#allocation104_spill] sm:$0xff] %v5680_v13  ;;  %v5701_v13 = vld [vmem:[%s5251_s10 + $0x578] sm:$0xff]  ;;  %v348_v34 = vpop.permute.xlu2 %347 }
  0xc7   : > { %8042 = vst [vmem:[#allocation105_spill] sm:$0xff] %v5683_v18  ;;  %v5704_v18 = vld [vmem:[%s5251_s10 + $0x570] sm:$0xff]  ;;  %vm2092_vm3 = vcmp.eq.s32.totalorder %v348_v34, 1  ;;  %vm2348_vm4 = vcmp.eq.s32.totalorder %v348_v34, 2 }
  0xc8   : > { %8043 = vst [vmem:[#allocation106_spill] sm:$0xff] %v5686_v25  ;;  %v5707_v25 = vld [vmem:[%s5251_s10 + $0x90] sm:$0xff]  ;;  %v3117_v38 = vsel %vm2348_vm4, %v5236_v22, 0.0 }
  0xc9   : > { %8048 = vst [vmem:[#allocation111_spill] sm:$0xff] %v5701_v13  ;;  %v5722_v13 = vld [vmem:[%s5251_s10 + $0x450] sm:$0xff] }
  0xca   : > { %8049 = vst [vmem:[#allocation112_spill] sm:$0xff] %v5704_v18  ;;  %v5725_v18 = vld [vmem:[%s5251_s10 + $0x5a0] sm:$0xff] }
  0xcb   : > { %8050 = vst [vmem:[#allocation113_spill] sm:$0xff] %v5707_v25  ;;  %v5728_v25 = vld [vmem:[%s5251_s10 + $0x598] sm:$0xff] }
  0xcc   : > { %8051 = vst [vmem:[#allocation114_spill] sm:$0xff] %v5710_v26  ;;  %v5731_v26 = vld [vmem:[%s5251_s10 + $0x590] sm:$0xff]  ;;  %433 = vperm.xlu1 %4837, %v5217_v17   ;;  %439 = vperm.xlu2 %4838, %v5217_v17  }
  0xcd   : > { %8052 = vst [vmem:[#allocation115_spill] sm:$0xff] %v5713_v29  ;;  %v5734_v29 = vld [vmem:[%s5251_s10 + $0x6d0] sm:$0xff] }
  0xce   : > { %8053 = vst [vmem:[#allocation116_spill] sm:$0xff] %v5716_v12  ;;  %v5737_v12 = vld [vmem:[%s5251_s10 + $0x5b0] sm:$0xff]  ;;  %v324_v39 = vpop.permute.xlu1 %323 }
  0xcf   : > { %8055 = vst [vmem:[#allocation118_spill] sm:$0xff] %v5722_v13  ;;  %v5743_v13 = vld [vmem:[%s5251_s10 + $0xb8] sm:$0xff]  ;;  %vm2088_vm5 = vcmp.eq.s32.totalorder %v324_v39, 1  ;;  %vm2344_vm6 = vcmp.eq.s32.totalorder %v324_v39, 2 }
  0xd0   : > { %8056 = vst [vmem:[#allocation119_spill] sm:$0xff] %v5725_v18  ;;  %v5746_v18 = vld [vmem:[%s5251_s10 + $0x5c8] sm:$0xff] }
  0xd1   : > { %8057 = vst [vmem:[#allocation120_spill] sm:$0xff] %v5728_v25  ;;  %v5749_v25 = vld [vmem:[%s5251_s10 + $0x5c0] sm:$0xff] }
  0xd2   : > { %8058 = vst [vmem:[#allocation121_spill] sm:$0xff] %v5731_v26  ;;  %v5752_v26 = vld [vmem:[%s5251_s10 + $0x1f8] sm:$0xff] }
  0xd3   : > { %8059 = vst [vmem:[#allocation122_spill] sm:$0xff] %v5734_v29  ;;  %v5755_v29 = vld [vmem:[%s5251_s10 + $0x338] sm:$0xff] }
  0xd4   : > { %8060 = vst [vmem:[#allocation123_spill] sm:$0xff] %v5737_v12  ;;  %v5758_v12 = vld [vmem:[%s5251_s10 + $0x5d8] sm:$0xff]  ;;  %4839 = vset.pattern.permute.xlu1 %v5174_v10  ;;  %4840 = vset.pattern.permute.xlu2 %v5132_v1 }
  0xd5   : > { %8062 = vst [vmem:[#allocation125_spill] sm:$0xff] %v5743_v13  ;;  %v5764_v13 = vld [vmem:[%s5251_s10 + $0x478] sm:$0xff] }
  0xd6   : > { %8063 = vst [vmem:[#allocation126_spill] sm:$0xff] %v5746_v18  ;;  %v5767_v18 = vld [vmem:[%s5251_s10 + $0x5b8] sm:$0xff] }
  0xd7   : > { %8064 = vst [vmem:[#allocation127_spill] sm:$0xff] %v5749_v25  ;;  %v5770_v25 = vld [vmem:[%s5251_s10 + $0x5f0] sm:$0xff] }
  0xd8   : > { %8065 = vst [vmem:[#allocation128_spill] sm:$0xff] %v5752_v26  ;;  %v5773_v26 = vld [vmem:[%s5251_s10 + $0x5e8] sm:$0xff] }
  0xd9   : > { %8066 = vst [vmem:[#allocation129_spill] sm:$0xff] %v5755_v29  ;;  %v5776_v29 = vld [vmem:[%s5251_s10 + $0x6f8] sm:$0xff] }
  0xda   : > { %8067 = vst [vmem:[#allocation130_spill] sm:$0xff] %v5758_v12  ;;  %v5779_v12 = vld [vmem:[%s5251_s10 + $0x600] sm:$0xff] }
  0xdb   : > { %8069 = vst [vmem:[#allocation132_spill] sm:$0xff] %v5764_v13  ;;  %v5785_v13 = vld [vmem:[%s5251_s10 + $0xe0] sm:$0xff] }
  0xdc   : > { %8070 = vst [vmem:[#allocation133_spill] sm:$0xff] %v5767_v18  ;;  %v5788_v18 = vld [vmem:[%s5251_s10 + $0x220] sm:$0xff]  ;;  %445 = vperm.xlu1 %4839, %v5217_v17  }
  0xdd   : > { %8071 = vst [vmem:[#allocation134_spill] sm:$0xff] %v5770_v25  ;;  %v5791_v25 = vld [vmem:[%s5251_s10 + $0x618] sm:$0xff] }
  0xde   : > { %8072 = vst [vmem:[#allocation135_spill] sm:$0xff] %v5773_v26  ;;  %v5794_v26 = vld [vmem:[%s5251_s10 + $0x610] sm:$0xff] }
  0xdf   : > { %8073 = vst [vmem:[#allocation136_spill] sm:$0xff] %v5776_v29  ;;  %v5797_v29 = vld [vmem:[%s5251_s10 + $0x360] sm:$0xff] }
  0xe0   : > { %8074 = vst [vmem:[#allocation137_spill] sm:$0xff] %v5779_v12  ;;  %v5800_v12 = vld [vmem:[%s5251_s10 + $0x4a0] sm:$0xff] }
  0xe1   : > { %8076 = vst [vmem:[#allocation139_spill] sm:$0xff] %v5785_v13  ;;  %v5806_v13 = vld [vmem:[%s5251_s10 + $0x620] sm:$0xff] }
  0xe2   : > { %8077 = vst [vmem:[#allocation140_spill] sm:$0xff] %v5788_v18  ;;  %v5809_v18 = vld [vmem:[%s5251_s10 + $0x5e0] sm:$0xff] }
  0xe3   : > { %8078 = vst [vmem:[#allocation141_spill] sm:$0xff] %v5791_v25  ;;  %v5812_v25 = vld [vmem:[%s5251_s10 + $0x720] sm:$0xff] }
  0xe4   : > { %8079 = vst [vmem:[#allocation142_spill] sm:$0xff] %v5794_v26  ;;  %v5815_v26 = vld [vmem:[%s5251_s10 + $0x640] sm:$0xff]  ;;  %4841 = vset.pattern.permute.xlu1 %v5138_v2 }
  0xe5   : > { %8080 = vst [vmem:[#allocation143_spill] sm:$0xff] %v5797_v29  ;;  %v5818_v29 = vld [vmem:[%s5251_s10 + $0x638] sm:$0xff] }
  0xe6   : > { %8081 = vst [vmem:[#allocation144_spill] sm:$0xff] %v5800_v12  ;;  %v5821_v12 = vld [vmem:[%s5251_s10 + $0x8] sm:$0xff] }
  0xe7   : > { %8083 = vst [vmem:[#allocation146_spill] sm:$0xff] %v5806_v13  ;;  %v5827_v13 = vld [vmem:[%s5251_s10 + $0x650] sm:$0xff] }
  0xe8   : > { %8084 = vst [vmem:[#allocation147_spill] sm:$0xff] %v5809_v18  ;;  %v5830_v18 = vld [vmem:[%s5251_s10 + $0x648] sm:$0xff] }
  0xe9   : > { %8085 = vst [vmem:[#allocation148_spill] sm:$0xff] %v5812_v25  ;;  %v5833_v25 = vld [vmem:[%s5251_s10 + $0x248] sm:$0xff] }
  0xea   : > { %8086 = vst [vmem:[#allocation149_spill] sm:$0xff] %v5815_v26  ;;  %v5836_v26 = vld [vmem:[%s5251_s10 + $0x388] sm:$0xff] }
  0xeb   : > { %8087 = vst [vmem:[#allocation150_spill] sm:$0xff] %v5818_v29  ;;  %v5839_v29 = vld [vmem:[%s5251_s10 + $0x668] sm:$0xff] }
  0xec   : > { %8088 = vst [vmem:[#allocation151_spill] sm:$0xff] %v5821_v12  ;;  %v5842_v12 = vld [vmem:[%s5251_s10 + $0x660] sm:$0xff] }
  0xed   : > { %8090 = vst [vmem:[#allocation153_spill] sm:$0xff] %v5827_v13  ;;  %v5848_v13 = vld [vmem:[%s5251_s10 + $0x608] sm:$0xff] }
  0xee   : > { %8091 = vst [vmem:[#allocation154_spill] sm:$0xff] %v5830_v18  ;;  %v5851_v18 = vld [vmem:[%s5251_s10 + $0x678] sm:$0xff] }
  0xef   : > { %8092 = vst [vmem:[#allocation155_spill] sm:$0xff] %v5833_v25  ;;  %v5854_v25 = vld [vmem:[%s5251_s10 + $0x670] sm:$0xff] }
  0xf0   : > { %8093 = vst [vmem:[#allocation156_spill] sm:$0xff] %v5836_v26  ;;  %v5857_v26 = vld [vmem:[%s5251_s10 + $0x748] sm:$0xff] }
  0xf1   : > { %8094 = vst [vmem:[#allocation157_spill] sm:$0xff] %v5839_v29  ;;  %v5860_v29 = vld [vmem:[%s5251_s10 + $0x690] sm:$0xff] }
  0xf2   : > { %8095 = vst [vmem:[#allocation158_spill] sm:$0xff] %v5842_v12  ;;  %v5863_v12 = vld [vmem:[%s5251_s10 + $0x688] sm:$0xff] }
  0xf3   : > { %8097 = vst [vmem:[#allocation160_spill] sm:$0xff] %v5848_v13  ;;  %v5869_v13 = vld [vmem:[%s5251_s10 + $0x6a0] sm:$0xff] }
  0xf4   : > { %8098 = vst [vmem:[#allocation161_spill] sm:$0xff] %v5851_v18  ;;  %v5872_v18 = vld [vmem:[%s5251_s10 + $0x698] sm:$0xff] }
  0xf5   : > { %8099 = vst [vmem:[#allocation162_spill] sm:$0xff] %v5854_v25  ;;  %v5875_v25 = vld [vmem:[%s5251_s10 + $0x270] sm:$0xff] }
  0xf6   : > { %8100 = vst [vmem:[#allocation163_spill] sm:$0xff] %v5857_v26  ;;  %v5878_v26 = vld [vmem:[%s5251_s10 + $0x3b0] sm:$0xff] }
  0xf7   : > { %8101 = vst [vmem:[#allocation164_spill] sm:$0xff] %v5860_v29  ;;  %v5881_v29 = vld [vmem:[%s5251_s10 + $0x6b8] sm:$0xff] }
  0xf8   : > { %8102 = vst [vmem:[#allocation165_spill] sm:$0xff] %v5863_v12  ;;  %v5884_v12 = vld [vmem:[%s5251_s10 + $0x6b0] sm:$0xff] }
  0xf9   : > { %8104 = vst [vmem:[#allocation167_spill] sm:$0xff] %v5869_v13  ;;  %v5890_v13 = vld [vmem:[%s5251_s10 + $0x630] sm:$0xff] }
  0xfa   : > { %8105 = vst [vmem:[#allocation168_spill] sm:$0xff] %v5872_v18  ;;  %v5893_v18 = vld [vmem:[%s5251_s10 + $0x6c8] sm:$0xff] }
  0xfb   : > { %8106 = vst [vmem:[#allocation169_spill] sm:$0xff] %v5875_v25  ;;  %v5896_v25 = vld [vmem:[%s5251_s10 + $0x6c0] sm:$0xff] }
  0xfc   : > { %8107 = vst [vmem:[#allocation170_spill] sm:$0xff] %v5878_v26  ;;  %v5899_v26 = vld [vmem:[%s5251_s10 + $0x770] sm:$0xff] }
  0xfd   : > { %8108 = vst [vmem:[#allocation171_spill] sm:$0xff] %v5881_v29  ;;  %v5902_v29 = vld [vmem:[%s5251_s10 + $0x158] sm:$0xff] }
  0xfe   : > { %8109 = vst [vmem:[#allocation172_spill] sm:$0xff] %v5884_v12  ;;  %v5905_v12 = vld [vmem:[%s5251_s10 + $0x6e0] sm:$0xff] }
  0xff   : > { %8111 = vst [vmem:[#allocation174_spill] sm:$0xff] %v5890_v13  ;;  %v5911_v13 = vld [vmem:[%s5251_s10 + $0x298] sm:$0xff] }
 0x100   : > { %8112 = vst [vmem:[#allocation175_spill] sm:$0xff] %v5893_v18  ;;  %v5914_v18 = vld [vmem:[%s5251_s10 + $0x3d8] sm:$0xff] }
 0x101   : > { %8113 = vst [vmem:[#allocation176_spill] sm:$0xff] %v5896_v25  ;;  %v5917_v25 = vld [vmem:[%s5251_s10 + $0x6f0] sm:$0xff] }
 0x102   : > { %8114 = vst [vmem:[#allocation177_spill] sm:$0xff] %v5899_v26  ;;  %v5920_v26 = vld [vmem:[%s5251_s10 + $0x6e8] sm:$0xff] }
 0x103   : > { %8115 = vst [vmem:[#allocation178_spill] sm:$0xff] %v5902_v29  ;;  %v5923_v29 = vld [vmem:[%s5251_s10 + $0x518] sm:$0xff] }
 0x104   : > { %8116 = vst [vmem:[#allocation179_spill] sm:$0xff] %v5905_v12  ;;  %v5926_v12 = vld [vmem:[%s5251_s10 + $0x658] sm:$0xff] }
 0x105   : > { %8118 = vst [vmem:[#allocation181_spill] sm:$0xff] %v5911_v13  ;;  %v5932_v13 = vld [vmem:[%s5251_s10 + $0x700] sm:$0xff] }
 0x106   : > { %8119 = vst [vmem:[#allocation182_spill] sm:$0xff] %v5914_v18  ;;  %v5935_v18 = vld [vmem:[%s5251_s10 + $0x798] sm:$0xff] }
 0x107   : > { %8120 = vst [vmem:[#allocation183_spill] sm:$0xff] %v5917_v25  ;;  %v5938_v25 = vld [vmem:[%s5251_s10] sm:$0xff] }
 0x108   : > { %8121 = vst [vmem:[#allocation184_spill] sm:$0xff] %v5920_v26  ;;  %v5941_v26 = vld [vmem:[%s5251_s10 + $0x718] sm:$0xff] }
 0x109   : > { %8122 = vst [vmem:[#allocation185_spill] sm:$0xff] %v5923_v29  ;;  %v5944_v29 = vld [vmem:[%s5251_s10 + $0x710] sm:$0xff] }
 0x10a   : > { %8123 = vst [vmem:[#allocation186_spill] sm:$0xff] %v5926_v12  ;;  %v5947_v12 = vld [vmem:[%s5251_s10 + $0x40] sm:$0xff] }
 0x10b   : > { %8125 = vst [vmem:[#allocation188_spill] sm:$0xff] %v5932_v13  ;;  %v5953_v13 = vld [vmem:[%s5251_s10 + $0x730] sm:$0xff] }
 0x10c   : > { %8126 = vst [vmem:[#allocation189_spill] sm:$0xff] %v5935_v18  ;;  %v5956_v18 = vld [vmem:[%s5251_s10 + $0x728] sm:$0xff] }
 0x10d   : > { %8127 = vst [vmem:[#allocation190_spill] sm:$0xff] %v5938_v25  ;;  %v5959_v25 = vld [vmem:[%s5251_s10 + $0x2c0] sm:$0xff] }
 0x10e   : > { %8128 = vst [vmem:[#allocation191_spill] sm:$0xff] %v5941_v26  ;;  %v5962_v26 = vld [vmem:[%s5251_s10 + $0x400] sm:$0xff] }
 0x10f   : > { %8129 = vst [vmem:[#allocation192_spill] sm:$0xff] %v5944_v29  ;;  %v5965_v29 = vld [vmem:[%s5251_s10 + $0x740] sm:$0xff] }
 0x110   : > { %8130 = vst [vmem:[#allocation193_spill] sm:$0xff] %v5947_v12  ;;  %v5968_v12 = vld [vmem:[%s5251_s10 + $0x738] sm:$0xff] }
 0x111   : > { %8132 = vst [vmem:[#allocation195_spill] sm:$0xff] %v5953_v13  ;;  %v5974_v13 = vld [vmem:[%s5251_s10 + $0x680] sm:$0xff] }
 0x112   : > { %8133 = vst [vmem:[#allocation196_spill] sm:$0xff] %v5956_v18  ;;  %v5980_v18 = vld [vmem:[%s5251_s10 + $0x750] sm:$0xff] }
 0x113   : > { %8134 = vst [vmem:[#allocation197_spill] sm:$0xff] %v5959_v25  ;;  %v5983_v25 = vld [vmem:[%s5251_s10 + $0x7c0] sm:$0xff] }
 0x114   : > { %8135 = vst [vmem:[#allocation198_spill] sm:$0xff] %v5962_v26  ;;  %v5989_v26 = vld [vmem:[%s5251_s10 + $0x760] sm:$0xff] }
 0x115   : > { %8136 = vst [vmem:[#allocation199_spill] sm:$0xff] %v5965_v29  ;;  %v5992_v29 = vld [vmem:[%s5251_s10 + $0x68] sm:$0xff] }
 0x116   : > { %8137 = vst [vmem:[#allocation200_spill] sm:$0xff] %v5968_v12  ;;  %v5995_v12 = vld [vmem:[%s5251_s10 + $0x780] sm:$0xff] }
 0x117   : > { %8139 = vst [vmem:[#allocation202_spill] sm:$0xff] %v5974_v13  ;;  %v6001_v13 = vld [vmem:[%s5251_s10 + $0x1a8] sm:$0xff] }
 0x118   : > { %8140 = vst [vmem:[#allocation203_spill] sm:$0xff] %v5977_v24  ;;  %v6004_v24 = vld [vmem:[%s5251_s10 + $0x2e8] sm:$0xff] }
 0x119   : > { %8141 = vst [vmem:[#allocation204_spill] sm:$0xff] %v5980_v18  ;;  %v6007_v18 = vld [vmem:[%s5251_s10 + $0x790] sm:$0xff] }
 0x11a   : > { %8142 = vst [vmem:[#allocation205_spill] sm:$0xff] %v5983_v25  ;;  %v6010_v25 = vld [vmem:[%s5251_s10 + $0x788] sm:$0xff] }
 0x11b   : > { %8143 = vst [vmem:[#allocation206_spill] sm:$0xff] %v5986_v15  ;;  %v6013_v15 = vld [vmem:[%s5251_s10 + $0x428] sm:$0xff] }
 0x11c   : > { %8144 = vst [vmem:[#allocation207_spill] sm:$0xff] %v5989_v26  ;;  %v6016_v26 = vld [vmem:[%s5251_s10 + $0x568] sm:$0xff] }
 0x11d   : > { %8145 = vst [vmem:[#allocation208_spill] sm:$0xff] %v5992_v29  ;;  %v6019_v29 = vld [vmem:[%s5251_s10 + $0x7a8] sm:$0xff] }
 0x11e   : > { %8146 = vst [vmem:[#allocation209_spill] sm:$0xff] %v5995_v12  ;;  %v4130_v12 = vadd.f32 %v5270_v32, %v5280_v35  ;;  %v6056_v32 = vld [vmem:[%s5251_s10 + $0x7b8] sm:$0xff]  ;;  %v6059_v35 = vld [vmem:[%s5251_s10 + $0x7b0] sm:$0xff] }
 0x11f   : > { %8148 = vst [vmem:[#allocation211_spill] sm:$0xff] %v6007_v18  ;;  %v6030_v18 = vld [vmem:[%s5251_s10 + $0x7a0] sm:$0xff] }
 0x120   : > { %8149 = vst [vmem:[#allocation212_spill] sm:$0xff] %v6010_v25  ;;  %v3111_v25 = vsel %vm2342_vm10, %v5236_v22, 0.0 }
 0x121   : > { %8150 = vst [vmem:[#allocation213_spill] sm:$0xff] %v6013_v15  ;;  %v6033_v15 = vld [vmem:[%s5251_s10 + $0x6a8] sm:$0xff]  ;;  %v3880_v19 = vsel %vm2086_vm15, %v5242_v23, %v3111_v25 }
 0x122   : > { %8151 = vst [vmem:[#allocation214_spill] sm:$0xff] %v6016_v26  ;;  %v6036_v26 = vld [vmem:[%s5251_s10 + $0x7e8] sm:$0xff]  ;;  %v4136_v21 = vadd.f32 %v3880_v19, %v5307_v43 }
 0x123   : > { %8152 = vst [vmem:[#allocation215_spill] sm:$0xff] %v6019_v29  ;;  %v6092_v29 = vld [vmem:[%s5251_s10 + $0x7f0] sm:$0xff] }
 0x124   : > { %8153 = vst [vmem:[#allocation216_spill] sm:$0xff] %v6030_v18  ;;  %v6062_v18 = vld [vmem:[%s5251_s10 + $0x7d0] sm:$0xff] }
 0x125   : > { %8154 = vst [vmem:[#allocation217_spill] sm:$0xff] %v6036_v26  ;;  %v6075_v26 = vld [vmem:[%s5251_s10 + $0x7c8] sm:$0xff] }
 0x126   : > { %8155 = vst [vmem:[#allocation218_spill] sm:$0xff] %v6056_v32  ;;  %v3114_v32 = vsel %vm2345_vm14, %v5236_v22, 0.0 }
 0x127   : > { %8156 = vst [vmem:[#allocation219_spill] sm:$0xff] %v6059_v35  ;;  %v6078_v35 = vld [vmem:[%s5251_s10 + $0x7e0] sm:$0xff]  ;;  %v3883_v37 = vsel %vm2089_vm2, %v5242_v23, %v3114_v32 }
 0x128   : > { %8157 = vst [vmem:[#allocation220_spill] sm:$0xff] %v6062_v18  ;;  %v6081_v18 = vld [vmem:[%s5251_s10 + $0x7d8] sm:$0xff]  ;;  %v4139_v28 = vadd.f32 %v3883_v37, %v5310_v44 }
 0x129   : > { %8158 = vst [vmem:[#allocation221_spill] sm:$0xff] %v6075_v26  ;;  %v4133_v26 = vadd.f32 %v3877_v30, %v5301_v41  ;;  %v3886_v41 = vsel %vm2092_vm3, %v5242_v23, %v3117_v38 }
 0x12a   : > { %8159 = vst [vmem:[#allocation222_spill] sm:$0xff] %v6081_v18  ;;  %v3881_v18 = vsel %vm2087_vm0, %v5242_v23, %v3112_v31 }
 0x12b   : > { %4386 = vst.msk [vmem:[%s6043_s13 + $0x10] sm:$0xff] %vm4383_vm1, %v4129_v6  ;;  %v4137_v6 = vadd.f32 %v3881_v18, %v5304_v42  ;;  %v3113_v42 = vsel %vm2344_vm6, %v5236_v22, 0.0 }
 0x12c   : > { %4387 = vst.msk [vmem:[%s6043_s13 + $0x18] sm:$0xff] %vm4383_vm1, %v4130_v12  ;;  %v4142_v12 = vadd.f32 %v3886_v41, %v5317_v46  ;;  %v3882_v43 = vsel %vm2088_vm5, %v5242_v23, %v3113_v42  ;;  %v361_v46 = vpop.permute.xlu2 %360 }
 0x12d   : > { %4388 = vst.msk [vmem:[%s6043_s13 + $0x20] sm:$0xff] %vm4383_vm1, %v4131_v20  ;;  %v4138_v44 = vadd.f32 %v3882_v43, %v5314_v45  ;;  %vm2094_vm7 = vcmp.eq.s32.totalorder %v361_v46, 1  ;;  %vm2350_vm8 = vcmp.eq.s32.totalorder %v361_v46, 2  ;;  %v342_v45 = vpop.permute.xlu1 %341  ;;  %v6185_v43 = vperm.slane %v5153_v5, 5 }
 0x12e   : > { %4389 = vst.msk [vmem:[%s6043_s13 + $0x28] sm:$0xff] %vm4383_vm1, %v4132_v33  ;;  %v3119_v18 = vsel %vm2350_vm8, %v5236_v22, 0.0  ;;  %vm2091_vm9 = vcmp.eq.s32.totalorder %v342_v45, 1  ;;  %vm2347_vm10 = vcmp.eq.s32.totalorder %v342_v45, 2 }
 0x12f   : > { %4390 = vst.msk [vmem:[%s6043_s13 + $0x30] sm:$0xff] %vm4383_vm1, %v4133_v26  ;;  %v3888_v25 = vsel %vm2094_vm7, %v5242_v23, %v3119_v18  ;;  %v6140_v26 = vperm.slane %v5153_v5, 4  ;;  %v3116_v31 = vsel %vm2347_vm10, %v5236_v22, 0.0 }
 0x130   : > { %4391 = vst.msk [vmem:[%s6043_s13 + $0x38] sm:$0xff] %vm4383_vm1, %v4134_v27  ;;  %v4144_v30 = vadd.f32 %v3888_v25, %v5323_v48  ;;  %v3885_v32 = vsel %vm2091_vm9, %v5242_v23, %v3116_v31 }
 0x131   : > { %4393 = vst.msk [vmem:[%s6043_s13 + $0x48] sm:$0xff] %vm4383_vm1, %v4136_v21  ;;  %452 = vperm.xlu2 %4840, %v6140_v26   ;;  %v4141_v20 = vadd.f32 %v3885_v32, %v5320_v47  ;;  %464 = vperm.xlu1 %4841, %v6140_v26  }
 0x132   : > { %4394 = vst.msk [vmem:[%s6043_s13 + $0x50] sm:$0xff] %vm4383_vm1, %v4137_v6 }
 0x133   : > { %4396 = vst.msk [vmem:[%s6043_s13 + $0x60] sm:$0xff] %vm4383_vm1, %v4139_v28 }
 0x134   : > { %4399 = vst.msk [vmem:[%s6043_s13 + $0x78] sm:$0xff] %vm4383_vm1, %v4142_v12  ;;  %v379_v48 = vpop.permute.xlu2 %378 }
 0x135   : > { %4395 = vst.msk [vmem:[%s6043_s13 + $0x58] sm:$0xff] %vm4383_vm1, %v4138_v44  ;;  %vm2097_vm11 = vcmp.eq.s32.totalorder %v379_v48, 1  ;;  %vm2353_vm12 = vcmp.eq.s32.totalorder %v379_v48, 2  ;;  %v355_v47 = vpop.permute.xlu1 %354 }
 0x136   : > { %4401 = vst.msk [vmem:[%s6043_s13 + $0x88] sm:$0xff] %vm4383_vm1, %v4144_v30  ;;  %v3122_v36 = vsel %vm2353_vm12, %v5236_v22, 0.0  ;;  %vm2093_vm13 = vcmp.eq.s32.totalorder %v355_v47, 1  ;;  %vm2349_vm14 = vcmp.eq.s32.totalorder %v355_v47, 2 }
 0x137   : > { %4398 = vst.msk [vmem:[%s6043_s13 + $0x70] sm:$0xff] %vm4383_vm1, %v4141_v20  ;;  %v3891_v33 = vsel %vm2097_vm11, %v5242_v23, %v3122_v36  ;;  %v3118_v34 = vsel %vm2349_vm14, %v5236_v22, 0.0 }
 0x138   : > { %v4147_v19 = vadd.f32 %v3891_v33, %v5329_v50  ;;  %v3887_v27 = vsel %vm2093_vm13, %v5242_v23, %v3118_v34 }
 0x139   : > { %4842 = vset.pattern.permute.xlu2 %v5161_v7  ;;  %v4143_v37 = vadd.f32 %v3887_v27, %v5326_v49  ;;  %4843 = vset.pattern.permute.xlu1 %v5142_v3 }
 0x13a   : > { %4404 = vst.msk [vmem:[%s6043_s13 + $0xa0] sm:$0xff] %vm4383_vm1, %v4147_v19 }
 0x13b   : > { %4400 = vst.msk [vmem:[%s6043_s13 + $0x80] sm:$0xff] %vm4383_vm1, %v4143_v37 }
 0x13c   : > { %v391_v50 = vpop.permute.xlu2 %390 }
 0x13d   : > { %vm2099_vm15 = vcmp.eq.s32.totalorder %v391_v50, 1  ;;  %vm2355_vm0 = vcmp.eq.s32.totalorder %v391_v50, 2  ;;  %v373_v49 = vpop.permute.xlu1 %372 }
 0x13e   : > { %v3124_v38 = vsel %vm2355_vm0, %v5236_v22, 0.0  ;;  %vm2096_vm2 = vcmp.eq.s32.totalorder %v373_v49, 1  ;;  %vm2352_vm3 = vcmp.eq.s32.totalorder %v373_v49, 2 }
 0x13f   : > { %v3893_v21 = vsel %vm2099_vm15, %v5242_v23, %v3124_v38  ;;  %v3121_v6 = vsel %vm2352_vm3, %v5236_v22, 0.0 }
 0x140   : > { %v4149_v41 = vadd.f32 %v3893_v21, %v5335_v52  ;;  %v3890_v28 = vsel %vm2096_vm2, %v5242_v23, %v3121_v6  ;;  %v6242_v6 = vperm.slane %v5153_v5, 6 }
 0x141   : > { %470 = vperm.xlu2 %4842, %v6140_v26   ;;  %476 = vperm.xlu1 %4843, %v6140_v26   ;;  %v4146_v12 = vadd.f32 %v3890_v28, %v5332_v51 }
 0x142   : > { %4406 = vst.msk [vmem:[%s6043_s13 + $0xb0] sm:$0xff] %vm4383_vm1, %v4149_v41 }
 0x143   : > { %4403 = vst.msk [vmem:[%s6043_s13 + $0x98] sm:$0xff] %vm4383_vm1, %v4146_v12 }
 0x144   : > { %v410_v52 = vpop.permute.xlu2 %409 }
 0x145   : > { %vm2102_vm4 = vcmp.eq.s32.totalorder %v410_v52, 1  ;;  %vm2358_vm5 = vcmp.eq.s32.totalorder %v410_v52, 2  ;;  %v385_v51 = vpop.permute.xlu1 %384 }
 0x146   : > { %v3127_v39 = vsel %vm2358_vm5, %v5236_v22, 0.0  ;;  %vm2098_vm6 = vcmp.eq.s32.totalorder %v385_v51, 1  ;;  %vm2354_vm7 = vcmp.eq.s32.totalorder %v385_v51, 2 }
 0x147   : > { %v3896_v42 = vsel %vm2102_vm4, %v5242_v23, %v3127_v39  ;;  %v3123_v46 = vsel %vm2354_vm7, %v5236_v22, 0.0 }
 0x148   : > { %v4152_v44 = vadd.f32 %v3896_v42, %v5341_v54  ;;  %v3892_v18 = vsel %vm2098_vm6, %v5242_v23, %v3123_v46 }
 0x149   : > { %4844 = vset.pattern.permute.xlu2 %v5164_v8  ;;  %4845 = vset.pattern.permute.xlu1 %v5174_v10  ;;  %v4148_v25 = vadd.f32 %v3892_v18, %v5338_v53 }
 0x14a   : > { %4409 = vst.msk [vmem:[%s6043_s13 + $0xc8] sm:$0xff] %vm4383_vm1, %v4152_v44 }
 0x14b   : > { %4405 = vst.msk [vmem:[%s6043_s13 + $0xa8] sm:$0xff] %vm4383_vm1, %v4148_v25 }
 0x14c   : > { %v422_v54 = vpop.permute.xlu2 %421 }
 0x14d   : > { %vm2104_vm8 = vcmp.eq.s32.totalorder %v422_v54, 1  ;;  %vm2360_vm9 = vcmp.eq.s32.totalorder %v422_v54, 2  ;;  %v404_v53 = vpop.permute.xlu1 %403 }
 0x14e   : > { %v3129_v30 = vsel %vm2360_vm9, %v5236_v22, 0.0  ;;  %vm2101_vm10 = vcmp.eq.s32.totalorder %v404_v53, 1  ;;  %vm2357_vm11 = vcmp.eq.s32.totalorder %v404_v53, 2 }
 0x14f   : > { %v3898_v45 = vsel %vm2104_vm8, %v5242_v23, %v3129_v30  ;;  %v3126_v32 = vsel %vm2357_vm11, %v5236_v22, 0.0 }
 0x150   : > { %v4154_v31 = vadd.f32 %v3898_v45, %v5347_v56  ;;  %v3895_v20 = vsel %vm2101_vm10, %v5242_v23, %v3126_v32  ;;  %v6286_v32 = vld [vmem:[%s7932_s2 + $0x1] ss:$0 sm:$0xff] }
 0x151   : > { %482 = vperm.xlu2 %4844, %v6140_v26   ;;  %494 = vperm.xlu1 %4845, %v6140_v26   ;;  %v4151_v48 = vadd.f32 %v3895_v20, %v5344_v55 }
 0x152   : > { %4411 = vst.msk [vmem:[%s6043_s13 + $0xd8] sm:$0xff] %vm4383_vm1, %v4154_v31 }
 0x153   : > { %4408 = vst.msk [vmem:[%s6043_s13 + $0xc0] sm:$0xff] %vm4383_vm1, %v4151_v48 }
 0x154   : > { %v440_v56 = vpop.permute.xlu2 %439 }
 0x155   : > { %vm2107_vm12 = vcmp.eq.s32.totalorder %v440_v56, 1  ;;  %vm2363_vm13 = vcmp.eq.s32.totalorder %v440_v56, 2  ;;  %v416_v55 = vpop.permute.xlu1 %415 }
 0x156   : > { %v3132_v36 = vsel %vm2363_vm13, %v5236_v22, 0.0  ;;  %vm2103_vm14 = vcmp.eq.s32.totalorder %v416_v55, 1  ;;  %vm2359_vm15 = vcmp.eq.s32.totalorder %v416_v55, 2 }
 0x157   : > { %v3901_v33 = vsel %vm2107_vm12, %v5242_v23, %v3132_v36  ;;  %v3128_v47 = vsel %vm2359_vm15, %v5236_v22, 0.0 }
 0x158   : > { %v4157_v19 = vadd.f32 %v3901_v33, %v5353_v58  ;;  %v3897_v34 = vsel %vm2103_vm14, %v5242_v23, %v3128_v47  ;;  %v8160_v47 = vld [vmem:[#allocation5_spill] sm:$0xff] }
 0x159   : > { %4846 = vset.pattern.permute.xlu2 %v5132_v1  ;;  %4847 = vset.pattern.permute.xlu1 %v5181_v11  ;;  %v4153_v27 = vadd.f32 %v3897_v34, %v5350_v57 }
 0x15a   : > { %4414 = vst.msk [vmem:[%s6043_s13 + $0xf0] sm:$0xff] %vm4383_vm1, %v4157_v19 }
 0x15b   : > { %4410 = vst.msk [vmem:[%s6043_s13 + $0xd0] sm:$0xff] %vm4383_vm1, %v4153_v27 }
 0x15d   : > { %v434_v57 = vpop.permute.xlu1 %433 }
 0x15e   : > { %vm2106_vm3 = vcmp.eq.s32.totalorder %v434_v57, 1  ;;  %vm2362_vm4 = vcmp.eq.s32.totalorder %v434_v57, 2 }
 0x15f   : > { %v3131_v21 = vsel %vm2362_vm4, %v5236_v22, 0.0 }
 0x160   : > { %v3900_v41 = vsel %vm2106_vm3, %v5242_v23, %v3131_v21 }
 0x161   : > { %501 = vperm.xlu2 %4846, %v6185_v43   ;;  %507 = vperm.xlu1 %4847, %v6185_v43   ;;  %v4156_v49 = vadd.f32 %v3900_v41, %v5356_v59  ;;  %v8162_v41 = vld [vmem:[#allocation6_spill] sm:$0xff] }
 0x163   : > { %4413 = vst.msk [vmem:[%s6043_s13 + $0xe8] sm:$0xff] %vm4383_vm1, %v4156_v49 }
 0x165   : > { %v446_v59 = vpop.permute.xlu1 %445 }
 0x166   : > { %vm2108_vm7 = vcmp.eq.s32.totalorder %v446_v59, 1  ;;  %vm2364_vm8 = vcmp.eq.s32.totalorder %v446_v59, 2 }
 0x167   : > { %v3133_v39 = vsel %vm2364_vm8, %v5236_v22, 0.0 }
 0x168   : > { %v3902_v42 = vsel %vm2108_vm7, %v5242_v23, %v3133_v39 }
 0x169   : > { %4848 = vset.pattern.permute.xlu2 %v5138_v2  ;;  %4849 = vset.pattern.permute.xlu1 %v5142_v3  ;;  %v4158_v44 = vadd.f32 %v3902_v42, %v5362_v61 }
 0x16b   : > { %4415 = vst.msk [vmem:[%s6043_s13 + $0xf8] sm:$0xff] %vm4383_vm1, %v4158_v44 }
 0x171   : > { %513 = vperm.xlu2 %4848, %v6185_v43   ;;  %525 = vperm.xlu1 %4849, %v6185_v43  }
 0x179   : > { %4850 = vset.pattern.permute.xlu2 %v5164_v8  ;;  %4851 = vset.pattern.permute.xlu1 %v5171_v9 }
 0x181   : > { %531 = vperm.xlu2 %4850, %v6185_v43   ;;  %537 = vperm.xlu1 %4851, %v6185_v43  }
 0x189   : > { %4852 = vset.pattern.permute.xlu2 %v5174_v10  ;;  %4853 = vset.pattern.permute.xlu1 %v5181_v11 }
 0x18b   : > { %v453_v58 = vpop.permute.xlu2 %452 }
 0x18c   : > { %vm2109_vm0 = vcmp.eq.s32.totalorder %v453_v58, 1  ;;  %vm2365_vm2 = vcmp.eq.s32.totalorder %v453_v58, 2 }
 0x18d   : > { %v3134_v37 = vsel %vm2365_vm2, %v5236_v22, 0.0 }
 0x18e   : > { %v3903_v50 = vsel %vm2109_vm0, %v5242_v23, %v3134_v37  ;;  %v8161_v37 = vld [vmem:[#allocation7_spill] sm:$0xff] }
 0x18f   : > { %v4159_v38 = vadd.f32 %v3903_v50, %v5359_v60 }
 0x191   : > { %543 = vperm.xlu2 %4852, %v6185_v43   ;;  %4416 = vst.msk [vmem:[%s6043_s13 + $0x100] sm:$0xff] %vm4383_vm1, %v4159_v38  ;;  %556 = vperm.xlu1 %4853, %v6242_v6  }
 0x199   : > { %4854 = vset.pattern.permute.xlu2 %v5138_v2  ;;  %4855 = vset.pattern.permute.xlu1 %v5161_v7 }
 0x19b   : > { %v471_v60 = vpop.permute.xlu2 %470 }
 0x19c   : > { %vm2112_vm5 = vcmp.eq.s32.totalorder %v471_v60, 1  ;;  %vm2368_vm6 = vcmp.eq.s32.totalorder %v471_v60, 2 }
 0x19d   : > { %v3137_v28 = vsel %vm2368_vm6, %v5236_v22, 0.0 }
 0x19e   : > { %v3906_v12 = vsel %vm2112_vm5, %v5242_v23, %v3137_v28 }
 0x19f   : > { %v4162_v52 = vadd.f32 %v3906_v12, %v5365_v62  ;;  %v6257_v62 = vperm.slane %v5153_v5, 7 }
 0x1a1   : > { %562 = vperm.xlu2 %4854, %v6242_v6   ;;  %4419 = vst.msk [vmem:[%s6043_s13 + $0x118] sm:$0xff] %vm4383_vm1, %v4162_v52  ;;  %611 = vperm.xlu0 %4828, %v6257_v62   ;;  %v8163_v52 = vld [vmem:[#allocation9_spill] sm:$0xff] }
 0x1a2   : > { %568 = vperm.xlu1 %4855, %v6242_v6  }
 0x1a3   : > { %v465_v5 = vpop.permute.xlu1 %464 }
 0x1a4   : > { %vm2111_vm11 = vcmp.eq.s32.totalorder %v465_v5, 1  ;;  %vm2367_vm12 = vcmp.eq.s32.totalorder %v465_v5, 2 }
 0x1a5   : > { %v3136_v25 = vsel %vm2367_vm12, %v5236_v22, 0.0 }
 0x1a6   : > { %v3905_v54 = vsel %vm2111_vm11, %v5242_v23, %v3136_v25 }
 0x1a7   : > { %v4161_v30 = vadd.f32 %v3905_v54, %v5368_v63 }
 0x1a9   : > { %4856 = vset.pattern.permute.xlu2 %v5142_v3  ;;  %4418 = vst.msk [vmem:[%s6043_s13 + $0x110] sm:$0xff] %vm4383_vm1, %v4161_v30 }
 0x1aa   : > { %4857 = vset.pattern.permute.xlu1 %v5171_v9 }
 0x1ab   : > { %v483_v51 = vpop.permute.xlu2 %482 }
 0x1ac   : > { %vm2114_vm9 = vcmp.eq.s32.totalorder %v483_v51, 1  ;;  %vm2370_vm10 = vcmp.eq.s32.totalorder %v483_v51, 2  ;;  %v8164_v51 = vld [vmem:[#allocation8_spill] sm:$0xff] }
 0x1ad   : > { %v3139_v46 = vsel %vm2370_vm10, %v5236_v22, 0.0 }
 0x1ae   : > { %v3908_v18 = vsel %vm2114_vm9, %v5242_v23, %v3139_v46 }
 0x1af   : > { %v4164_v61 = vadd.f32 %v3908_v18, %v5371_v0  ;;  %v6340_v18 = vld [vmem:[%s5149_s25] sm:$0xff] }
 0x1b1   : > { %574 = vperm.xlu2 %4856, %v6242_v6   ;;  %4421 = vst.msk [vmem:[%s6043_s13 + $0x128] sm:$0xff] %vm4383_vm1, %v4164_v61  ;;  %v6343_v61 = vunpack.c.1.s8 %v6340_v18 }
 0x1b2   : > { %586 = vperm.xlu1 %4857, %v6242_v6  }
 0x1b3   : > { %v477_v63 = vpop.permute.xlu1 %476  ;;  %v6349_v25 = vperm.slane %v6343_v61, 0 }
 0x1b4   : > { %vm2113_vm15 = vcmp.eq.s32.totalorder %v477_v63, 1  ;;  %vm2369_vm0 = vcmp.eq.s32.totalorder %v477_v63, 2 }
 0x1b9   : > { %4858 = vset.pattern.permute.xlu2 %v5174_v10 }
 0x1ba   : > { %4859 = vset.pattern.permute.xlu1 %v5132_v1 }
 0x1bb   : > { %v502_v0 = vpop.permute.xlu2 %501 }
 0x1bc   : > { %vm2117_vm13 = vcmp.eq.s32.totalorder %v502_v0, 1  ;;  %vm2373_vm14 = vcmp.eq.s32.totalorder %v502_v0, 2  ;;  %v8165_v0 = vld [vmem:[#allocation11_spill] sm:$0xff] }
 0x1bd   : > { %v3142_v45 = vsel %vm2373_vm14, %v5236_v22, 0.0  ;;  %v3138_v22 = vsel %vm2369_vm0, %v6286_v32, 0.0 }
 0x1be   : > { %v3911_v31 = vsel %vm2117_vm13, %v5242_v23, %v3142_v45  ;;  %v6292_v23 = vld [vmem:[%s7932_s2] ss:$0 sm:$0xff] }
 0x1bf   : > { %v4167_v53 = vadd.f32 %v3911_v31, %v5377_v14  ;;  %v3907_v14 = vsel %vm2113_vm15, %v6292_v23, %v3138_v22  ;;  %v8166_v22 = vld [vmem:[#allocation10_spill] sm:$0xff] }
 0x1c0   : > { %v4163_v20 = vadd.f32 %v3907_v14, %v5374_v4 }
 0x1c1   : > { %592 = vperm.xlu2 %4858, %v6242_v6   ;;  %4424 = vst.msk [vmem:[%s6043_s13 + $0x140] sm:$0xff] %vm4383_vm1, %v4167_v53 }
 0x1c2   : > { %4420 = vst.msk [vmem:[%s6043_s13 + $0x120] sm:$0xff] %vm4383_vm1, %v4163_v20  ;;  %599 = vperm.xlu1 %4859, %v6257_v62  }
 0x1c3   : > { %v495_v4 = vpop.permute.xlu1 %494 }
 0x1c4   : > { %vm2116_vm4 = vcmp.eq.s32.totalorder %v495_v4, 1  ;;  %vm2372_vm5 = vcmp.eq.s32.totalorder %v495_v4, 2 }
 0x1c5   : > { %v3141_v19 = vsel %vm2372_vm5, %v6286_v32, 0.0 }
 0x1c6   : > { %v3910_v55 = vsel %vm2116_vm4, %v6292_v23, %v3141_v19 }
 0x1c7   : > { %v4166_v34 = vadd.f32 %v3910_v55, %v8160_v47  ;;  %v8168_v47 = vld [vmem:[#allocation12_spill] sm:$0xff] }
 0x1c9   : > { %4860 = vset.pattern.permute.xlu2 %v5181_v11  ;;  %4423 = vst.msk [vmem:[%s6043_s13 + $0x138] sm:$0xff] %vm4383_vm1, %v4166_v34 }
 0x1ca   : > { %4861 = vset.pattern.permute.xlu1 %v5161_v7 }
 0x1cb   : > { %v514_v48 = vpop.permute.xlu2 %513 }
 0x1cc   : > { %vm2119_vm2 = vcmp.eq.s32.totalorder %v514_v48, 1  ;;  %vm2375_vm3 = vcmp.eq.s32.totalorder %v514_v48, 2 }
 0x1cd   : > { %v3144_v56 = vsel %vm2375_vm3, %v6286_v32, 0.0 }
 0x1ce   : > { %v3913_v36 = vsel %vm2119_vm2, %v6292_v23, %v3144_v56 }
 0x1cf   : > { %v4169_v33 = vadd.f32 %v3913_v36, %v5383_v16  ;;  %v8167_v36 = vld [vmem:[#allocation13_spill] sm:$0xff] }
 0x1d1   : > { %605 = vperm.xlu2 %4860, %v6257_v62   ;;  %4426 = vst.msk [vmem:[%s6043_s13 + $0x150] sm:$0xff] %vm4383_vm1, %v4169_v33 }
 0x1d2   : > { %617 = vperm.xlu1 %4861, %v6257_v62  }
 0x1d3   : > { %v508_v38 = vpop.permute.xlu1 %507 }
 0x1d4   : > { %vm2118_vm8 = vcmp.eq.s32.totalorder %v508_v38, 1  ;;  %vm2374_vm9 = vcmp.eq.s32.totalorder %v508_v38, 2 }
 0x1d5   : > { %v3143_v57 = vsel %vm2374_vm9, %v6286_v32, 0.0 }
 0x1d6   : > { %v3912_v21 = vsel %vm2118_vm8, %v6292_v23, %v3143_v57 }
 0x1d7   : > { %v4168_v49 = vadd.f32 %v3912_v21, %v8162_v41  ;;  %v8170_v41 = vld [vmem:[#allocation14_spill] sm:$0xff] }
 0x1d9   : > { %4862 = vset.pattern.permute.xlu2 %v5142_v3  ;;  %4425 = vst.msk [vmem:[%s6043_s13 + $0x148] sm:$0xff] %vm4383_vm1, %v4168_v49 }
 0x1da   : > { %4863 = vset.pattern.permute.xlu1 %v5164_v8 }
 0x1db   : > { %v532_v16 = vpop.permute.xlu2 %531 }
 0x1dc   : > { %vm2122_vm6 = vcmp.eq.s32.totalorder %v532_v16, 1  ;;  %vm2378_vm7 = vcmp.eq.s32.totalorder %v532_v16, 2 }
 0x1dd   : > { %v3147_v27 = vsel %vm2378_vm7, %v6286_v32, 0.0 }
 0x1de   : > { %v3916_v58 = vsel %vm2122_vm6, %v6292_v23, %v3147_v27 }
 0x1df   : > { %v4172_v50 = vadd.f32 %v3916_v58, %v8161_v37  ;;  %v8169_v37 = vld [vmem:[#allocation15_spill] sm:$0xff] }
 0x1e1   : > { %623 = vperm.xlu2 %4862, %v6257_v62   ;;  %4429 = vst.msk [vmem:[%s6043_s13 + $0x168] sm:$0xff] %vm4383_vm1, %v4172_v50 }
 0x1e2   : > { %629 = vperm.xlu1 %4863, %v6257_v62  }
 0x1e3   : > { %v526_v39 = vpop.permute.xlu1 %525 }
 0x1e4   : > { %vm2121_vm12 = vcmp.eq.s32.totalorder %v526_v39, 1  ;;  %vm2377_vm13 = vcmp.eq.s32.totalorder %v526_v39, 2 }
 0x1e5   : > { %v3146_v42 = vsel %vm2377_vm13, %v6286_v32, 0.0 }
 0x1e6   : > { %v3915_v44 = vsel %vm2121_vm12, %v6292_v23, %v3146_v42 }
 0x1e7   : > { %v4171_v46 = vadd.f32 %v3915_v44, %v8164_v51 }
 0x1e9   : > { %4864 = vset.pattern.permute.xlu2 %v5171_v9  ;;  %4428 = vst.msk [vmem:[%s6043_s13 + $0x160] sm:$0xff] %vm4383_vm1, %v4171_v46  ;;  %v8172_v46 = vld [vmem:[#allocation16_spill] sm:$0xff] }
 0x1ea   : > { %4865 = vset.pattern.permute.xlu1 %v5132_v1 }
 0x1eb   : > { %v544_v60 = vpop.permute.xlu2 %543 }
 0x1ec   : > { %vm2124_vm10 = vcmp.eq.s32.totalorder %v544_v60, 1  ;;  %vm2380_vm11 = vcmp.eq.s32.totalorder %v544_v60, 2 }
 0x1ed   : > { %v3149_v28 = vsel %vm2380_vm11, %v6286_v32, 0.0 }
 0x1ee   : > { %v3918_v12 = vsel %vm2124_vm10, %v6292_v23, %v3149_v28 }
 0x1ef   : > { %v4174_v59 = vadd.f32 %v3918_v12, %v8163_v52  ;;  %v6396_v52 = vperm.slane %v6343_v61, 1 }
 0x1f1   : > { %635 = vperm.xlu2 %4864, %v6257_v62   ;;  %4431 = vst.msk [vmem:[%s6043_s13 + $0x178] sm:$0xff] %vm4383_vm1, %v4174_v59  ;;  %v8171_v59 = vld [vmem:[#allocation17_spill] sm:$0xff] }
 0x1f2   : > { %648 = vperm.xlu1 %4865, %v6349_v25  }
 0x1f3   : > { %v538_v31 = vpop.permute.xlu1 %537 }
 0x1f4   : > { %vm2123_vm0 = vcmp.eq.s32.totalorder %v538_v31, 1  ;;  %vm2379_vm2 = vcmp.eq.s32.totalorder %v538_v31, 2 }
 0x1f5   : > { %v3148_v53 = vsel %vm2379_vm2, %v6286_v32, 0.0 }
 0x1f6   : > { %v3917_v63 = vsel %vm2123_vm0, %v6292_v23, %v3148_v53 }
 0x1f7   : > { %v4173_v14 = vadd.f32 %v3917_v63, %v8166_v22 }
 0x1f9   : > { %4866 = vset.pattern.permute.xlu2 %v5181_v11  ;;  %4430 = vst.msk [vmem:[%s6043_s13 + $0x170] sm:$0xff] %vm4383_vm1, %v4173_v14  ;;  %v8174_v14 = vld [vmem:[#allocation18_spill] sm:$0xff] }
 0x1fa   : > { %4867 = vset.pattern.permute.xlu1 %v5138_v2 }
 0x1fb   : > { %v563_v5 = vpop.permute.xlu2 %562 }
 0x1fc   : > { %vm2127_vm14 = vcmp.eq.s32.totalorder %v563_v5, 1  ;;  %vm2383_vm15 = vcmp.eq.s32.totalorder %v563_v5, 2 }
 0x1fd   : > { %v3152_v54 = vsel %vm2383_vm15, %v6286_v32, 0.0 }
 0x1fe   : > { %v3921_v30 = vsel %vm2127_vm14, %v6292_v23, %v3152_v54 }
 0x1ff   : > { %v4177_v45 = vadd.f32 %v3921_v30, %v8165_v0 }
 0x201   : > { %654 = vperm.xlu2 %4866, %v6349_v25   ;;  %4434 = vst.msk [vmem:[%s6043_s13 + $0x190] sm:$0xff] %vm4383_vm1, %v4177_v45  ;;  %v8173_v45 = vld [vmem:[#allocation19_spill] sm:$0xff] }
 0x202   : > { %660 = vperm.xlu1 %4867, %v6349_v25  }
 0x203   : > { %v557_v4 = vpop.permute.xlu1 %556 }
 0x204   : > { %vm2126_vm5 = vcmp.eq.s32.totalorder %v557_v4, 1  ;;  %vm2382_vm6 = vcmp.eq.s32.totalorder %v557_v4, 2 }
 0x205   : > { %v3151_v19 = vsel %vm2382_vm6, %v6286_v32, 0.0 }
 0x206   : > { %v3920_v55 = vsel %vm2126_vm5, %v6292_v23, %v3151_v19 }
 0x207   : > { %v4176_v34 = vadd.f32 %v3920_v55, %v8168_v47 }
 0x209   : > { %4868 = vset.pattern.permute.xlu2 %v5161_v7  ;;  %4433 = vst.msk [vmem:[%s6043_s13 + $0x188] sm:$0xff] %vm4383_vm1, %v4176_v34  ;;  %v8176_v34 = vld [vmem:[#allocation20_spill] sm:$0xff] }
 0x20a   : > { %4869 = vset.pattern.permute.xlu1 %v5164_v8 }
 0x20b   : > { %v575_v20 = vpop.permute.xlu2 %574 }
 0x20c   : > { %vm2129_vm3 = vcmp.eq.s32.totalorder %v575_v20, 1  ;;  %vm2385_vm4 = vcmp.eq.s32.totalorder %v575_v20, 2 }
 0x20d   : > { %v3154_v48 = vsel %vm2385_vm4, %v6286_v32, 0.0 }
 0x20e   : > { %v3923_v56 = vsel %vm2129_vm3, %v6292_v23, %v3154_v48 }
 0x20f   : > { %v4179_v33 = vadd.f32 %v3923_v56, %v8167_v36 }
 0x211   : > { %666 = vperm.xlu2 %4868, %v6349_v25   ;;  %4436 = vst.msk [vmem:[%s6043_s13 + $0x1a0] sm:$0xff] %vm4383_vm1, %v4179_v33  ;;  %v8175_v33 = vld [vmem:[#allocation21_spill] sm:$0xff] }
 0x212   : > { %678 = vperm.xlu1 %4869, %v6349_v25  }
 0x214   : > { %v569_v38 = vpop.permute.xlu1 %568 }
 0x215   : > { %vm2128_vm9 = vcmp.eq.s32.totalorder %v569_v38, 1  ;;  %vm2384_vm10 = vcmp.eq.s32.totalorder %v569_v38, 2  ;;  %v8177_v38 = vld [vmem:[#allocation23_spill] sm:$0xff] }
 0x216   : > { %v3153_v57 = vsel %vm2384_vm10, %v6286_v32, 0.0 }
 0x217   : > { %v3922_v21 = vsel %vm2128_vm9, %v6292_v23, %v3153_v57 }
 0x218   : > { %v4178_v49 = vadd.f32 %v3922_v21, %v8170_v41 }
 0x219   : > { %4870 = vset.pattern.permute.xlu2 %v5171_v9 }
 0x21a   : > { %4871 = vset.pattern.permute.xlu1 %v5174_v10  ;;  %4435 = vst.msk [vmem:[%s6043_s13 + $0x198] sm:$0xff] %vm4383_vm1, %v4178_v49 }
 0x21b   : > { %v593_v16 = vpop.permute.xlu2 %592 }
 0x21c   : > { %vm2132_vm7 = vcmp.eq.s32.totalorder %v593_v16, 1  ;;  %vm2388_vm8 = vcmp.eq.s32.totalorder %v593_v16, 2 }
 0x21d   : > { %v3157_v27 = vsel %vm2388_vm8, %v6286_v32, 0.0 }
 0x21e   : > { %v3926_v58 = vsel %vm2132_vm7, %v6292_v23, %v3157_v27 }
 0x21f   : > { %v4182_v50 = vadd.f32 %v3926_v58, %v8169_v37 }
 0x221   : > { %684 = vperm.xlu2 %4870, %v6349_v25   ;;  %4439 = vst.msk [vmem:[%s6043_s13 + $0x1b8] sm:$0xff] %vm4383_vm1, %v4182_v50  ;;  %v6441_v50 = vperm.slane %v6343_v61, 2 }
 0x222   : > { %690 = vperm.xlu1 %4871, %v6349_v25  }
 0x224   : > { %v587_v42 = vpop.permute.xlu1 %586 }
 0x225   : > { %vm2131_vm13 = vcmp.eq.s32.totalorder %v587_v42, 1  ;;  %vm2387_vm14 = vcmp.eq.s32.totalorder %v587_v42, 2  ;;  %v8179_v42 = vld [vmem:[#allocation25_spill] sm:$0xff] }
 0x226   : > { %v3156_v44 = vsel %vm2387_vm14, %v6286_v32, 0.0 }
 0x227   : > { %v3925_v51 = vsel %vm2131_vm13, %v6292_v23, %v3156_v44 }
 0x228   : > { %v4181_v5 = vadd.f32 %v3925_v51, %v8172_v46 }
 0x229   : > { %4872 = vset.pattern.permute.xlu2 %v5132_v1 }
 0x22a   : > { %4873 = vset.pattern.permute.xlu1 %v5138_v2  ;;  %4438 = vst.msk [vmem:[%s6043_s13 + $0x1b0] sm:$0xff] %vm4383_vm1, %v4181_v5 }
 0x22b   : > { %v606_v60 = vpop.permute.xlu2 %605 }
 0x22c   : > { %vm2134_vm11 = vcmp.eq.s32.totalorder %v606_v60, 1  ;;  %vm2390_vm12 = vcmp.eq.s32.totalorder %v606_v60, 2  ;;  %v8178_v60 = vld [vmem:[#allocation22_spill] sm:$0xff] }
 0x22d   : > { %v3159_v28 = vsel %vm2390_vm12, %v6286_v32, 0.0 }
 0x22e   : > { %v3928_v12 = vsel %vm2134_vm11, %v6292_v23, %v3159_v28 }
 0x22f   : > { %v4184_v39 = vadd.f32 %v3928_v12, %v8171_v59 }
 0x231   : > { %697 = vperm.xlu2 %4872, %v6396_v52   ;;  %4441 = vst.msk [vmem:[%s6043_s13 + $0x1c8] sm:$0xff] %vm4383_vm1, %v4184_v39 }
 0x232   : > { %709 = vperm.xlu1 %4873, %v6396_v52  }
 0x234   : > { %v600_v53 = vpop.permute.xlu1 %599 }
 0x235   : > { %vm2133_vm2 = vcmp.eq.s32.totalorder %v600_v53, 1  ;;  %vm2389_vm3 = vcmp.eq.s32.totalorder %v600_v53, 2  ;;  %v8181_v53 = vld [vmem:[#allocation27_spill] sm:$0xff] }
 0x236   : > { %v3158_v63 = vsel %vm2389_vm3, %v6286_v32, 0.0 }
 0x237   : > { %v3927_v22 = vsel %vm2133_vm2, %v6292_v23, %v3158_v63 }
 0x238   : > { %v4183_v20 = vadd.f32 %v3927_v22, %v8174_v14 }
 0x239   : > { %4874 = vset.pattern.permute.xlu2 %v5161_v7 }
 0x23a   : > { %4875 = vset.pattern.permute.xlu1 %v5142_v3  ;;  %4440 = vst.msk [vmem:[%s6043_s13 + $0x1c0] sm:$0xff] %vm4383_vm1, %v4183_v20 }
 0x23b   : > { %v624_v54 = vpop.permute.xlu2 %623 }
 0x23c   : > { %vm2137_vm15 = vcmp.eq.s32.totalorder %v624_v54, 1  ;;  %vm2393_vm0 = vcmp.eq.s32.totalorder %v624_v54, 2  ;;  %v8180_v54 = vld [vmem:[#allocation24_spill] sm:$0xff] }
 0x23d   : > { %v3162_v30 = vsel %vm2393_vm0, %v6286_v32, 0.0 }
 0x23e   : > { %v3931_v0 = vsel %vm2137_vm15, %v6292_v23, %v3162_v30 }
 0x23f   : > { %v4187_v31 = vadd.f32 %v3931_v0, %v8173_v45 }
 0x241   : > { %715 = vperm.xlu2 %4874, %v6396_v52   ;;  %4444 = vst.msk [vmem:[%s6043_s13 + $0x1e0] sm:$0xff] %vm4383_vm1, %v4187_v31 }
 0x242   : > { %721 = vperm.xlu1 %4875, %v6396_v52  }
 0x244   : > { %v618_v19 = vpop.permute.xlu1 %617 }
 0x245   : > { %vm2136_vm6 = vcmp.eq.s32.totalorder %v618_v19, 1  ;;  %vm2392_vm7 = vcmp.eq.s32.totalorder %v618_v19, 2  ;;  %v8183_v19 = vld [vmem:[#allocation29_spill] sm:$0xff] }
 0x246   : > { %v3161_v55 = vsel %vm2392_vm7, %v6286_v32, 0.0 }
 0x247   : > { %v3930_v47 = vsel %vm2136_vm6, %v6292_v23, %v3161_v55 }
 0x248   : > { %v4186_v16 = vadd.f32 %v3930_v47, %v8176_v34 }
 0x249   : > { %4876 = vset.pattern.permute.xlu2 %v5164_v8 }
 0x24a   : > { %4877 = vset.pattern.permute.xlu1 %v5174_v10  ;;  %4443 = vst.msk [vmem:[%s6043_s13 + $0x1d8] sm:$0xff] %vm4383_vm1, %v4186_v16 }
 0x24b   : > { %v636_v48 = vpop.permute.xlu2 %635 }
 0x24c   : > { %vm2139_vm4 = vcmp.eq.s32.totalorder %v636_v48, 1  ;;  %vm2395_vm5 = vcmp.eq.s32.totalorder %v636_v48, 2  ;;  %v8182_v48 = vld [vmem:[#allocation26_spill] sm:$0xff] }
 0x24d   : > { %v3164_v56 = vsel %vm2395_vm5, %v6286_v32, 0.0 }
 0x24e   : > { %v3933_v36 = vsel %vm2139_vm4, %v6292_v23, %v3164_v56 }
 0x24f   : > { %v4189_v4 = vadd.f32 %v3933_v36, %v8175_v33 }
 0x251   : > { %727 = vperm.xlu2 %4876, %v6396_v52   ;;  %4446 = vst.msk [vmem:[%s6043_s13 + $0x1f0] sm:$0xff] %vm4383_vm1, %v4189_v4 }
 0x252   : > { %739 = vperm.xlu1 %4877, %v6396_v52  }
 0x254   : > { %v630_v21 = vpop.permute.xlu1 %629 }
 0x255   : > { %vm2138_vm10 = vcmp.eq.s32.totalorder %v630_v21, 1  ;;  %vm2394_vm11 = vcmp.eq.s32.totalorder %v630_v21, 2 }
 0x256   : > { %v3163_v41 = vsel %vm2394_vm11, %v6286_v32, 0.0 }
 0x257   : > { %v3932_v49 = vsel %vm2138_vm10, %v6292_v23, %v3163_v41  ;;  %v8185_v41 = vld [vmem:[#allocation31_spill] sm:$0xff] }
 0x258   : > { %v4188_v28 = vadd.f32 %v3932_v49, %v8178_v60 }
 0x259   : > { %4878 = vset.pattern.permute.xlu2 %v5132_v1 }
 0x25a   : > { %4879 = vset.pattern.permute.xlu1 %v5181_v11  ;;  %4445 = vst.msk [vmem:[%s6043_s13 + $0x1e8] sm:$0xff] %vm4383_vm1, %v4188_v28 }
 0x25b   : > { %v655_v27 = vpop.permute.xlu2 %654 }
 0x25c   : > { %vm2142_vm8 = vcmp.eq.s32.totalorder %v655_v27, 1  ;;  %vm2398_vm9 = vcmp.eq.s32.totalorder %v655_v27, 2  ;;  %v8184_v27 = vld [vmem:[#allocation28_spill] sm:$0xff] }
 0x25d   : > { %v3167_v58 = vsel %vm2398_vm9, %v6286_v32, 0.0 }
 0x25e   : > { %v3936_v37 = vsel %vm2142_vm8, %v6292_v23, %v3167_v58 }
 0x25f   : > { %v4192_v57 = vadd.f32 %v3936_v37, %v8177_v38  ;;  %v6498_v38 = vperm.slane %v6343_v61, 3 }
 0x261   : > { %746 = vperm.xlu2 %4878, %v6441_v50   ;;  %4449 = vst.msk [vmem:[%s6043_s13 + $0x208] sm:$0xff] %vm4383_vm1, %v4192_v57 }
 0x262   : > { %752 = vperm.xlu1 %4879, %v6441_v50  }
 0x264   : > { %v649_v51 = vpop.permute.xlu1 %648 }
 0x265   : > { %vm2141_vm14 = vcmp.eq.s32.totalorder %v649_v51, 1  ;;  %vm2397_vm15 = vcmp.eq.s32.totalorder %v649_v51, 2 }
 0x266   : > { %v3166_v46 = vsel %vm2397_vm15, %v6286_v32, 0.0 }
 0x267   : > { %v3935_v5 = vsel %vm2141_vm14, %v6292_v23, %v3166_v46 }
 0x268   : > { %v4191_v30 = vadd.f32 %v3935_v5, %v8180_v54  ;;  %v8187_v5 = vld [vmem:[#allocation33_spill] sm:$0xff] }
 0x269   : > { %4880 = vset.pattern.permute.xlu2 %v5138_v2 }
 0x26a   : > { %4881 = vset.pattern.permute.xlu1 %v5142_v3  ;;  %4448 = vst.msk [vmem:[%s6043_s13 + $0x200] sm:$0xff] %vm4383_vm1, %v4191_v30 }
 0x26b   : > { %v667_v12 = vpop.permute.xlu2 %666 }
 0x26c   : > { %vm2144_vm12 = vcmp.eq.s32.totalorder %v667_v12, 1  ;;  %vm2400_vm13 = vcmp.eq.s32.totalorder %v667_v12, 2 }
 0x26d   : > { %v3169_v59 = vsel %vm2400_vm13, %v6286_v32, 0.0 }
 0x26e   : > { %v3938_v39 = vsel %vm2144_vm12, %v6292_v23, %v3169_v59  ;;  %v8186_v59 = vld [vmem:[#allocation30_spill] sm:$0xff] }
 0x26f   : > { %v4194_v44 = vadd.f32 %v3938_v39, %v8179_v42  ;;  %v6513_v42 = vperm.slane %v6343_v61, 4 }
 0x271   : > { %758 = vperm.xlu2 %4880, %v6441_v50   ;;  %4451 = vst.msk [vmem:[%s6043_s13 + $0x218] sm:$0xff] %vm4383_vm1, %v4194_v44  ;;  %856 = vperm.xlu0 %4828, %v6513_v42  }
 0x272   : > { %770 = vperm.xlu1 %4881, %v6441_v50  }
 0x274   : > { %v661_v22 = vpop.permute.xlu1 %660 }
 0x275   : > { %vm2143_vm3 = vcmp.eq.s32.totalorder %v661_v22, 1  ;;  %vm2399_vm4 = vcmp.eq.s32.totalorder %v661_v22, 2 }
 0x276   : > { %v3168_v14 = vsel %vm2399_vm4, %v6286_v32, 0.0 }
 0x277   : > { %v3937_v20 = vsel %vm2143_vm3, %v6292_v23, %v3168_v14 }
 0x278   : > { %v4193_v56 = vadd.f32 %v3937_v20, %v8182_v48  ;;  %v8189_v20 = vld [vmem:[#allocation35_spill] sm:$0xff] }
 0x279   : > { %4882 = vset.pattern.permute.xlu2 %v5164_v8 }
 0x27a   : > { %4883 = vset.pattern.permute.xlu1 %v5171_v9  ;;  %4450 = vst.msk [vmem:[%s6043_s13 + $0x210] sm:$0xff] %vm4383_vm1, %v4193_v56 }
 0x27b   : > { %v685_v0 = vpop.permute.xlu2 %684 }
 0x27c   : > { %vm2147_vm0 = vcmp.eq.s32.totalorder %v685_v0, 1  ;;  %vm2403_vm2 = vcmp.eq.s32.totalorder %v685_v0, 2 }
 0x27d   : > { %v3172_v45 = vsel %vm2403_vm2, %v6286_v32, 0.0 }
 0x27e   : > { %v3941_v31 = vsel %vm2147_vm0, %v6292_v23, %v3172_v45 }
 0x27f   : > { %v4197_v63 = vadd.f32 %v3941_v31, %v8181_v53  ;;  %v8188_v31 = vld [vmem:[#allocation32_spill] sm:$0xff] }
 0x281   : > { %776 = vperm.xlu2 %4882, %v6441_v50   ;;  %4454 = vst.msk [vmem:[%s6043_s13 + $0x230] sm:$0xff] %vm4383_vm1, %v4197_v63 }
 0x282   : > { %782 = vperm.xlu1 %4883, %v6441_v50  }
 0x284   : > { %v679_v47 = vpop.permute.xlu1 %678 }
 0x285   : > { %vm2146_vm7 = vcmp.eq.s32.totalorder %v679_v47, 1  ;;  %vm2402_vm8 = vcmp.eq.s32.totalorder %v679_v47, 2 }
 0x286   : > { %v3171_v34 = vsel %vm2402_vm8, %v6286_v32, 0.0 }
 0x287   : > { %v3940_v16 = vsel %vm2146_vm7, %v6292_v23, %v3171_v34 }
 0x288   : > { %v4196_v58 = vadd.f32 %v3940_v16, %v8184_v27  ;;  %v8191_v16 = vld [vmem:[#allocation37_spill] sm:$0xff] }
 0x289   : > { %4884 = vset.pattern.permute.xlu2 %v5174_v10 }
 0x28a   : > { %4885 = vset.pattern.permute.xlu1 %v5181_v11  ;;  %4453 = vst.msk [vmem:[%s6043_s13 + $0x228] sm:$0xff] %vm4383_vm1, %v4196_v58 }
 0x28b   : > { %v698_v36 = vpop.permute.xlu2 %697 }
 0x28c   : > { %vm2149_vm5 = vcmp.eq.s32.totalorder %v698_v36, 1  ;;  %vm2405_vm6 = vcmp.eq.s32.totalorder %v698_v36, 2 }
 0x28d   : > { %v3174_v33 = vsel %vm2405_vm6, %v6286_v32, 0.0 }
 0x28e   : > { %v3943_v4 = vsel %vm2149_vm5, %v6292_v23, %v3174_v33 }
 0x28f   : > { %v4199_v55 = vadd.f32 %v3943_v4, %v8183_v19  ;;  %v8190_v4 = vld [vmem:[#allocation34_spill] sm:$0xff] }
 0x291   : > { %788 = vperm.xlu2 %4884, %v6441_v50   ;;  %4456 = vst.msk [vmem:[%s6043_s13 + $0x240] sm:$0xff] %vm4383_vm1, %v4199_v55 }
 0x292   : > { %801 = vperm.xlu1 %4885, %v6498_v38  }
 0x294   : > { %v691_v60 = vpop.permute.xlu1 %690 }
 0x295   : > { %vm2148_vm11 = vcmp.eq.s32.totalorder %v691_v60, 1  ;;  %vm2404_vm12 = vcmp.eq.s32.totalorder %v691_v60, 2 }
 0x296   : > { %v3173_v28 = vsel %vm2404_vm12, %v6286_v32, 0.0 }
 0x297   : > { %v3942_v12 = vsel %vm2148_vm11, %v6292_v23, %v3173_v28 }
 0x298   : > { %v4198_v39 = vadd.f32 %v3942_v12, %v8186_v59  ;;  %v8193_v12 = vld [vmem:[#allocation39_spill] sm:$0xff] }
 0x299   : > { %4886 = vset.pattern.permute.xlu2 %v5138_v2 }
 0x29a   : > { %4887 = vset.pattern.permute.xlu1 %v5161_v7  ;;  %4455 = vst.msk [vmem:[%s6043_s13 + $0x238] sm:$0xff] %vm4383_vm1, %v4198_v39 }
 0x29b   : > { %v716_v37 = vpop.permute.xlu2 %715 }
 0x29c   : > { %vm2152_vm9 = vcmp.eq.s32.totalorder %v716_v37, 1  ;;  %vm2408_vm10 = vcmp.eq.s32.totalorder %v716_v37, 2 }
 0x29d   : > { %v3177_v57 = vsel %vm2408_vm10, %v6286_v32, 0.0 }
 0x29e   : > { %v3946_v21 = vsel %vm2152_vm9, %v6292_v23, %v3177_v57 }
 0x29f   : > { %v4202_v49 = vadd.f32 %v3946_v21, %v8185_v41  ;;  %v8192_v21 = vld [vmem:[#allocation36_spill] sm:$0xff] }
 0x2a1   : > { %807 = vperm.xlu2 %4886, %v6498_v38   ;;  %4459 = vst.msk [vmem:[%s6043_s13 + $0x258] sm:$0xff] %vm4383_vm1, %v4202_v49 }
 0x2a2   : > { %813 = vperm.xlu1 %4887, %v6498_v38  }
 0x2a4   : > { %v710_v30 = vpop.permute.xlu1 %709 }
 0x2a5   : > { %vm2151_vm15 = vcmp.eq.s32.totalorder %v710_v30, 1  ;;  %vm2407_vm0 = vcmp.eq.s32.totalorder %v710_v30, 2 }
 0x2a6   : > { %v3176_v0 = vsel %vm2407_vm0, %v6286_v32, 0.0 }
 0x2a7   : > { %v3945_v45 = vsel %vm2151_vm15, %v6292_v23, %v3176_v0 }
 0x2a8   : > { %v4201_v53 = vadd.f32 %v3945_v45, %v8188_v31  ;;  %v8195_v45 = vld [vmem:[#allocation41_spill] sm:$0xff] }
 0x2a9   : > { %4888 = vset.pattern.permute.xlu2 %v5142_v3 }
 0x2aa   : > { %4889 = vset.pattern.permute.xlu1 %v5171_v9  ;;  %4458 = vst.msk [vmem:[%s6043_s13 + $0x250] sm:$0xff] %vm4383_vm1, %v4201_v53 }
 0x2ab   : > { %v728_v44 = vpop.permute.xlu2 %727 }
 0x2ac   : > { %vm2154_vm13 = vcmp.eq.s32.totalorder %v728_v44, 1  ;;  %vm2410_vm14 = vcmp.eq.s32.totalorder %v728_v44, 2 }
 0x2ad   : > { %v3179_v51 = vsel %vm2410_vm14, %v6286_v32, 0.0 }
 0x2ae   : > { %v3948_v46 = vsel %vm2154_vm13, %v6292_v23, %v3179_v51 }
 0x2af   : > { %v4204_v54 = vadd.f32 %v3948_v46, %v8187_v5  ;;  %v8194_v46 = vld [vmem:[#allocation38_spill] sm:$0xff] }
 0x2b1   : > { %819 = vperm.xlu2 %4888, %v6498_v38   ;;  %4461 = vst.msk [vmem:[%s6043_s13 + $0x268] sm:$0xff] %vm4383_vm1, %v4204_v54 }
 0x2b2   : > { %831 = vperm.xlu1 %4889, %v6498_v38  }
 0x2b4   : > { %v722_v56 = vpop.permute.xlu1 %721 }
 0x2b5   : > { %vm2153_vm4 = vcmp.eq.s32.totalorder %v722_v56, 1  ;;  %vm2409_vm5 = vcmp.eq.s32.totalorder %v722_v56, 2  ;;  %v6589_v56 = vperm.slane %v6343_v61, 5 }
 0x2b6   : > { %v3178_v36 = vsel %vm2409_vm5, %v6286_v32, 0.0 }
 0x2b7   : > { %v3947_v33 = vsel %vm2153_vm4, %v6292_v23, %v3178_v36 }
 0x2b8   : > { %v4203_v19 = vadd.f32 %v3947_v33, %v8190_v4  ;;  %v8197_v4 = vld [vmem:[#allocation43_spill] sm:$0xff] }
 0x2b9   : > { %4890 = vset.pattern.permute.xlu2 %v5174_v10 }
 0x2ba   : > { %4891 = vset.pattern.permute.xlu1 %v5132_v1  ;;  %4460 = vst.msk [vmem:[%s6043_s13 + $0x260] sm:$0xff] %vm4383_vm1, %v4203_v19 }
 0x2bb   : > { %v747_v63 = vpop.permute.xlu2 %746 }
 0x2bc   : > { %vm2157_vm2 = vcmp.eq.s32.totalorder %v747_v63, 1  ;;  %vm2413_vm3 = vcmp.eq.s32.totalorder %v747_v63, 2 }
 0x2bd   : > { %v3182_v22 = vsel %vm2413_vm3, %v6286_v32, 0.0 }
 0x2be   : > { %v3951_v14 = vsel %vm2157_vm2, %v6292_v23, %v3182_v22 }
 0x2bf   : > { %v4207_v48 = vadd.f32 %v3951_v14, %v8189_v20  ;;  %v8196_v14 = vld [vmem:[#allocation40_spill] sm:$0xff] }
 0x2c1   : > { %837 = vperm.xlu2 %4890, %v6498_v38   ;;  %4464 = vst.msk [vmem:[%s6043_s13 + $0x280] sm:$0xff] %vm4383_vm1, %v4207_v48 }
 0x2c2   : > { %844 = vperm.xlu1 %4891, %v6513_v42  }
 0x2c4   : > { %v740_v58 = vpop.permute.xlu1 %739 }
 0x2c5   : > { %vm2156_vm8 = vcmp.eq.s32.totalorder %v740_v58, 1  ;;  %vm2412_vm9 = vcmp.eq.s32.totalorder %v740_v58, 2 }
 0x2c6   : > { %v3181_v37 = vsel %vm2412_vm9, %v6286_v32, 0.0 }
 0x2c7   : > { %v3950_v57 = vsel %vm2156_vm8, %v6292_v23, %v3181_v37 }
 0x2c8   : > { %v4206_v41 = vadd.f32 %v3950_v57, %v8192_v21  ;;  %v8199_v21 = vld [vmem:[#allocation45_spill] sm:$0xff] }
 0x2c9   : > { %4892 = vset.pattern.permute.xlu2 %v5181_v11 }
 0x2ca   : > { %4893 = vset.pattern.permute.xlu1 %v5161_v7  ;;  %4463 = vst.msk [vmem:[%s6043_s13 + $0x278] sm:$0xff] %vm4383_vm1, %v4206_v41 }
 0x2cb   : > { %v759_v55 = vpop.permute.xlu2 %758 }
 0x2cc   : > { %vm2159_vm6 = vcmp.eq.s32.totalorder %v759_v55, 1  ;;  %vm2415_vm7 = vcmp.eq.s32.totalorder %v759_v55, 2 }
 0x2cd   : > { %v3184_v47 = vsel %vm2415_vm7, %v6286_v32, 0.0 }
 0x2ce   : > { %v3953_v34 = vsel %vm2159_vm6, %v6292_v23, %v3184_v47 }
 0x2cf   : > { %v4209_v27 = vadd.f32 %v3953_v34, %v8191_v16  ;;  %v8198_v16 = vld [vmem:[#allocation42_spill] sm:$0xff] }
 0x2d1   : > { %850 = vperm.xlu2 %4892, %v6513_v42   ;;  %4466 = vst.msk [vmem:[%s6043_s13 + $0x290] sm:$0xff] %vm4383_vm1, %v4209_v27 }
 0x2d2   : > { %862 = vperm.xlu1 %4893, %v6513_v42  }
 0x2d4   : > { %v753_v39 = vpop.permute.xlu1 %752 }
 0x2d5   : > { %vm2158_vm12 = vcmp.eq.s32.totalorder %v753_v39, 1  ;;  %vm2414_vm13 = vcmp.eq.s32.totalorder %v753_v39, 2 }
 0x2d6   : > { %v3183_v44 = vsel %vm2414_vm13, %v6286_v32, 0.0 }
 0x2d7   : > { %v3952_v51 = vsel %vm2158_vm12, %v6292_v23, %v3183_v44 }
 0x2d8   : > { %v4208_v5 = vadd.f32 %v3952_v51, %v8194_v46  ;;  %v8201_v46 = vld [vmem:[#allocation47_spill] sm:$0xff] }
 0x2d9   : > { %4894 = vset.pattern.permute.xlu2 %v5142_v3 }
 0x2da   : > { %4895 = vset.pattern.permute.xlu1 %v5164_v8  ;;  %4465 = vst.msk [vmem:[%s6043_s13 + $0x288] sm:$0xff] %vm4383_vm1, %v4208_v5 }
 0x2db   : > { %v777_v49 = vpop.permute.xlu2 %776 }
 0x2dc   : > { %vm2162_vm10 = vcmp.eq.s32.totalorder %v777_v49, 1  ;;  %vm2418_vm11 = vcmp.eq.s32.totalorder %v777_v49, 2 }
 0x2dd   : > { %v3187_v60 = vsel %vm2418_vm11, %v6286_v32, 0.0 }
 0x2de   : > { %v3956_v28 = vsel %vm2162_vm10, %v6292_v23, %v3187_v60 }
 0x2df   : > { %v4212_v59 = vadd.f32 %v3956_v28, %v8193_v12  ;;  %v8200_v12 = vld [vmem:[#allocation44_spill] sm:$0xff] }
 0x2e1   : > { %868 = vperm.xlu2 %4894, %v6513_v42   ;;  %4469 = vst.msk [vmem:[%s6043_s13 + $0x2a8] sm:$0xff] %vm4383_vm1, %v4212_v59 }
 0x2e2   : > { %874 = vperm.xlu1 %4895, %v6513_v42  }
 0x2e4   : > { %v771_v53 = vpop.permute.xlu1 %770 }
 0x2e5   : > { %vm2161_vm0 = vcmp.eq.s32.totalorder %v771_v53, 1  ;;  %vm2417_vm2 = vcmp.eq.s32.totalorder %v771_v53, 2 }
 0x2e6   : > { %v3186_v63 = vsel %vm2417_vm2, %v6286_v32, 0.0 }
 0x2e7   : > { %v3955_v22 = vsel %vm2161_vm0, %v6292_v23, %v3186_v63 }
 0x2e8   : > { %v4211_v20 = vadd.f32 %v3955_v22, %v8196_v14  ;;  %v6636_v14 = vperm.slane %v6343_v61, 6 }
 0x2e9   : > { %4896 = vset.pattern.permute.xlu2 %v5171_v9 }
 0x2ea   : > { %4897 = vset.pattern.permute.xlu1 %v5132_v1  ;;  %4468 = vst.msk [vmem:[%s6043_s13 + $0x2a0] sm:$0xff] %vm4383_vm1, %v4211_v20  ;;  %v8203_v20 = vld [vmem:[#allocation49_spill] sm:$0xff] }
 0x2eb   : > { %v789_v54 = vpop.permute.xlu2 %788 }
 0x2ec   : > { %vm2164_vm14 = vcmp.eq.s32.totalorder %v789_v54, 1  ;;  %vm2420_vm15 = vcmp.eq.s32.totalorder %v789_v54, 2 }
 0x2ed   : > { %v3189_v30 = vsel %vm2420_vm15, %v6286_v32, 0.0 }
 0x2ee   : > { %v3958_v0 = vsel %vm2164_vm14, %v6292_v23, %v3189_v30 }
 0x2ef   : > { %v4214_v31 = vadd.f32 %v3958_v0, %v8195_v45  ;;  %v8202_v45 = vld [vmem:[#allocation46_spill] sm:$0xff] }
 0x2f1   : > { %880 = vperm.xlu2 %4896, %v6513_v42   ;;  %4471 = vst.msk [vmem:[%s6043_s13 + $0x2b8] sm:$0xff] %vm4383_vm1, %v4214_v31 }
 0x2f2   : > { %893 = vperm.xlu1 %4897, %v6589_v56  }
 0x2f4   : > { %v783_v55 = vpop.permute.xlu1 %782 }
 0x2f5   : > { %vm2163_vm5 = vcmp.eq.s32.totalorder %v783_v55, 1  ;;  %vm2419_vm6 = vcmp.eq.s32.totalorder %v783_v55, 2 }
 0x2f6   : > { %v3188_v47 = vsel %vm2419_vm6, %v6286_v32, 0.0 }
 0x2f7   : > { %v3957_v34 = vsel %vm2163_vm5, %v6292_v23, %v3188_v47 }
 0x2f8   : > { %v4213_v27 = vadd.f32 %v3957_v34, %v8198_v16 }
 0x2f9   : > { %4898 = vset.pattern.permute.xlu2 %v5181_v11 }
 0x2fa   : > { %4899 = vset.pattern.permute.xlu1 %v5138_v2  ;;  %4470 = vst.msk [vmem:[%s6043_s13 + $0x2b0] sm:$0xff] %vm4383_vm1, %v4213_v27  ;;  %v8205_v27 = vld [vmem:[#allocation51_spill] sm:$0xff] }
 0x2fb   : > { %v808_v48 = vpop.permute.xlu2 %807 }
 0x2fc   : > { %vm2167_vm3 = vcmp.eq.s32.totalorder %v808_v48, 1  ;;  %vm2423_vm4 = vcmp.eq.s32.totalorder %v808_v48, 2 }
 0x2fd   : > { %v3192_v36 = vsel %vm2423_vm4, %v6286_v32, 0.0 }
 0x2fe   : > { %v3961_v33 = vsel %vm2167_vm3, %v6292_v23, %v3192_v36 }
 0x2ff   : > { %v4217_v19 = vadd.f32 %v3961_v33, %v8197_v4 }
 0x301   : > { %899 = vperm.xlu2 %4898, %v6589_v56   ;;  %4474 = vst.msk [vmem:[%s6043_s13 + $0x2d0] sm:$0xff] %vm4383_vm1, %v4217_v19  ;;  %v8204_v19 = vld [vmem:[#allocation48_spill] sm:$0xff] }
 0x302   : > { %905 = vperm.xlu1 %4899, %v6589_v56  }
 0x304   : > { %v802_v49 = vpop.permute.xlu1 %801 }
 0x305   : > { %vm2166_vm9 = vcmp.eq.s32.totalorder %v802_v49, 1  ;;  %vm2422_vm10 = vcmp.eq.s32.totalorder %v802_v49, 2 }
 0x306   : > { %v3191_v60 = vsel %vm2422_vm10, %v6286_v32, 0.0 }
 0x307   : > { %v3960_v28 = vsel %vm2166_vm9, %v6292_v23, %v3191_v60 }
 0x308   : > { %v4216_v59 = vadd.f32 %v3960_v28, %v8200_v12 }
 0x309   : > { %4900 = vset.pattern.permute.xlu2 %v5161_v7 }
 0x30a   : > { %4901 = vset.pattern.permute.xlu1 %v5164_v8  ;;  %4473 = vst.msk [vmem:[%s6043_s13 + $0x2c8] sm:$0xff] %vm4383_vm1, %v4216_v59  ;;  %v8207_v59 = vld [vmem:[#allocation53_spill] sm:$0xff] }
 0x30b   : > { %v820_v58 = vpop.permute.xlu2 %819 }
 0x30c   : > { %vm2169_vm7 = vcmp.eq.s32.totalorder %v820_v58, 1  ;;  %vm2425_vm8 = vcmp.eq.s32.totalorder %v820_v58, 2 }
 0x30d   : > { %v3194_v37 = vsel %vm2425_vm8, %v6286_v32, 0.0 }
 0x30e   : > { %v3963_v57 = vsel %vm2169_vm7, %v6292_v23, %v3194_v37 }
 0x30f   : > { %v4219_v41 = vadd.f32 %v3963_v57, %v8199_v21 }
 0x311   : > { %911 = vperm.xlu2 %4900, %v6589_v56   ;;  %4476 = vst.msk [vmem:[%s6043_s13 + $0x2e0] sm:$0xff] %vm4383_vm1, %v4219_v41  ;;  %v8206_v41 = vld [vmem:[#allocation50_spill] sm:$0xff] }
 0x312   : > { %923 = vperm.xlu1 %4901, %v6589_v56  }
 0x314   : > { %v814_v54 = vpop.permute.xlu1 %813 }
 0x315   : > { %vm2168_vm13 = vcmp.eq.s32.totalorder %v814_v54, 1  ;;  %vm2424_vm14 = vcmp.eq.s32.totalorder %v814_v54, 2 }
 0x316   : > { %v3193_v30 = vsel %vm2424_vm14, %v6286_v32, 0.0 }
 0x317   : > { %v3962_v0 = vsel %vm2168_vm13, %v6292_v23, %v3193_v30 }
 0x318   : > { %v4218_v31 = vadd.f32 %v3962_v0, %v8202_v45 }
 0x319   : > { %4902 = vset.pattern.permute.xlu2 %v5171_v9 }
 0x31a   : > { %4903 = vset.pattern.permute.xlu1 %v5174_v10  ;;  %4475 = vst.msk [vmem:[%s6043_s13 + $0x2d8] sm:$0xff] %vm4383_vm1, %v4218_v31  ;;  %v6681_v31 = vperm.slane %v6343_v61, 7 }
 0x31b   : > { %v838_v39 = vpop.permute.xlu2 %837 }
 0x31c   : > { %vm2172_vm11 = vcmp.eq.s32.totalorder %v838_v39, 1  ;;  %vm2428_vm12 = vcmp.eq.s32.totalorder %v838_v39, 2 }
 0x31d   : > { %v3197_v44 = vsel %vm2428_vm12, %v6286_v32, 0.0 }
 0x31e   : > { %v3966_v51 = vsel %vm2172_vm11, %v6292_v23, %v3197_v44 }
 0x31f   : > { %v4222_v5 = vadd.f32 %v3966_v51, %v8201_v46 }
 0x321   : > { %929 = vperm.xlu2 %4902, %v6589_v56   ;;  %4479 = vst.msk [vmem:[%s6043_s13 + $0x2f8] sm:$0xff] %vm4383_vm1, %v4222_v5  ;;  %v8208_v5 = vld [vmem:[#allocation52_spill] sm:$0xff] }
 0x322   : > { %935 = vperm.xlu1 %4903, %v6589_v56  }
 0x324   : > { %v832_v36 = vpop.permute.xlu1 %831 }
 0x325   : > { %vm2171_vm2 = vcmp.eq.s32.totalorder %v832_v36, 1  ;;  %vm2427_vm3 = vcmp.eq.s32.totalorder %v832_v36, 2  ;;  %v8210_v36 = vld [vmem:[#allocation54_spill] sm:$0xff] }
 0x326   : > { %v3196_v33 = vsel %vm2427_vm3, %v6286_v32, 0.0 }
 0x327   : > { %v3965_v4 = vsel %vm2171_vm2, %v6292_v23, %v3196_v33 }
 0x328   : > { %v4221_v55 = vadd.f32 %v3965_v4, %v8204_v19 }
 0x329   : > { %4904 = vset.pattern.permute.xlu2 %v5132_v1 }
 0x32a   : > { %4905 = vset.pattern.permute.xlu1 %v5138_v2  ;;  %4478 = vst.msk [vmem:[%s6043_s13 + $0x2f0] sm:$0xff] %vm4383_vm1, %v4221_v55  ;;  %v8211_v55 = vld [vmem:[#allocation57_spill] sm:$0xff] }
 0x32b   : > { %v851_v53 = vpop.permute.xlu2 %850 }
 0x32c   : > { %vm2174_vm15 = vcmp.eq.s32.totalorder %v851_v53, 1  ;;  %vm2430_vm0 = vcmp.eq.s32.totalorder %v851_v53, 2  ;;  %v8209_v53 = vld [vmem:[#allocation55_spill] sm:$0xff] }
 0x32d   : > { %v3199_v63 = vsel %vm2430_vm0, %v6286_v32, 0.0 }
 0x32e   : > { %v3968_v22 = vsel %vm2174_vm15, %v6292_v23, %v3199_v63 }
 0x32f   : > { %v4224_v48 = vadd.f32 %v3968_v22, %v8203_v20 }
 0x331   : > { %942 = vperm.xlu2 %4904, %v6636_v14   ;;  %4481 = vst.msk [vmem:[%s6043_s13 + $0x308] sm:$0xff] %vm4383_vm1, %v4224_v48 }
 0x332   : > { %954 = vperm.xlu1 %4905, %v6636_v14  }
 0x334   : > { %v845_v37 = vpop.permute.xlu1 %844 }
 0x335   : > { %vm2173_vm6 = vcmp.eq.s32.totalorder %v845_v37, 1  ;;  %vm2429_vm7 = vcmp.eq.s32.totalorder %v845_v37, 2 }
 0x336   : > { %v3198_v57 = vsel %vm2429_vm7, %v6286_v32, 0.0 }
 0x337   : > { %v3967_v21 = vsel %vm2173_vm6, %v6292_v23, %v3198_v57 }
 0x338   : > { %v4223_v49 = vadd.f32 %v3967_v21, %v8206_v41 }
 0x339   : > { %4906 = vset.pattern.permute.xlu2 %v5161_v7 }
 0x33a   : > { %4907 = vset.pattern.permute.xlu1 %v5142_v3  ;;  %4480 = vst.msk [vmem:[%s6043_s13 + $0x300] sm:$0xff] %vm4383_vm1, %v4223_v49  ;;  %v8213_v49 = vld [vmem:[#allocation59_spill] sm:$0xff] }
 0x33b   : > { %v869_v47 = vpop.permute.xlu2 %868 }
 0x33c   : > { %vm2177_vm4 = vcmp.eq.s32.totalorder %v869_v47, 1  ;;  %vm2433_vm5 = vcmp.eq.s32.totalorder %v869_v47, 2 }
 0x33d   : > { %v3202_v34 = vsel %vm2433_vm5, %v6286_v32, 0.0 }
 0x33e   : > { %v3971_v16 = vsel %vm2177_vm4, %v6292_v23, %v3202_v34 }
 0x33f   : > { %v4227_v58 = vadd.f32 %v3971_v16, %v8205_v27 }
 0x341   : > { %960 = vperm.xlu2 %4906, %v6636_v14   ;;  %4484 = vst.msk [vmem:[%s6043_s13 + $0x320] sm:$0xff] %vm4383_vm1, %v4227_v58  ;;  %v8212_v58 = vld [vmem:[#allocation56_spill] sm:$0xff] }
 0x342   : > { %966 = vperm.xlu1 %4907, %v6636_v14  }
 0x344   : > { %v863_v44 = vpop.permute.xlu1 %862 }
 0x345   : > { %vm2176_vm10 = vcmp.eq.s32.totalorder %v863_v44, 1  ;;  %vm2432_vm11 = vcmp.eq.s32.totalorder %v863_v44, 2 }
 0x346   : > { %v3201_v51 = vsel %vm2432_vm11, %v6286_v32, 0.0 }
 0x347   : > { %v3970_v46 = vsel %vm2176_vm10, %v6292_v23, %v3201_v51 }
 0x348   : > { %v4226_v54 = vadd.f32 %v3970_v46, %v8208_v5 }
 0x349   : > { %4908 = vset.pattern.permute.xlu2 %v5164_v8 }
 0x34a   : > { %4909 = vset.pattern.permute.xlu1 %v5174_v10  ;;  %4483 = vst.msk [vmem:[%s6043_s13 + $0x318] sm:$0xff] %vm4383_vm1, %v4226_v54  ;;  %v8215_v54 = vld [vmem:[#allocation61_spill] sm:$0xff] }
 0x34b   : > { %v881_v60 = vpop.permute.xlu2 %880 }
 0x34c   : > { %vm2179_vm8 = vcmp.eq.s32.totalorder %v881_v60, 1  ;;  %vm2435_vm9 = vcmp.eq.s32.totalorder %v881_v60, 2 }
 0x34d   : > { %v3204_v28 = vsel %vm2435_vm9, %v6286_v32, 0.0 }
 0x34e   : > { %v3973_v12 = vsel %vm2179_vm8, %v6292_v23, %v3204_v28 }
 0x34f   : > { %v4229_v39 = vadd.f32 %v3973_v12, %v8207_v59  ;;  %v6719_v12 = vld [vmem:[%s7932_s2 + $0x1] ss:$0 sm:$0xff] }
 0x351   : > { %972 = vperm.xlu2 %4908, %v6636_v14   ;;  %4486 = vst.msk [vmem:[%s6043_s13 + $0x330] sm:$0xff] %vm4383_vm1, %v4229_v39  ;;  %v8214_v39 = vld [vmem:[#allocation58_spill] sm:$0xff] }
 0x352   : > { %984 = vperm.xlu1 %4909, %v6636_v14  }
 0x354   : > { %v875_v22 = vpop.permute.xlu1 %874 }
 0x355   : > { %vm2178_vm14 = vcmp.eq.s32.totalorder %v875_v22, 1  ;;  %vm2434_vm15 = vcmp.eq.s32.totalorder %v875_v22, 2 }
 0x356   : > { %v3203_v20 = vsel %vm2434_vm15, %v6286_v32, 0.0 }
 0x357   : > { %v3972_v48 = vsel %vm2178_vm14, %v6292_v23, %v3203_v20  ;;  %v6745_v20 = vunpack.c.2.s8 %v6340_v18 }
 0x358   : > { %v4228_v33 = vadd.f32 %v3972_v48, %v8210_v36 }
 0x359   : > { %4910 = vset.pattern.permute.xlu2 %v5132_v1  ;;  %v6751_v36 = vperm.slane %v6745_v20, 0 }
 0x35a   : > { %4911 = vset.pattern.permute.xlu1 %v5181_v11  ;;  %4485 = vst.msk [vmem:[%s6043_s13 + $0x328] sm:$0xff] %vm4383_vm1, %v4228_v33 }
 0x35b   : > { %v900_v30 = vpop.permute.xlu2 %899 }
 0x35c   : > { %vm2182_vm12 = vcmp.eq.s32.totalorder %v900_v30, 1  ;;  %vm2438_vm13 = vcmp.eq.s32.totalorder %v900_v30, 2 }
 0x35d   : > { %v3207_v0 = vsel %vm2438_vm13, %v6286_v32, 0.0 }
 0x35e   : > { %v3976_v45 = vsel %vm2182_vm12, %v6292_v23, %v3207_v0 }
 0x35f   : > { %v4232_v63 = vadd.f32 %v3976_v45, %v8209_v53 }
 0x361   : > { %991 = vperm.xlu2 %4910, %v6681_v31   ;;  %4489 = vst.msk [vmem:[%s6043_s13 + $0x348] sm:$0xff] %vm4383_vm1, %v4232_v63  ;;  %v8216_v63 = vld [vmem:[#allocation60_spill] sm:$0xff] }
 0x362   : > { %997 = vperm.xlu1 %4911, %v6681_v31  }
 0x364   : > { %v894_v34 = vpop.permute.xlu1 %893 }
 0x365   : > { %vm2181_vm3 = vcmp.eq.s32.totalorder %v894_v34, 1  ;;  %vm2437_vm4 = vcmp.eq.s32.totalorder %v894_v34, 2  ;;  %v8218_v34 = vld [vmem:[#allocation62_spill] sm:$0xff] }
 0x366   : > { %v3206_v16 = vsel %vm2437_vm4, %v6286_v32, 0.0 }
 0x367   : > { %v3975_v27 = vsel %vm2181_vm3, %v6292_v23, %v3206_v16 }
 0x368   : > { %v4231_v37 = vadd.f32 %v3975_v27, %v8212_v58  ;;  %v6766_v27 = vperm.slane %v6745_v20, 1 }
 0x369   : > { %4912 = vset.pattern.permute.xlu2 %v5138_v2 }
 0x36a   : > { %4913 = vset.pattern.permute.xlu1 %v5142_v3  ;;  %4488 = vst.msk [vmem:[%s6043_s13 + $0x340] sm:$0xff] %vm4383_vm1, %v4231_v37  ;;  %1101 = vperm.xlu0 %4828, %v6766_v27  }
 0x36b   : > { %v912_v61 = vpop.permute.xlu2 %911 }
 0x36c   : > { %vm2184_vm0 = vcmp.eq.s32.totalorder %v912_v61, 1  ;;  %vm2440_vm2 = vcmp.eq.s32.totalorder %v912_v61, 2 }
 0x36d   : > { %v3209_v4 = vsel %vm2440_vm2, %v6286_v32, 0.0 }
 0x36e   : > { %v3978_v19 = vsel %vm2184_vm0, %v6292_v23, %v3209_v4  ;;  %v8217_v4 = vld [vmem:[#allocation63_spill] sm:$0xff] }
 0x36f   : > { %v4234_v47 = vadd.f32 %v3978_v19, %v8211_v55 }
 0x371   : > { %1003 = vperm.xlu2 %4912, %v6681_v31   ;;  %4491 = vst.msk [vmem:[%s6043_s13 + $0x358] sm:$0xff] %vm4383_vm1, %v4234_v47 }
 0x372   : > { %1015 = vperm.xlu1 %4913, %v6681_v31  }
 0x374   : > { %v906_v28 = vpop.permute.xlu1 %905 }
 0x375   : > { %vm2183_vm7 = vcmp.eq.s32.totalorder %v906_v28, 1  ;;  %vm2439_vm8 = vcmp.eq.s32.totalorder %v906_v28, 2 }
 0x379   : > { %4914 = vset.pattern.permute.xlu2 %v5164_v8 }
 0x37a   : > { %4915 = vset.pattern.permute.xlu1 %v5171_v9 }
 0x37b   : > { %v930_v57 = vpop.permute.xlu2 %929 }
 0x37c   : > { %vm2187_vm5 = vcmp.eq.s32.totalorder %v930_v57, 1  ;;  %vm2443_vm6 = vcmp.eq.s32.totalorder %v930_v57, 2 }
 0x37d   : > { %v3212_v21 = vsel %vm2443_vm6, %v6286_v32, 0.0  ;;  %v3208_v32 = vsel %vm2439_vm8, %v6719_v12, 0.0 }
 0x37e   : > { %v3981_v41 = vsel %vm2187_vm5, %v6292_v23, %v3212_v21  ;;  %v6725_v23 = vld [vmem:[%s7932_s2] ss:$0 sm:$0xff]  ;;  %v8219_v21 = vld [vmem:[#allocation65_spill] sm:$0xff] }
 0x37f   : > { %v4237_v60 = vadd.f32 %v3981_v41, %v8213_v49  ;;  %v3977_v59 = vsel %vm2183_vm7, %v6725_v23, %v3208_v32  ;;  %v8220_v32 = vld [vmem:[#allocation64_spill] sm:$0xff] }
 0x380   : > { %v4233_v44 = vadd.f32 %v3977_v59, %v8214_v39 }
 0x381   : > { %1021 = vperm.xlu2 %4914, %v6681_v31   ;;  %4494 = vst.msk [vmem:[%s6043_s13 + $0x370] sm:$0xff] %vm4383_vm1, %v4237_v60 }
 0x382   : > { %4490 = vst.msk [vmem:[%s6043_s13 + $0x350] sm:$0xff] %vm4383_vm1, %v4233_v44  ;;  %1027 = vperm.xlu1 %4915, %v6681_v31  }
 0x384   : > { %v924_v0 = vpop.permute.xlu1 %923 }
 0x385   : > { %vm2186_vm11 = vcmp.eq.s32.totalorder %v924_v0, 1  ;;  %vm2442_vm12 = vcmp.eq.s32.totalorder %v924_v0, 2 }
 0x386   : > { %v3211_v45 = vsel %vm2442_vm12, %v6719_v12, 0.0 }
 0x387   : > { %v3980_v53 = vsel %vm2186_vm11, %v6725_v23, %v3211_v45  ;;  %v8222_v45 = vld [vmem:[#allocation66_spill] sm:$0xff] }
 0x388   : > { %v4236_v22 = vadd.f32 %v3980_v53, %v8216_v63 }
 0x389   : > { %4916 = vset.pattern.permute.xlu2 %v5174_v10 }
 0x38a   : > { %4917 = vset.pattern.permute.xlu1 %v5181_v11  ;;  %4493 = vst.msk [vmem:[%s6043_s13 + $0x368] sm:$0xff] %vm4383_vm1, %v4236_v22 }
 0x38b   : > { %v943_v51 = vpop.permute.xlu2 %942 }
 0x38c   : > { %vm2189_vm9 = vcmp.eq.s32.totalorder %v943_v51, 1  ;;  %vm2445_vm10 = vcmp.eq.s32.totalorder %v943_v51, 2 }
 0x38d   : > { %v3214_v46 = vsel %vm2445_vm10, %v6719_v12, 0.0 }
 0x38e   : > { %v3983_v5 = vsel %vm2189_vm9, %v6725_v23, %v3214_v46  ;;  %v8221_v46 = vld [vmem:[#allocation67_spill] sm:$0xff] }
 0x38f   : > { %v4239_v30 = vadd.f32 %v3983_v5, %v8215_v54 }
 0x391   : > { %1033 = vperm.xlu2 %4916, %v6681_v31   ;;  %4496 = vst.msk [vmem:[%s6043_s13 + $0x380] sm:$0xff] %vm4383_vm1, %v4239_v30 }
 0x392   : > { %1046 = vperm.xlu1 %4917, %v6751_v36  }
 0x394   : > { %v936_v18 = vpop.permute.xlu1 %935 }
 0x395   : > { %vm2188_vm15 = vcmp.eq.s32.totalorder %v936_v18, 1  ;;  %vm2444_vm0 = vcmp.eq.s32.totalorder %v936_v18, 2 }
 0x396   : > { %v3213_v55 = vsel %vm2444_vm0, %v6719_v12, 0.0 }
 0x397   : > { %v3982_v47 = vsel %vm2188_vm15, %v6725_v23, %v3213_v55  ;;  %v8224_v55 = vld [vmem:[#allocation68_spill] sm:$0xff] }
 0x398   : > { %v4238_v16 = vadd.f32 %v3982_v47, %v8218_v34 }
 0x399   : > { %4918 = vset.pattern.permute.xlu2 %v5138_v2 }
 0x39a   : > { %4919 = vset.pattern.permute.xlu1 %v5161_v7  ;;  %4495 = vst.msk [vmem:[%s6043_s13 + $0x378] sm:$0xff] %vm4383_vm1, %v4238_v16 }
 0x39b   : > { %v961_v48 = vpop.permute.xlu2 %960 }
 0x39c   : > { %vm2192_vm13 = vcmp.eq.s32.totalorder %v961_v48, 1  ;;  %vm2448_vm14 = vcmp.eq.s32.totalorder %v961_v48, 2 }
 0x39d   : > { %v3217_v33 = vsel %vm2448_vm14, %v6719_v12, 0.0 }
 0x39e   : > { %v3986_v61 = vsel %vm2192_vm13, %v6725_v23, %v3217_v33  ;;  %v8223_v33 = vld [vmem:[#allocation69_spill] sm:$0xff] }
 0x39f   : > { %v4242_v19 = vadd.f32 %v3986_v61, %v8217_v4 }
 0x3a1   : > { %1052 = vperm.xlu2 %4918, %v6751_v36   ;;  %4499 = vst.msk [vmem:[%s6043_s13 + $0x398] sm:$0xff] %vm4383_vm1, %v4242_v19 }
 0x3a2   : > { %1058 = vperm.xlu1 %4919, %v6751_v36  }
 0x3a4   : > { %v955_v49 = vpop.permute.xlu1 %954 }
 0x3a5   : > { %vm2191_vm4 = vcmp.eq.s32.totalorder %v955_v49, 1  ;;  %vm2447_vm5 = vcmp.eq.s32.totalorder %v955_v49, 2 }
 0x3a6   : > { %v3216_v60 = vsel %vm2447_vm5, %v6719_v12, 0.0 }
 0x3a7   : > { %v3985_v28 = vsel %vm2191_vm4, %v6725_v23, %v3216_v60  ;;  %v8226_v60 = vld [vmem:[#allocation70_spill] sm:$0xff] }
 0x3a8   : > { %v4241_v59 = vadd.f32 %v3985_v28, %v8220_v32 }
 0x3a9   : > { %4920 = vset.pattern.permute.xlu2 %v5142_v3 }
 0x3aa   : > { %4921 = vset.pattern.permute.xlu1 %v5171_v9  ;;  %4498 = vst.msk [vmem:[%s6043_s13 + $0x390] sm:$0xff] %vm4383_vm1, %v4241_v59 }
 0x3ab   : > { %v973_v58 = vpop.permute.xlu2 %972 }
 0x3ac   : > { %vm2194_vm2 = vcmp.eq.s32.totalorder %v973_v58, 1  ;;  %vm2450_vm3 = vcmp.eq.s32.totalorder %v973_v58, 2 }
 0x3ad   : > { %v3219_v37 = vsel %vm2450_vm3, %v6719_v12, 0.0 }
 0x3ae   : > { %v3988_v57 = vsel %vm2194_vm2, %v6725_v23, %v3219_v37  ;;  %v8225_v37 = vld [vmem:[#allocation71_spill] sm:$0xff] }
 0x3af   : > { %v4244_v41 = vadd.f32 %v3988_v57, %v8219_v21 }
 0x3b1   : > { %1064 = vperm.xlu2 %4920, %v6751_v36   ;;  %4501 = vst.msk [vmem:[%s6043_s13 + $0x3a8] sm:$0xff] %vm4383_vm1, %v4244_v41 }
 0x3b2   : > { %1076 = vperm.xlu1 %4921, %v6751_v36  }
 0x3b4   : > { %v967_v54 = vpop.permute.xlu1 %966 }
 0x3b5   : > { %vm2193_vm8 = vcmp.eq.s32.totalorder %v967_v54, 1  ;;  %vm2449_vm9 = vcmp.eq.s32.totalorder %v967_v54, 2 }
 0x3b6   : > { %v3218_v30 = vsel %vm2449_vm9, %v6719_v12, 0.0 }
 0x3b7   : > { %v3987_v0 = vsel %vm2193_vm8, %v6725_v23, %v3218_v30  ;;  %v8228_v30 = vld [vmem:[#allocation72_spill] sm:$0xff] }
 0x3b8   : > { %v4243_v53 = vadd.f32 %v3987_v0, %v8222_v45 }
 0x3b9   : > { %4922 = vset.pattern.permute.xlu2 %v5174_v10 }
 0x3ba   : > { %4923 = vset.pattern.permute.xlu1 %v5132_v1  ;;  %4500 = vst.msk [vmem:[%s6043_s13 + $0x3a0] sm:$0xff] %vm4383_vm1, %v4243_v53  ;;  %v6842_v53 = vperm.slane %v6745_v20, 2 }
 0x3bb   : > { %v992_v39 = vpop.permute.xlu2 %991 }
 0x3bc   : > { %vm2197_vm6 = vcmp.eq.s32.totalorder %v992_v39, 1  ;;  %vm2453_vm7 = vcmp.eq.s32.totalorder %v992_v39, 2 }
 0x3bd   : > { %v3222_v44 = vsel %vm2453_vm7, %v6719_v12, 0.0 }
 0x3be   : > { %v3991_v51 = vsel %vm2197_vm6, %v6725_v23, %v3222_v44  ;;  %v8227_v44 = vld [vmem:[#allocation73_spill] sm:$0xff] }
 0x3bf   : > { %v4247_v5 = vadd.f32 %v3991_v51, %v8221_v46 }
 0x3c1   : > { %1082 = vperm.xlu2 %4922, %v6751_v36   ;;  %4504 = vst.msk [vmem:[%s6043_s13 + $0x3c0] sm:$0xff] %vm4383_vm1, %v4247_v5 }
 0x3c2   : > { %1089 = vperm.xlu1 %4923, %v6766_v27  }
 0x3c4   : > { %v985_v4 = vpop.permute.xlu1 %984 }
 0x3c5   : > { %vm2196_vm12 = vcmp.eq.s32.totalorder %v985_v4, 1  ;;  %vm2452_vm13 = vcmp.eq.s32.totalorder %v985_v4, 2 }
 0x3c6   : > { %v3221_v19 = vsel %vm2452_vm13, %v6719_v12, 0.0 }
 0x3c7   : > { %v3990_v18 = vsel %vm2196_vm12, %v6725_v23, %v3221_v19 }
 0x3c8   : > { %v4246_v47 = vadd.f32 %v3990_v18, %v8224_v55  ;;  %v8230_v18 = vld [vmem:[#allocation74_spill] sm:$0xff] }
 0x3c9   : > { %4924 = vset.pattern.permute.xlu2 %v5181_v11 }
 0x3ca   : > { %4925 = vset.pattern.permute.xlu1 %v5161_v7  ;;  %4503 = vst.msk [vmem:[%s6043_s13 + $0x3b8] sm:$0xff] %vm4383_vm1, %v4246_v47 }
 0x3cb   : > { %v1004_v63 = vpop.permute.xlu2 %1003 }
 0x3cc   : > { %vm2199_vm10 = vcmp.eq.s32.totalorder %v1004_v63, 1  ;;  %vm2455_vm11 = vcmp.eq.s32.totalorder %v1004_v63, 2 }
 0x3cd   : > { %v3224_v22 = vsel %vm2455_vm11, %v6719_v12, 0.0 }
 0x3ce   : > { %v3993_v48 = vsel %vm2199_vm10, %v6725_v23, %v3224_v22 }
 0x3cf   : > { %v4249_v61 = vadd.f32 %v3993_v48, %v8223_v33  ;;  %v8229_v48 = vld [vmem:[#allocation75_spill] sm:$0xff] }
 0x3d1   : > { %1095 = vperm.xlu2 %4924, %v6766_v27   ;;  %4506 = vst.msk [vmem:[%s6043_s13 + $0x3d0] sm:$0xff] %vm4383_vm1, %v4249_v61 }
 0x3d2   : > { %1107 = vperm.xlu1 %4925, %v6766_v27  }
 0x3d4   : > { %v998_v21 = vpop.permute.xlu1 %997 }
 0x3d5   : > { %vm2198_vm0 = vcmp.eq.s32.totalorder %v998_v21, 1  ;;  %vm2454_vm2 = vcmp.eq.s32.totalorder %v998_v21, 2 }
 0x3d6   : > { %v3223_v41 = vsel %vm2454_vm2, %v6719_v12, 0.0 }
 0x3d7   : > { %v3992_v49 = vsel %vm2198_vm0, %v6725_v23, %v3223_v41 }
 0x3d8   : > { %v4248_v28 = vadd.f32 %v3992_v49, %v8226_v60  ;;  %v8232_v49 = vld [vmem:[#allocation76_spill] sm:$0xff] }
 0x3d9   : > { %4926 = vset.pattern.permute.xlu2 %v5142_v3 }
 0x3da   : > { %4927 = vset.pattern.permute.xlu1 %v5164_v8  ;;  %4505 = vst.msk [vmem:[%s6043_s13 + $0x3c8] sm:$0xff] %vm4383_vm1, %v4248_v28 }
 0x3db   : > { %v1022_v34 = vpop.permute.xlu2 %1021 }
 0x3dc   : > { %vm2202_vm14 = vcmp.eq.s32.totalorder %v1022_v34, 1  ;;  %vm2458_vm15 = vcmp.eq.s32.totalorder %v1022_v34, 2 }
 0x3dd   : > { %v3227_v16 = vsel %vm2458_vm15, %v6719_v12, 0.0 }
 0x3de   : > { %v3996_v58 = vsel %vm2202_vm14, %v6725_v23, %v3227_v16 }
 0x3df   : > { %v4252_v57 = vadd.f32 %v3996_v58, %v8225_v37  ;;  %v8231_v58 = vld [vmem:[#allocation77_spill] sm:$0xff] }
 0x3e1   : > { %1113 = vperm.xlu2 %4926, %v6766_v27   ;;  %4509 = vst.msk [vmem:[%s6043_s13 + $0x3e8] sm:$0xff] %vm4383_vm1, %v4252_v57 }
 0x3e2   : > { %1119 = vperm.xlu1 %4927, %v6766_v27  }
 0x3e4   : > { %v1016_v46 = vpop.permute.xlu1 %1015 }
 0x3e5   : > { %vm2201_vm5 = vcmp.eq.s32.totalorder %v1016_v46, 1  ;;  %vm2457_vm6 = vcmp.eq.s32.totalorder %v1016_v46, 2 }
 0x3e6   : > { %v3226_v5 = vsel %vm2457_vm6, %v6719_v12, 0.0 }
 0x3e7   : > { %v3995_v54 = vsel %vm2201_vm5, %v6725_v23, %v3226_v5 }
 0x3e8   : > { %v4251_v0 = vadd.f32 %v3995_v54, %v8228_v30  ;;  %v8234_v54 = vld [vmem:[#allocation78_spill] sm:$0xff] }
 0x3e9   : > { %4928 = vset.pattern.permute.xlu2 %v5171_v9 }
 0x3ea   : > { %4929 = vset.pattern.permute.xlu1 %v5132_v1  ;;  %4508 = vst.msk [vmem:[%s6043_s13 + $0x3e0] sm:$0xff] %vm4383_vm1, %v4251_v0 }
 0x3eb   : > { %v1034_v32 = vpop.permute.xlu2 %1033 }
 0x3ec   : > { %vm2204_vm3 = vcmp.eq.s32.totalorder %v1034_v32, 1  ;;  %vm2460_vm4 = vcmp.eq.s32.totalorder %v1034_v32, 2 }
 0x3ed   : > { %v3229_v59 = vsel %vm2460_vm4, %v6719_v12, 0.0 }
 0x3ee   : > { %v3998_v39 = vsel %vm2204_vm3, %v6725_v23, %v3229_v59 }
 0x3ef   : > { %v4254_v51 = vadd.f32 %v3998_v39, %v8227_v44  ;;  %v8233_v39 = vld [vmem:[#allocation79_spill] sm:$0xff] }
 0x3f1   : > { %1125 = vperm.xlu2 %4928, %v6766_v27   ;;  %4511 = vst.msk [vmem:[%s6043_s13 + $0x3f8] sm:$0xff] %vm4383_vm1, %v4254_v51 }
 0x3f2   : > { %1138 = vperm.xlu1 %4929, %v6842_v53  }
 0x3f4   : > { %v1028_v61 = vpop.permute.xlu1 %1027 }
 0x3f5   : > { %vm2203_vm9 = vcmp.eq.s32.totalorder %v1028_v61, 1  ;;  %vm2459_vm10 = vcmp.eq.s32.totalorder %v1028_v61, 2 }
 0x3f6   : > { %v3228_v4 = vsel %vm2459_vm10, %v6719_v12, 0.0 }
 0x3f7   : > { %v3997_v19 = vsel %vm2203_vm9, %v6725_v23, %v3228_v4 }
 0x3f8   : > { %v4253_v55 = vadd.f32 %v3997_v19, %v8230_v18  ;;  %v8236_v18 = vld [vmem:[#allocation80_spill] sm:$0xff] }
 0x3f9   : > { %4930 = vset.pattern.permute.xlu2 %v5181_v11 }
 0x3fa   : > { %4931 = vset.pattern.permute.xlu1 %v5138_v2  ;;  %4510 = vst.msk [vmem:[%s6043_s13 + $0x3f0] sm:$0xff] %vm4383_vm1, %v4253_v55 }
 0x3fb   : > { %v1053_v45 = vpop.permute.xlu2 %1052 }
 0x3fc   : > { %vm2207_vm7 = vcmp.eq.s32.totalorder %v1053_v45, 1  ;;  %vm2463_vm8 = vcmp.eq.s32.totalorder %v1053_v45, 2 }
 0x3fd   : > { %v3232_v63 = vsel %vm2463_vm8, %v6719_v12, 0.0 }
 0x3fe   : > { %v4001_v22 = vsel %vm2207_vm7, %v6725_v23, %v3232_v63 }
 0x3ff   : > { %v4257_v33 = vadd.f32 %v4001_v22, %v8229_v48  ;;  %v6889_v22 = vperm.slane %v6745_v20, 3  ;;  %v8235_v48 = vld [vmem:[#allocation81_spill] sm:$0xff] }
 0x401   : > { %1144 = vperm.xlu2 %4930, %v6842_v53   ;;  %4514 = vst.msk [vmem:[%s6043_s13 + $0x410] sm:$0xff] %vm4383_vm1, %v4257_v33 }
 0x402   : > { %1150 = vperm.xlu1 %4931, %v6842_v53  }
 0x404   : > { %v1047_v57 = vpop.permute.xlu1 %1046 }
 0x405   : > { %vm2206_vm13 = vcmp.eq.s32.totalorder %v1047_v57, 1  ;;  %vm2462_vm14 = vcmp.eq.s32.totalorder %v1047_v57, 2 }
 0x406   : > { %v3231_v21 = vsel %vm2462_vm14, %v6719_v12, 0.0 }
 0x407   : > { %v4000_v41 = vsel %vm2206_vm13, %v6725_v23, %v3231_v21 }
 0x408   : > { %v4256_v60 = vadd.f32 %v4000_v41, %v8232_v49  ;;  %v8238_v49 = vld [vmem:[#allocation82_spill] sm:$0xff] }
 0x409   : > { %4932 = vset.pattern.permute.xlu2 %v5161_v7 }
 0x40a   : > { %4933 = vset.pattern.permute.xlu1 %v5164_v8  ;;  %4513 = vst.msk [vmem:[%s6043_s13 + $0x408] sm:$0xff] %vm4383_vm1, %v4256_v60 }
 0x40b   : > { %v1065_v47 = vpop.permute.xlu2 %1064 }
 0x40c   : > { %vm2209_vm11 = vcmp.eq.s32.totalorder %v1065_v47, 1  ;;  %vm2465_vm12 = vcmp.eq.s32.totalorder %v1065_v47, 2 }
 0x40d   : > { %v3234_v34 = vsel %vm2465_vm12, %v6719_v12, 0.0 }
 0x40e   : > { %v4003_v16 = vsel %vm2209_vm11, %v6725_v23, %v3234_v34 }
 0x40f   : > { %v4259_v37 = vadd.f32 %v4003_v16, %v8231_v58  ;;  %v8237_v58 = vld [vmem:[#allocation83_spill] sm:$0xff] }
 0x411   : > { %1156 = vperm.xlu2 %4932, %v6842_v53   ;;  %4516 = vst.msk [vmem:[%s6043_s13 + $0x420] sm:$0xff] %vm4383_vm1, %v4259_v37 }
 0x412   : > { %1168 = vperm.xlu1 %4933, %v6842_v53  }
 0x414   : > { %v1059_v51 = vpop.permute.xlu1 %1058 }
 0x415   : > { %vm2208_vm2 = vcmp.eq.s32.totalorder %v1059_v51, 1  ;;  %vm2464_vm3 = vcmp.eq.s32.totalorder %v1059_v51, 2 }
 0x416   : > { %v3233_v46 = vsel %vm2464_vm3, %v6719_v12, 0.0 }
 0x417   : > { %v4002_v5 = vsel %vm2208_vm2, %v6725_v23, %v3233_v46 }
 0x418   : > { %v4258_v30 = vadd.f32 %v4002_v5, %v8234_v54  ;;  %v8240_v54 = vld [vmem:[#allocation84_spill] sm:$0xff] }
 0x419   : > { %4934 = vset.pattern.permute.xlu2 %v5171_v9 }
 0x41a   : > { %4935 = vset.pattern.permute.xlu1 %v5174_v10  ;;  %4515 = vst.msk [vmem:[%s6043_s13 + $0x418] sm:$0xff] %vm4383_vm1, %v4258_v30 }
 0x41b   : > { %v1083_v28 = vpop.permute.xlu2 %1082 }
 0x41c   : > { %vm2212_vm15 = vcmp.eq.s32.totalorder %v1083_v28, 1  ;;  %vm2468_vm0 = vcmp.eq.s32.totalorder %v1083_v28, 2 }
 0x41d   : > { %v3237_v32 = vsel %vm2468_vm0, %v6719_v12, 0.0 }
 0x41e   : > { %v4006_v59 = vsel %vm2212_vm15, %v6725_v23, %v3237_v32 }
 0x41f   : > { %v4262_v44 = vadd.f32 %v4006_v59, %v8233_v39  ;;  %v8239_v39 = vld [vmem:[#allocation85_spill] sm:$0xff] }
 0x421   : > { %1174 = vperm.xlu2 %4934, %v6842_v53   ;;  %4519 = vst.msk [vmem:[%s6043_s13 + $0x438] sm:$0xff] %vm4383_vm1, %v4262_v44 }
 0x422   : > { %1180 = vperm.xlu1 %4935, %v6842_v53  }
 0x424   : > { %v1077_v61 = vpop.permute.xlu1 %1076 }
 0x425   : > { %vm2211_vm6 = vcmp.eq.s32.totalorder %v1077_v61, 1  ;;  %vm2467_vm7 = vcmp.eq.s32.totalorder %v1077_v61, 2 }
 0x426   : > { %v3236_v4 = vsel %vm2467_vm7, %v6719_v12, 0.0 }
 0x427   : > { %v4005_v19 = vsel %vm2211_vm6, %v6725_v23, %v3236_v4 }
 0x428   : > { %v4261_v55 = vadd.f32 %v4005_v19, %v8236_v18 }
 0x429   : > { %4936 = vset.pattern.permute.xlu2 %v5132_v1 }
 0x42a   : > { %4937 = vset.pattern.permute.xlu1 %v5138_v2  ;;  %4518 = vst.msk [vmem:[%s6043_s13 + $0x430] sm:$0xff] %vm4383_vm1, %v4261_v55  ;;  %v8242_v55 = vld [vmem:[#allocation86_spill] sm:$0xff] }
 0x42b   : > { %v1096_v0 = vpop.permute.xlu2 %1095 }
 0x42c   : > { %vm2214_vm4 = vcmp.eq.s32.totalorder %v1096_v0, 1  ;;  %vm2470_vm5 = vcmp.eq.s32.totalorder %v1096_v0, 2 }
 0x42d   : > { %v3239_v45 = vsel %vm2470_vm5, %v6719_v12, 0.0 }
 0x42e   : > { %v4008_v63 = vsel %vm2214_vm4, %v6725_v23, %v3239_v45 }
 0x42f   : > { %v4264_v33 = vadd.f32 %v4008_v63, %v8235_v48  ;;  %v6934_v48 = vperm.slane %v6745_v20, 4 }
 0x431   : > { %1187 = vperm.xlu2 %4936, %v6889_v22   ;;  %4521 = vst.msk [vmem:[%s6043_s13 + $0x448] sm:$0xff] %vm4383_vm1, %v4264_v33  ;;  %v8241_v33 = vld [vmem:[#allocation87_spill] sm:$0xff] }
 0x432   : > { %1199 = vperm.xlu1 %4937, %v6889_v22  }
 0x434   : > { %v1090_v57 = vpop.permute.xlu1 %1089 }
 0x435   : > { %vm2213_vm10 = vcmp.eq.s32.totalorder %v1090_v57, 1  ;;  %vm2469_vm11 = vcmp.eq.s32.totalorder %v1090_v57, 2 }
 0x436   : > { %v3238_v21 = vsel %vm2469_vm11, %v6719_v12, 0.0 }
 0x437   : > { %v4007_v41 = vsel %vm2213_vm10, %v6725_v23, %v3238_v21 }
 0x438   : > { %v4263_v60 = vadd.f32 %v4007_v41, %v8238_v49 }
 0x439   : > { %4938 = vset.pattern.permute.xlu2 %v5161_v7 }
 0x43a   : > { %4939 = vset.pattern.permute.xlu1 %v5142_v3  ;;  %4520 = vst.msk [vmem:[%s6043_s13 + $0x440] sm:$0xff] %vm4383_vm1, %v4263_v60  ;;  %v8244_v60 = vld [vmem:[#allocation88_spill] sm:$0xff] }
 0x43b   : > { %v1114_v47 = vpop.permute.xlu2 %1113 }
 0x43c   : > { %vm2217_vm8 = vcmp.eq.s32.totalorder %v1114_v47, 1  ;;  %vm2473_vm9 = vcmp.eq.s32.totalorder %v1114_v47, 2 }
 0x43d   : > { %v3242_v34 = vsel %vm2473_vm9, %v6719_v12, 0.0 }
 0x43e   : > { %v4011_v16 = vsel %vm2217_vm8, %v6725_v23, %v3242_v34 }
 0x43f   : > { %v4267_v37 = vadd.f32 %v4011_v16, %v8237_v58 }
 0x441   : > { %1205 = vperm.xlu2 %4938, %v6889_v22   ;;  %4524 = vst.msk [vmem:[%s6043_s13 + $0x460] sm:$0xff] %vm4383_vm1, %v4267_v37  ;;  %v8243_v37 = vld [vmem:[#allocation89_spill] sm:$0xff] }
 0x442   : > { %1211 = vperm.xlu1 %4939, %v6889_v22  }
 0x444   : > { %v1108_v51 = vpop.permute.xlu1 %1107 }
 0x445   : > { %vm2216_vm14 = vcmp.eq.s32.totalorder %v1108_v51, 1  ;;  %vm2472_vm15 = vcmp.eq.s32.totalorder %v1108_v51, 2 }
 0x446   : > { %v3241_v46 = vsel %vm2472_vm15, %v6719_v12, 0.0 }
 0x447   : > { %v4010_v5 = vsel %vm2216_vm14, %v6725_v23, %v3241_v46 }
 0x448   : > { %v4266_v30 = vadd.f32 %v4010_v5, %v8240_v54 }
 0x449   : > { %4940 = vset.pattern.permute.xlu2 %v5164_v8 }
 0x44a   : > { %4941 = vset.pattern.permute.xlu1 %v5174_v10  ;;  %4523 = vst.msk [vmem:[%s6043_s13 + $0x458] sm:$0xff] %vm4383_vm1, %v4266_v30  ;;  %v8246_v30 = vld [vmem:[#allocation90_spill] sm:$0xff] }
 0x44b   : > { %v1126_v28 = vpop.permute.xlu2 %1125 }
 0x44c   : > { %vm2219_vm12 = vcmp.eq.s32.totalorder %v1126_v28, 1  ;;  %vm2475_vm13 = vcmp.eq.s32.totalorder %v1126_v28, 2 }
 0x44d   : > { %v3244_v32 = vsel %vm2475_vm13, %v6719_v12, 0.0 }
 0x44e   : > { %v4013_v59 = vsel %vm2219_vm12, %v6725_v23, %v3244_v32 }
 0x44f   : > { %v4269_v44 = vadd.f32 %v4013_v59, %v8239_v39 }
 0x451   : > { %1217 = vperm.xlu2 %4940, %v6889_v22   ;;  %4526 = vst.msk [vmem:[%s6043_s13 + $0x470] sm:$0xff] %vm4383_vm1, %v4269_v44  ;;  %v8245_v44 = vld [vmem:[#allocation91_spill] sm:$0xff] }
 0x452   : > { %1229 = vperm.xlu1 %4941, %v6889_v22  }
 0x454   : > { %v1120_v4 = vpop.permute.xlu1 %1119 }
 0x455   : > { %vm2218_vm3 = vcmp.eq.s32.totalorder %v1120_v4, 1  ;;  %vm2474_vm4 = vcmp.eq.s32.totalorder %v1120_v4, 2 }
 0x456   : > { %v3243_v19 = vsel %vm2474_vm4, %v6719_v12, 0.0 }
 0x457   : > { %v4012_v18 = vsel %vm2218_vm3, %v6725_v23, %v3243_v19 }
 0x458   : > { %v4268_v47 = vadd.f32 %v4012_v18, %v8242_v55 }
 0x459   : > { %4942 = vset.pattern.permute.xlu2 %v5132_v1 }
 0x45a   : > { %4943 = vset.pattern.permute.xlu1 %v5181_v11  ;;  %4525 = vst.msk [vmem:[%s6043_s13 + $0x468] sm:$0xff] %vm4383_vm1, %v4268_v47  ;;  %v8248_v47 = vld [vmem:[#allocation92_spill] sm:$0xff] }
 0x45b   : > { %v1145_v0 = vpop.permute.xlu2 %1144 }
 0x45c   : > { %vm2222_vm0 = vcmp.eq.s32.totalorder %v1145_v0, 1  ;;  %vm2478_vm2 = vcmp.eq.s32.totalorder %v1145_v0, 2 }
 0x45d   : > { %v3247_v45 = vsel %vm2478_vm2, %v6719_v12, 0.0 }
 0x45e   : > { %v4016_v63 = vsel %vm2222_vm0, %v6725_v23, %v3247_v45 }
 0x45f   : > { %v4272_v61 = vadd.f32 %v4016_v63, %v8241_v33 }
 0x461   : > { %1236 = vperm.xlu2 %4942, %v6934_v48   ;;  %4529 = vst.msk [vmem:[%s6043_s13 + $0x488] sm:$0xff] %vm4383_vm1, %v4272_v61  ;;  %v8247_v61 = vld [vmem:[#allocation93_spill] sm:$0xff] }
 0x462   : > { %1242 = vperm.xlu1 %4943, %v6934_v48  }
 0x464   : > { %v1139_v21 = vpop.permute.xlu1 %1138 }
 0x465   : > { %vm2221_vm7 = vcmp.eq.s32.totalorder %v1139_v21, 1  ;;  %vm2477_vm8 = vcmp.eq.s32.totalorder %v1139_v21, 2  ;;  %v8249_v21 = vld [vmem:[#allocation95_spill] sm:$0xff] }
 0x466   : > { %v3246_v41 = vsel %vm2477_vm8, %v6719_v12, 0.0 }
 0x467   : > { %v4015_v49 = vsel %vm2221_vm7, %v6725_v23, %v3246_v41 }
 0x468   : > { %v4271_v28 = vadd.f32 %v4015_v49, %v8244_v60 }
 0x469   : > { %4944 = vset.pattern.permute.xlu2 %v5138_v2 }
 0x46a   : > { %4945 = vset.pattern.permute.xlu1 %v5142_v3  ;;  %4528 = vst.msk [vmem:[%s6043_s13 + $0x480] sm:$0xff] %vm4383_vm1, %v4271_v28 }
 0x46b   : > { %v1157_v34 = vpop.permute.xlu2 %1156 }
 0x46c   : > { %vm2224_vm5 = vcmp.eq.s32.totalorder %v1157_v34, 1  ;;  %vm2480_vm6 = vcmp.eq.s32.totalorder %v1157_v34, 2 }
 0x46d   : > { %v3249_v16 = vsel %vm2480_vm6, %v6719_v12, 0.0 }
 0x46e   : > { %v4018_v58 = vsel %vm2224_vm5, %v6725_v23, %v3249_v16 }
 0x46f   : > { %v4274_v57 = vadd.f32 %v4018_v58, %v8243_v37  ;;  %v6991_v58 = vperm.slane %v6745_v20, 5 }
 0x471   : > { %1248 = vperm.xlu2 %4944, %v6934_v48   ;;  %4531 = vst.msk [vmem:[%s6043_s13 + $0x498] sm:$0xff] %vm4383_vm1, %v4274_v57 }
 0x472   : > { %1260 = vperm.xlu1 %4945, %v6934_v48  }
 0x474   : > { %v1151_v46 = vpop.permute.xlu1 %1150 }
 0x475   : > { %vm2223_vm11 = vcmp.eq.s32.totalorder %v1151_v46, 1  ;;  %vm2479_vm12 = vcmp.eq.s32.totalorder %v1151_v46, 2 }
 0x476   : > { %v3248_v5 = vsel %vm2479_vm12, %v6719_v12, 0.0 }
 0x477   : > { %v4017_v54 = vsel %vm2223_vm11, %v6725_v23, %v3248_v5  ;;  %v8251_v5 = vld [vmem:[#allocation97_spill] sm:$0xff] }
 0x478   : > { %v4273_v0 = vadd.f32 %v4017_v54, %v8246_v30 }
 0x479   : > { %4946 = vset.pattern.permute.xlu2 %v5164_v8 }
 0x47a   : > { %4947 = vset.pattern.permute.xlu1 %v5171_v9  ;;  %4530 = vst.msk [vmem:[%s6043_s13 + $0x490] sm:$0xff] %vm4383_vm1, %v4273_v0 }
 0x47b   : > { %v1175_v32 = vpop.permute.xlu2 %1174 }
 0x47c   : > { %vm2227_vm9 = vcmp.eq.s32.totalorder %v1175_v32, 1  ;;  %vm2483_vm10 = vcmp.eq.s32.totalorder %v1175_v32, 2  ;;  %v8250_v32 = vld [vmem:[#allocation94_spill] sm:$0xff] }
 0x47d   : > { %v3252_v59 = vsel %vm2483_vm10, %v6719_v12, 0.0 }
 0x47e   : > { %v4021_v39 = vsel %vm2227_vm9, %v6725_v23, %v3252_v59 }
 0x47f   : > { %v4277_v51 = vadd.f32 %v4021_v39, %v8245_v44  ;;  %v7006_v39 = vperm.slane %v6745_v20, 6 }
 0x481   : > { %1266 = vperm.xlu2 %4946, %v6934_v48   ;;  %4534 = vst.msk [vmem:[%s6043_s13 + $0x4b0] sm:$0xff] %vm4383_vm1, %v4277_v51  ;;  %1346 = vperm.xlu0 %4828, %v7006_v39  }
 0x482   : > { %1272 = vperm.xlu1 %4947, %v6934_v48  }
 0x484   : > { %v1169_v19 = vpop.permute.xlu1 %1168 }
 0x485   : > { %vm2226_vm15 = vcmp.eq.s32.totalorder %v1169_v19, 1  ;;  %vm2482_vm0 = vcmp.eq.s32.totalorder %v1169_v19, 2 }
 0x486   : > { %v3251_v18 = vsel %vm2482_vm0, %v6719_v12, 0.0 }
 0x487   : > { %v4020_v55 = vsel %vm2226_vm15, %v6725_v23, %v3251_v18 }
 0x488   : > { %v4276_v34 = vadd.f32 %v4020_v55, %v8248_v47 }
 0x489   : > { %4948 = vset.pattern.permute.xlu2 %v5174_v10 }
 0x48a   : > { %4949 = vset.pattern.permute.xlu1 %v5181_v11  ;;  %4533 = vst.msk [vmem:[%s6043_s13 + $0x4a8] sm:$0xff] %vm4383_vm1, %v4276_v34  ;;  %v8253_v34 = vld [vmem:[#allocation99_spill] sm:$0xff] }
 0x48b   : > { %v1188_v45 = vpop.permute.xlu2 %1187 }
 0x48c   : > { %vm2229_vm13 = vcmp.eq.s32.totalorder %v1188_v45, 1  ;;  %vm2485_vm14 = vcmp.eq.s32.totalorder %v1188_v45, 2 }
 0x48d   : > { %v3254_v63 = vsel %vm2485_vm14, %v6719_v12, 0.0 }
 0x48e   : > { %v4023_v33 = vsel %vm2229_vm13, %v6725_v23, %v3254_v63  ;;  %v8252_v63 = vld [vmem:[#allocation96_spill] sm:$0xff] }
 0x48f   : > { %v4279_v4 = vadd.f32 %v4023_v33, %v8247_v61  ;;  %v5034_v61 = vld [vmem:[%s5149_s25] sm:$0xff] }
 0x491   : > { %1278 = vperm.xlu2 %4948, %v6934_v48   ;;  %4536 = vst.msk [vmem:[%s6043_s13 + $0x4c0] sm:$0xff] %vm4383_vm1, %v4279_v4  ;;  %v7024_v4 = vunpack.c.3.s8 %v5034_v61 }
 0x492   : > { %1291 = vperm.xlu1 %4949, %v6991_v58  }
 0x493   : > { %v7029_v18 = vperm.slane %v7024_v4, 3 }
 0x494   : > { %v1181_v49 = vpop.permute.xlu1 %1180 }
 0x495   : > { %vm2228_vm4 = vcmp.eq.s32.totalorder %v1181_v49, 1  ;;  %vm2484_vm5 = vcmp.eq.s32.totalorder %v1181_v49, 2  ;;  %1591 = vperm.xlu0 %4828, %v7029_v18  }
 0x496   : > { %v3253_v60 = vsel %vm2484_vm5, %v6719_v12, 0.0 }
 0x497   : > { %v4022_v28 = vsel %vm2228_vm4, %v6725_v23, %v3253_v60 }
 0x498   : > { %v4278_v59 = vadd.f32 %v4022_v28, %v8250_v32  ;;  %v8255_v32 = vld [vmem:[#allocation4_spill] sm:$0xff] }
 0x499   : > { %4950 = vset.pattern.permute.xlu2 %v5138_v2 }
 0x49a   : > { %4951 = vset.pattern.permute.xlu1 %v5161_v7  ;;  %4535 = vst.msk [vmem:[%s6043_s13 + $0x4b8] sm:$0xff] %vm4383_vm1, %v4278_v59 }
 0x49b   : > { %v1206_v16 = vpop.permute.xlu2 %1205 }
 0x49c   : > { %vm2232_vm2 = vcmp.eq.s32.totalorder %v1206_v16, 1  ;;  %vm2488_vm3 = vcmp.eq.s32.totalorder %v1206_v16, 2 }
 0x49d   : > { %v3257_v37 = vsel %vm2488_vm3, %v6719_v12, 0.0  ;;  %4989 = vset.pattern.permute.xlu0 %v5174_v10 }
 0x49e   : > { %v4026_v57 = vsel %vm2232_vm2, %v6725_v23, %v3257_v37 }
 0x49f   : > { %v4282_v41 = vadd.f32 %v4026_v57, %v8249_v21 }
 0x4a1   : > { %1297 = vperm.xlu2 %4950, %v6991_v58   ;;  %4539 = vst.msk [vmem:[%s6043_s13 + $0x4d8] sm:$0xff] %vm4383_vm1, %v4282_v41  ;;  %v8254_v41 = vld [vmem:[#allocation98_spill] sm:$0xff] }
 0x4a2   : > { %1303 = vperm.xlu1 %4951, %v6991_v58  }
 0x4a4   : > { %v1200_v30 = vpop.permute.xlu1 %1199 }
 0x4a5   : > { %vm2231_vm8 = vcmp.eq.s32.totalorder %v1200_v30, 1  ;;  %vm2487_vm9 = vcmp.eq.s32.totalorder %v1200_v30, 2  ;;  %396 = vperm.xlu0 %4989, %v8255_v32   ;;  %v8257_v30 = vld [vmem:[#allocation100_spill] sm:$0xff] }
 0x4a6   : > { %v3256_v0 = vsel %vm2487_vm9, %v6719_v12, 0.0 }
 0x4a7   : > { %v4025_v45 = vsel %vm2231_vm8, %v6725_v23, %v3256_v0 }
 0x4a8   : > { %v4281_v33 = vadd.f32 %v4025_v45, %v8252_v63 }
 0x4a9   : > { %4952 = vset.pattern.permute.xlu2 %v5142_v3 }
 0x4aa   : > { %4953 = vset.pattern.permute.xlu1 %v5171_v9  ;;  %4538 = vst.msk [vmem:[%s6043_s13 + $0x4d0] sm:$0xff] %vm4383_vm1, %v4281_v33  ;;  %v8258_v33 = vld [vmem:[#allocation103_spill] sm:$0xff] }
 0x4ab   : > { %v1218_v44 = vpop.permute.xlu2 %1217 }
 0x4ac   : > { %vm2234_vm6 = vcmp.eq.s32.totalorder %v1218_v44, 1  ;;  %vm2490_vm7 = vcmp.eq.s32.totalorder %v1218_v44, 2  ;;  %v8256_v44 = vld [vmem:[#allocation101_spill] sm:$0xff] }
 0x4ad   : > { %v3259_v51 = vsel %vm2490_vm7, %v6719_v12, 0.0  ;;  %641 = vperm.xlu0 %4989, %v6257_v62  }
 0x4ae   : > { %v4028_v46 = vsel %vm2234_vm6, %v6725_v23, %v3259_v51 }
 0x4af   : > { %v4284_v54 = vadd.f32 %v4028_v46, %v8251_v5 }
 0x4b1   : > { %1309 = vperm.xlu2 %4952, %v6991_v58   ;;  %4541 = vst.msk [vmem:[%s6043_s13 + $0x4e8] sm:$0xff] %vm4383_vm1, %v4284_v54 }
 0x4b2   : > { %1321 = vperm.xlu1 %4953, %v6991_v58  }
 0x4b4   : > { %v1212_v37 = vpop.permute.xlu1 %1211 }
 0x4b5   : > { %vm2233_vm12 = vcmp.eq.s32.totalorder %v1212_v37, 1  ;;  %vm2489_vm13 = vcmp.eq.s32.totalorder %v1212_v37, 2  ;;  %886 = vperm.xlu0 %4989, %v6513_v42  }
 0x4b6   : > { %v3258_v57 = vsel %vm2489_vm13, %v6719_v12, 0.0 }
 0x4b7   : > { %v4027_v21 = vsel %vm2233_vm12, %v6725_v23, %v3258_v57  ;;  %v8260_v57 = vld [vmem:[#allocation105_spill] sm:$0xff] }
 0x4b8   : > { %v4283_v49 = vadd.f32 %v4027_v21, %v8254_v41 }
 0x4b9   : > { %4954 = vset.pattern.permute.xlu2 %v5174_v10 }
 0x4ba   : > { %4955 = vset.pattern.permute.xlu1 %v5132_v1  ;;  %4540 = vst.msk [vmem:[%s6043_s13 + $0x4e0] sm:$0xff] %vm4383_vm1, %v4283_v49 }
 0x4bb   : > { %v1237_v19 = vpop.permute.xlu2 %1236 }
 0x4bc   : > { %vm2237_vm10 = vcmp.eq.s32.totalorder %v1237_v19, 1  ;;  %vm2493_vm11 = vcmp.eq.s32.totalorder %v1237_v19, 2 }
 0x4bd   : > { %v3262_v55 = vsel %vm2493_vm11, %v6719_v12, 0.0  ;;  %1131 = vperm.xlu0 %4989, %v6766_v27  }
 0x4be   : > { %v4031_v47 = vsel %vm2237_vm10, %v6725_v23, %v3262_v55 }
 0x4bf   : > { %v4287_v16 = vadd.f32 %v4031_v47, %v8253_v34  ;;  %v8259_v47 = vld [vmem:[#allocation102_spill] sm:$0xff] }
 0x4c1   : > { %1327 = vperm.xlu2 %4954, %v6991_v58   ;;  %4544 = vst.msk [vmem:[%s6043_s13 + $0x500] sm:$0xff] %vm4383_vm1, %v4287_v16 }
 0x4c2   : > { %1334 = vperm.xlu1 %4955, %v7006_v39  }
 0x4c4   : > { %v1230_v46 = vpop.permute.xlu1 %1229 }
 0x4c5   : > { %vm2236_vm0 = vcmp.eq.s32.totalorder %v1230_v46, 1  ;;  %vm2492_vm2 = vcmp.eq.s32.totalorder %v1230_v46, 2  ;;  %1376 = vperm.xlu0 %4989, %v7006_v39   ;;  %v8262_v46 = vld [vmem:[#allocation107_spill] sm:$0xff] }
 0x4c6   : > { %v3261_v5 = vsel %vm2492_vm2, %v6719_v12, 0.0 }
 0x4c7   : > { %v4030_v54 = vsel %vm2236_vm0, %v6725_v23, %v3261_v5 }
 0x4c8   : > { %v4286_v0 = vadd.f32 %v4030_v54, %v8257_v30 }
 0x4c9   : > { %4956 = vset.pattern.permute.xlu2 %v5181_v11 }
 0x4ca   : > { %4957 = vset.pattern.permute.xlu1 %v5161_v7  ;;  %4543 = vst.msk [vmem:[%s6043_s13 + $0x4f8] sm:$0xff] %vm4383_vm1, %v4286_v0  ;;  %v8263_v0 = vld [vmem:[#allocation106_spill] sm:$0xff] }
 0x4cb   : > { %v1249_v60 = vpop.permute.xlu2 %1248 }
 0x4cc   : > { %vm2239_vm14 = vcmp.eq.s32.totalorder %v1249_v60, 1  ;;  %vm2495_vm15 = vcmp.eq.s32.totalorder %v1249_v60, 2 }
 0x4cd   : > { %v3264_v28 = vsel %vm2495_vm15, %v6719_v12, 0.0  ;;  %1621 = vperm.xlu0 %4989, %v7029_v18  }
 0x4ce   : > { %v4033_v59 = vsel %vm2239_vm14, %v6725_v23, %v3264_v28  ;;  %v8261_v28 = vld [vmem:[#allocation104_spill] sm:$0xff] }
 0x4cf   : > { %v4289_v51 = vadd.f32 %v4033_v59, %v8256_v44  ;;  %v7096_v59 = vperm.slane %v6745_v20, 7 }
 0x4d1   : > { %1340 = vperm.xlu2 %4956, %v7006_v39   ;;  %4546 = vst.msk [vmem:[%s6043_s13 + $0x510] sm:$0xff] %vm4383_vm1, %v4289_v51 }
 0x4d2   : > { %1352 = vperm.xlu1 %4957, %v7006_v39  }
 0x4d4   : > { %v1243_v19 = vpop.permute.xlu1 %1242 }
 0x4d5   : > { %vm2238_vm5 = vcmp.eq.s32.totalorder %v1243_v19, 1  ;;  %vm2494_vm6 = vcmp.eq.s32.totalorder %v1243_v19, 2  ;;  %4994 = vset.pattern.permute.xlu0 %v5142_v3 }
 0x4d6   : > { %v3263_v55 = vsel %vm2494_vm6, %v6719_v12, 0.0 }
 0x4d7   : > { %v4032_v42 = vsel %vm2238_vm5, %v6725_v23, %v3263_v55 }
 0x4d8   : > { %v4288_v34 = vadd.f32 %v4032_v42, %v8259_v47  ;;  %v8265_v42 = vld [vmem:[#allocation108_spill] sm:$0xff] }
 0x4d9   : > { %4958 = vset.pattern.permute.xlu2 %v5142_v3 }
 0x4da   : > { %4959 = vset.pattern.permute.xlu1 %v5164_v8  ;;  %4545 = vst.msk [vmem:[%s6043_s13 + $0x508] sm:$0xff] %vm4383_vm1, %v4288_v34  ;;  %v367_v34 = vpop.permute.xlu0 %366 }
 0x4db   : > { %v1267_v45 = vpop.permute.xlu2 %1266  ;;  %vm2351_vm5 = vcmp.eq.s32.totalorder %v367_v34, 2 }
 0x4dc   : > { %vm2242_vm3 = vcmp.eq.s32.totalorder %v1267_v45, 1  ;;  %vm2498_vm4 = vcmp.eq.s32.totalorder %v1267_v45, 2 }
 0x4dd   : > { %v3267_v63 = vsel %vm2498_vm4, %v6719_v12, 0.0  ;;  %427 = vperm.xlu0 %4994, %v5217_v17   ;;  %vm2095_vm4 = vcmp.eq.s32.totalorder %v367_v34, 1 }
 0x4de   : > { %v4036_v62 = vsel %vm2242_vm3, %v6725_v23, %v3267_v63 }
 0x4df   : > { %v4292_v61 = vadd.f32 %v4036_v62, %v8258_v33  ;;  %v8264_v33 = vld [vmem:[#allocation109_spill] sm:$0xff] }
 0x4e1   : > { %1358 = vperm.xlu2 %4958, %v7006_v39   ;;  %4549 = vst.msk [vmem:[%s6043_s13 + $0x528] sm:$0xff] %vm4383_vm1, %v4292_v61 }
 0x4e2   : > { %1364 = vperm.xlu1 %4959, %v7006_v39  }
 0x4e4   : > { %v1261_v41 = vpop.permute.xlu1 %1260 }
 0x4e5   : > { %vm2241_vm9 = vcmp.eq.s32.totalorder %v1261_v41, 1  ;;  %vm2497_vm10 = vcmp.eq.s32.totalorder %v1261_v41, 2  ;;  %672 = vperm.xlu0 %4994, %v6349_v25  }
 0x4e6   : > { %v3266_v49 = vsel %vm2497_vm10, %v6719_v12, 0.0 }
 0x4e7   : > { %v4035_v60 = vsel %vm2241_vm9, %v6725_v23, %v3266_v49  ;;  %v8267_v49 = vld [vmem:[#allocation111_spill] sm:$0xff] }
 0x4e8   : > { %v4291_v32 = vadd.f32 %v4035_v60, %v8261_v28  ;;  %v612_v28 = vpop.permute.xlu0 %611 }
 0x4e9   : > { %4960 = vset.pattern.permute.xlu2 %v5171_v9  ;;  %vm2391_vm9 = vcmp.eq.s32.totalorder %v612_v28, 2 }
 0x4ea   : > { %4961 = vset.pattern.permute.xlu1 %v5132_v1  ;;  %4548 = vst.msk [vmem:[%s6043_s13 + $0x520] sm:$0xff] %vm4383_vm1, %v4291_v32 }
 0x4eb   : > { %v1279_v16 = vpop.permute.xlu2 %1278 }
 0x4ec   : > { %vm2244_vm7 = vcmp.eq.s32.totalorder %v1279_v16, 1  ;;  %vm2500_vm8 = vcmp.eq.s32.totalorder %v1279_v16, 2 }
 0x4ed   : > { %v3269_v37 = vsel %vm2500_vm8, %v6719_v12, 0.0  ;;  %917 = vperm.xlu0 %4994, %v6589_v56   ;;  %vm2135_vm8 = vcmp.eq.s32.totalorder %v612_v28, 1 }
 0x4ee   : > { %v4038_v27 = vsel %vm2244_vm7, %v6725_v23, %v3269_v37  ;;  %v3120_v37 = vsel %vm2351_vm5, %v6719_v12, 0.0 }
 0x4ef   : > { %v4294_v21 = vadd.f32 %v4038_v27, %v8260_v57  ;;  %v3889_v56 = vsel %vm2095_vm4, %v6725_v23, %v3120_v37  ;;  %v8266_v57 = vld [vmem:[#allocation113_spill] sm:$0xff] }
 0x4f1   : > { %1370 = vperm.xlu2 %4960, %v7006_v39   ;;  %4551 = vst.msk [vmem:[%s6043_s13 + $0x538] sm:$0xff] %vm4383_vm1, %v4294_v21  ;;  %v4145_v21 = vadd.f32 %v3889_v56, %v8266_v57 }
 0x4f2   : > { %1383 = vperm.xlu1 %4961, %v7096_v59  }
 0x4f3   : > { %4402 = vst.msk [vmem:[%s6043_s13 + $0x90] sm:$0xff] %vm4383_vm1, %v4145_v21  ;;  %v8273_v21 = vld [vmem:[#allocation112_spill] sm:$0xff] }
 0x4f4   : > { %v1273_v54 = vpop.permute.xlu1 %1272 }
 0x4f5   : > { %vm2243_vm13 = vcmp.eq.s32.totalorder %v1273_v54, 1  ;;  %vm2499_vm14 = vcmp.eq.s32.totalorder %v1273_v54, 2  ;;  %1162 = vperm.xlu0 %4994, %v6842_v53   ;;  %v3160_v53 = vsel %vm2391_vm9, %v6719_v12, 0.0  ;;  %v8269_v54 = vld [vmem:[#allocation110_spill] sm:$0xff] }
 0x4f6   : > { %v3268_v20 = vsel %vm2499_vm14, %v6719_v12, 0.0 }
 0x4f7   : > { %v4037_v30 = vsel %vm2243_vm13, %v6725_v23, %v3268_v20 }
 0x4f8   : > { %v4293_v45 = vadd.f32 %v4037_v30, %v8263_v0  ;;  %v857_v30 = vpop.permute.xlu0 %856  ;;  %v7155_v0 = vperm.slane %v7024_v4, 4 }
 0x4f9   : > { %4962 = vset.pattern.permute.xlu2 %v5181_v11  ;;  %vm2431_vm13 = vcmp.eq.s32.totalorder %v857_v30, 2 }
 0x4fa   : > { %4963 = vset.pattern.permute.xlu1 %v5138_v2  ;;  %4550 = vst.msk [vmem:[%s6043_s13 + $0x530] sm:$0xff] %vm4383_vm1, %v4293_v45 }
 0x4fb   : > { %v1298_v39 = vpop.permute.xlu2 %1297 }
 0x4fc   : > { %vm2247_vm11 = vcmp.eq.s32.totalorder %v1298_v39, 1  ;;  %vm2503_vm12 = vcmp.eq.s32.totalorder %v1298_v39, 2  ;;  %v3929_v39 = vsel %vm2135_vm8, %v6725_v23, %v3160_v53 }
 0x4fd   : > { %v3272_v44 = vsel %vm2503_vm12, %v6719_v12, 0.0  ;;  %1407 = vperm.xlu0 %4994, %v7096_v59   ;;  %vm2175_vm12 = vcmp.eq.s32.totalorder %v857_v30, 1 }
 0x4fe   : > { %v4041_v51 = vsel %vm2247_vm11, %v6725_v23, %v3272_v44 }
 0x4ff   : > { %v4297_v5 = vadd.f32 %v4041_v51, %v8262_v46  ;;  %v8268_v51 = vld [vmem:[#allocation114_spill] sm:$0xff] }
 0x500   : > { %v4185_v46 = vadd.f32 %v3929_v39, %v8268_v51  ;;  %v8274_v39 = vld [vmem:[#allocation121_spill] sm:$0xff]  ;;  %v8275_v51 = vld [vmem:[#allocation2_spill] sm:$0xff] }
 0x501   : > { %1389 = vperm.xlu2 %4962, %v7096_v59   ;;  %4554 = vst.msk [vmem:[%s6043_s13 + $0x550] sm:$0xff] %vm4383_vm1, %v4297_v5 }
 0x502   : > { %1395 = vperm.xlu1 %4963, %v7096_v59   ;;  %4442 = vst.msk [vmem:[%s6043_s13 + $0x1d0] sm:$0xff] %vm4383_vm1, %v4185_v46 }
 0x504   : > { %v1292_v19 = vpop.permute.xlu1 %1291 }
 0x505   : > { %vm2246_vm2 = vcmp.eq.s32.totalorder %v1292_v19, 1  ;;  %vm2502_vm3 = vcmp.eq.s32.totalorder %v1292_v19, 2  ;;  %1652 = vperm.xlu0 %4994, %v7155_v0  }
 0x506   : > { %v3271_v55 = vsel %vm2502_vm3, %v6719_v12, 0.0 }
 0x507   : > { %v4040_v25 = vsel %vm2246_vm2, %v6725_v23, %v3271_v55  ;;  %v7176_v55 = vperm.slane %v7024_v4, 0 }
 0x508   : > { %v4296_v47 = vadd.f32 %v4040_v25, %v8265_v42  ;;  %v8271_v25 = vld [vmem:[#allocation115_spill] sm:$0xff] }
 0x509   : > { %4964 = vset.pattern.permute.xlu2 %v5161_v7 }
 0x50a   : > { %4965 = vset.pattern.permute.xlu1 %v5164_v8  ;;  %4553 = vst.msk [vmem:[%s6043_s13 + $0x548] sm:$0xff] %vm4383_vm1, %v4296_v47  ;;  %v1102_v47 = vpop.permute.xlu0 %1101 }
 0x50b   : > { %v1310_v63 = vpop.permute.xlu2 %1309  ;;  %vm2471_vm2 = vcmp.eq.s32.totalorder %v1102_v47, 2 }
 0x50c   : > { %vm2249_vm15 = vcmp.eq.s32.totalorder %v1310_v63, 1  ;;  %vm2505_vm0 = vcmp.eq.s32.totalorder %v1310_v63, 2  ;;  %v7168_v63 = vld [vmem:[%s7932_s2] ss:$0 sm:$0xff] }
 0x50d   : > { %v3274_v62 = vsel %vm2505_vm0, %v6719_v12, 0.0  ;;  %vm2215_vm0 = vcmp.eq.s32.totalorder %v1102_v47, 1  ;;  %4999 = vset.pattern.permute.xlu0 %v5181_v11 }
 0x50e   : > { %v4043_v17 = vsel %vm2249_vm15, %v6725_v23, %v3274_v62 }
 0x50f   : > { %v4299_v61 = vadd.f32 %v4043_v17, %v8264_v33  ;;  %v8270_v33 = vld [vmem:[#allocation117_spill] sm:$0xff] }
 0x511   : > { %1401 = vperm.xlu2 %4964, %v7096_v59   ;;  %4556 = vst.msk [vmem:[%s6043_s13 + $0x560] sm:$0xff] %vm4383_vm1, %v4299_v61 }
 0x512   : > { %1413 = vperm.xlu1 %4965, %v7096_v59  }
 0x514   : > { %v1304_v32 = vpop.permute.xlu1 %1303 }
 0x515   : > { %vm2248_vm10 = vcmp.eq.s32.totalorder %v1304_v32, 1  ;;  %vm2504_vm11 = vcmp.eq.s32.totalorder %v1304_v32, 2  ;;  %262 = vperm.xlu0 %4999, %v8275_v51  }
 0x516   : > { %v3273_v44 = vsel %vm2504_vm11, %v6719_v12, 0.0 }
 0x517   : > { %v4042_v5 = vsel %vm2248_vm10, %v6725_v23, %v3273_v44 }
 0x518   : > { %v4298_v20 = vadd.f32 %v4042_v5, %v8269_v54  ;;  %v8276_v5 = vld [vmem:[#allocation119_spill] sm:$0xff] }
 0x519   : > { %4966 = vset.pattern.permute.xlu2 %v5171_v9 }
 0x51a   : > { %4967 = vset.pattern.permute.xlu1 %v5174_v10  ;;  %4555 = vst.msk [vmem:[%s6043_s13 + $0x558] sm:$0xff] %vm4383_vm1, %v4298_v20 }
 0x51b   : > { %v1328_v16 = vpop.permute.xlu2 %1327 }
 0x51c   : > { %vm2252_vm6 = vcmp.eq.s32.totalorder %v1328_v16, 1  ;;  %vm2508_vm7 = vcmp.eq.s32.totalorder %v1328_v16, 2 }
 0x51d   : > { %v3277_v27 = vsel %vm2508_vm7, %v6719_v12, 0.0  ;;  %458 = vperm.xlu0 %4999, %v6140_v26  }
 0x51e   : > { %v4046_v41 = vsel %vm2252_vm6, %v6725_v23, %v3277_v27  ;;  %v7162_v23 = vld [vmem:[%s7932_s2 + $0x1] ss:$0 sm:$0xff] }
 0x51f   : > { %v4302_v60 = vadd.f32 %v4046_v41, %v8267_v49  ;;  %v3200_v45 = vsel %vm2431_vm13, %v7162_v23, 0.0  ;;  %v3240_v16 = vsel %vm2471_vm2, %v7162_v23, 0.0  ;;  %v8272_v27 = vld [vmem:[#allocation118_spill] sm:$0xff]  ;;  %v1347_v49 = vpop.permute.xlu0 %1346 }
 0x520   : > { %v3969_v62 = vsel %vm2175_vm12, %v7168_v63, %v3200_v45  ;;  %v4009_v37 = vsel %vm2215_vm0, %v7168_v63, %v3240_v16  ;;  %vm2255_vm5 = vcmp.eq.s32.totalorder %v1347_v49, 1  ;;  %vm2511_vm6 = vcmp.eq.s32.totalorder %v1347_v49, 2  ;;  %v8279_v16 = vld [vmem:[#allocation123_spill] sm:$0xff] }
 0x521   : > { %1419 = vperm.xlu2 %4966, %v7096_v59   ;;  %4559 = vst.msk [vmem:[%s6043_s13 + $0x578] sm:$0xff] %vm4383_vm1, %v4302_v60  ;;  %v4225_v61 = vadd.f32 %v3969_v62, %v8270_v33  ;;  %v3280_v28 = vsel %vm2511_vm6, %v7162_v23, 0.0 }
 0x522   : > { %1425 = vperm.xlu1 %4967, %v7096_v59   ;;  %v4265_v59 = vadd.f32 %v4009_v37, %v8272_v27  ;;  %v4049_v32 = vsel %vm2255_vm5, %v7168_v63, %v3280_v28  ;;  %v8281_v28 = vld [vmem:[#allocation120_spill] sm:$0xff] }
 0x523   : > { %4482 = vst.msk [vmem:[%s6043_s13 + $0x310] sm:$0xff] %vm4383_vm1, %v4225_v61  ;;  %v4305_v44 = vadd.f32 %v4049_v32, %v8274_v39 }
 0x524   : > { %v1322_v34 = vpop.permute.xlu1 %1321  ;;  %4522 = vst.msk [vmem:[%s6043_s13 + $0x450] sm:$0xff] %vm4383_vm1, %v4265_v59 }
 0x525   : > { %vm2251_vm3 = vcmp.eq.s32.totalorder %v1322_v34, 1  ;;  %vm2507_vm4 = vcmp.eq.s32.totalorder %v1322_v34, 2  ;;  %4562 = vst.msk [vmem:[%s6043_s13 + $0x590] sm:$0xff] %vm4383_vm1, %v4305_v44  ;;  %703 = vperm.xlu0 %4999, %v6396_v52  }
 0x526   : > { %v3276_v56 = vsel %vm2507_vm4, %v7162_v23, 0.0 }
 0x527   : > { %v4045_v57 = vsel %vm2251_vm3, %v7168_v63, %v3276_v56  ;;  %v1592_v20 = vpop.permute.xlu0 %1591 }
 0x528   : > { %v4301_v41 = vadd.f32 %v4045_v57, %v8273_v21  ;;  %vm2295_vm9 = vcmp.eq.s32.totalorder %v1592_v20, 1  ;;  %vm2551_vm10 = vcmp.eq.s32.totalorder %v1592_v20, 2 }
 0x529   : > { %4968 = vset.pattern.permute.xlu2 %v5132_v1 }
 0x52a   : > { %4969 = vset.pattern.permute.xlu1 %v5138_v2  ;;  %4558 = vst.msk [vmem:[%s6043_s13 + $0x570] sm:$0xff] %vm4383_vm1, %v4301_v41  ;;  %v8280_v41 = vld [vmem:[#allocation125_spill] sm:$0xff] }
 0x52b   : > { %v1341_v12 = vpop.permute.xlu2 %1340 }
 0x52c   : > { %vm2254_vm14 = vcmp.eq.s32.totalorder %v1341_v12, 1  ;;  %vm2510_vm15 = vcmp.eq.s32.totalorder %v1341_v12, 2  ;;  %v3320_v12 = vsel %vm2551_vm10, %v7162_v23, 0.0 }
 0x52d   : > { %v3279_v17 = vsel %vm2510_vm15, %v7162_v23, 0.0  ;;  %v4089_v45 = vsel %vm2295_vm9, %v7168_v63, %v3320_v12  ;;  %948 = vperm.xlu0 %4999, %v6636_v14   ;;  %v7252_v12 = vperm.slane %v7024_v4, 1 }
 0x52e   : > { %v4048_v19 = vsel %vm2254_vm14, %v7168_v63, %v3279_v17  ;;  %v8277_v17 = vld [vmem:[#allocation122_spill] sm:$0xff] }
 0x52f   : > { %v4304_v42 = vadd.f32 %v4048_v19, %v8271_v25  ;;  %v4345_v33 = vadd.f32 %v4089_v45, %v8277_v17  ;;  %v8278_v19 = vld [vmem:[#allocation116_spill] sm:$0xff]  ;;  %v397_v56 = vpop.permute.xlu0 %396  ;;  %v8283_v45 = vld [vmem:[#allocation126_spill] sm:$0xff] }
 0x530   : > { %vm2100_vm15 = vcmp.eq.s32.totalorder %v397_v56, 1  ;;  %vm2356_vm0 = vcmp.eq.s32.totalorder %v397_v56, 2 }
 0x531   : > { %1432 = vperm.xlu2 %4968, %v7176_v55   ;;  %4561 = vst.msk [vmem:[%s6043_s13 + $0x588] sm:$0xff] %vm4383_vm1, %v4304_v42  ;;  %v3125_v59 = vsel %vm2356_vm0, %v7162_v23, 0.0 }
 0x532   : > { %1444 = vperm.xlu1 %4969, %v7176_v55   ;;  %4602 = vst.msk [vmem:[%s6043_s13 + $0x6d0] sm:$0xff] %vm4383_vm1, %v4345_v33  ;;  %v3894_v57 = vsel %vm2100_vm15, %v7168_v63, %v3125_v59 }
 0x533   : > { %v4150_v49 = vadd.f32 %v3894_v57, %v8280_v41 }
 0x534   : > { %v1335_v30 = vpop.permute.xlu1 %1334 }
 0x535   : > { %vm2253_vm11 = vcmp.eq.s32.totalorder %v1335_v30, 1  ;;  %vm2509_vm12 = vcmp.eq.s32.totalorder %v1335_v30, 2  ;;  %4407 = vst.msk [vmem:[%s6043_s13 + $0xb8] sm:$0xff] %vm4383_vm1, %v4150_v49  ;;  %1193 = vperm.xlu0 %4999, %v6889_v22   ;;  %v8286_v49 = vld [vmem:[#allocation132_spill] sm:$0xff] }
 0x536   : > { %v3278_v62 = vsel %vm2509_vm12, %v7162_v23, 0.0 }
 0x537   : > { %v4047_v61 = vsel %vm2253_vm11, %v7168_v63, %v3278_v62 }
 0x538   : > { %v4303_v25 = vadd.f32 %v4047_v61, %v8278_v19 }
 0x539   : > { %4970 = vset.pattern.permute.xlu2 %v5161_v7 }
 0x53a   : > { %4971 = vset.pattern.permute.xlu1 %v5142_v3  ;;  %4560 = vst.msk [vmem:[%s6043_s13 + $0x580] sm:$0xff] %vm4383_vm1, %v4303_v25 }
 0x53b   : > { %v1359_v60 = vpop.permute.xlu2 %1358 }
 0x53c   : > { %vm2257_vm7 = vcmp.eq.s32.totalorder %v1359_v60, 1  ;;  %vm2513_vm8 = vcmp.eq.s32.totalorder %v1359_v60, 2 }
 0x53d   : > { %v3282_v53 = vsel %vm2513_vm8, %v7162_v23, 0.0  ;;  %1438 = vperm.xlu0 %4999, %v7176_v55  }
 0x53e   : > { %v4051_v46 = vsel %vm2257_vm7, %v7168_v63, %v3282_v53  ;;  %v642_v53 = vpop.permute.xlu0 %641 }
 0x53f   : > { %v4307_v54 = vadd.f32 %v4051_v46, %v8276_v5  ;;  %vm2140_vm4 = vcmp.eq.s32.totalorder %v642_v53, 1  ;;  %vm2396_vm5 = vcmp.eq.s32.totalorder %v642_v53, 2 }
 0x540   : > { %v3165_v44 = vsel %vm2396_vm5, %v7162_v23, 0.0 }
 0x541   : > { %1450 = vperm.xlu2 %4970, %v7176_v55   ;;  %4564 = vst.msk [vmem:[%s6043_s13 + $0x5a0] sm:$0xff] %vm4383_vm1, %v4307_v54  ;;  %v3934_v46 = vsel %vm2140_vm4, %v7168_v63, %v3165_v44  ;;  %v8282_v54 = vld [vmem:[#allocation128_spill] sm:$0xff] }
 0x542   : > { %1456 = vperm.xlu1 %4971, %v7176_v55   ;;  %v4190_v20 = vadd.f32 %v3934_v46, %v8282_v54 }
 0x544   : > { %v1353_v27 = vpop.permute.xlu1 %1352  ;;  %4447 = vst.msk [vmem:[%s6043_s13 + $0x1f8] sm:$0xff] %vm4383_vm1, %v4190_v20  ;;  %v8288_v20 = vld [vmem:[#allocation133_spill] sm:$0xff] }
 0x545   : > { %vm2256_vm2 = vcmp.eq.s32.totalorder %v1353_v27, 1  ;;  %vm2512_vm3 = vcmp.eq.s32.totalorder %v1353_v27, 2  ;;  %v7273_v27 = vperm.slane %v7024_v4, 5 }
 0x546   : > { %v3281_v21 = vsel %vm2512_vm3, %v7162_v23, 0.0  ;;  %v887_v17 = vpop.permute.xlu0 %886 }
 0x547   : > { %v4050_v60 = vsel %vm2256_vm2, %v7168_v63, %v3281_v21  ;;  %vm2180_vm8 = vcmp.eq.s32.totalorder %v887_v17, 1  ;;  %vm2436_vm9 = vcmp.eq.s32.totalorder %v887_v17, 2  ;;  %1683 = vperm.xlu0 %4999, %v7273_v27  }
 0x548   : > { %v4306_v32 = vadd.f32 %v4050_v60, %v8281_v28  ;;  %v3205_v61 = vsel %vm2436_vm9, %v7162_v23, 0.0 }
 0x549   : > { %4972 = vset.pattern.permute.xlu2 %v5164_v8  ;;  %v3974_v19 = vsel %vm2180_vm8, %v7168_v63, %v3205_v61 }
 0x54a   : > { %4973 = vset.pattern.permute.xlu1 %v5174_v10  ;;  %4563 = vst.msk [vmem:[%s6043_s13 + $0x598] sm:$0xff] %vm4383_vm1, %v4306_v32  ;;  %v8287_v32 = vld [vmem:[#allocation130_spill] sm:$0xff] }
 0x54b   : > { %v1371_v42 = vpop.permute.xlu2 %1370 }
 0x54c   : > { %vm2259_vm13 = vcmp.eq.s32.totalorder %v1371_v42, 1  ;;  %vm2515_vm14 = vcmp.eq.s32.totalorder %v1371_v42, 2  ;;  %v8284_v42 = vld [vmem:[#allocation129_spill] sm:$0xff] }
 0x54d   : > { %v3284_v47 = vsel %vm2515_vm14, %v7162_v23, 0.0 }
 0x54e   : > { %v4053_v34 = vsel %vm2259_vm13, %v7168_v63, %v3284_v47  ;;  %v4230_v47 = vadd.f32 %v3974_v19, %v8284_v42  ;;  %v1132_v56 = vpop.permute.xlu0 %1131 }
 0x54f   : > { %v4309_v37 = vadd.f32 %v4053_v34, %v8279_v16  ;;  %v8285_v16 = vld [vmem:[#allocation124_spill] sm:$0xff]  ;;  %vm2220_vm12 = vcmp.eq.s32.totalorder %v1132_v56, 1  ;;  %vm2476_vm13 = vcmp.eq.s32.totalorder %v1132_v56, 2  ;;  %5004 = vset.pattern.permute.xlu0 %v5171_v9 }
 0x550   : > { %4487 = vst.msk [vmem:[%s6043_s13 + $0x338] sm:$0xff] %vm4383_vm1, %v4230_v47  ;;  %v3245_v57 = vsel %vm2476_vm13, %v7162_v23, 0.0  ;;  %v8290_v47 = vld [vmem:[#allocation136_spill] sm:$0xff] }
 0x551   : > { %1462 = vperm.xlu2 %4972, %v7176_v55   ;;  %4566 = vst.msk [vmem:[%s6043_s13 + $0x5b0] sm:$0xff] %vm4383_vm1, %v4309_v37  ;;  %v4014_v21 = vsel %vm2220_vm12, %v7168_v63, %v3245_v57 }
 0x552   : > { %1474 = vperm.xlu1 %4973, %v7176_v55   ;;  %v4270_v60 = vadd.f32 %v4014_v21, %v8286_v49  ;;  %v8292_v21 = vld [vmem:[#allocation131_spill] sm:$0xff] }
 0x554   : > { %v1365_v33 = vpop.permute.xlu1 %1364  ;;  %4527 = vst.msk [vmem:[%s6043_s13 + $0x478] sm:$0xff] %vm4383_vm1, %v4270_v60 }
 0x555   : > { %vm2258_vm10 = vcmp.eq.s32.totalorder %v1365_v33, 1  ;;  %vm2514_vm11 = vcmp.eq.s32.totalorder %v1365_v33, 2 }
 0x556   : > { %v3283_v25 = vsel %vm2514_vm11, %v7162_v23, 0.0 }
 0x557   : > { %v4052_v34 = vsel %vm2258_vm10, %v7168_v63, %v3283_v25  ;;  %488 = vperm.xlu0 %5004, %v6140_v26  }
 0x558   : > { %v4308_v37 = vadd.f32 %v4052_v34, %v8285_v16 }
 0x559   : > { %4974 = vset.pattern.permute.xlu2 %v5132_v1 }
 0x55a   : > { %4975 = vset.pattern.permute.xlu1 %v5181_v11  ;;  %4565 = vst.msk [vmem:[%s6043_s13 + $0x5a8] sm:$0xff] %vm4383_vm1, %v4308_v37  ;;  %v8291_v37 = vld [vmem:[#allocation134_spill] sm:$0xff] }
 0x55b   : > { %v1390_v39 = vpop.permute.xlu2 %1389 }
 0x55c   : > { %vm2262_vm6 = vcmp.eq.s32.totalorder %v1390_v39, 1  ;;  %vm2518_vm7 = vcmp.eq.s32.totalorder %v1390_v39, 2  ;;  %v1377_v39 = vpop.permute.xlu0 %1376 }
 0x55d   : > { %v3287_v5 = vsel %vm2518_vm7, %v7162_v23, 0.0  ;;  %vm2260_vm0 = vcmp.eq.s32.totalorder %v1377_v39, 1  ;;  %vm2516_vm2 = vcmp.eq.s32.totalorder %v1377_v39, 2 }
 0x55e   : > { %v4056_v30 = vsel %vm2262_vm6, %v7168_v63, %v3287_v5  ;;  %v3285_v46 = vsel %vm2516_vm2, %v7162_v23, 0.0 }
 0x55f   : > { %v4312_v62 = vadd.f32 %v4056_v30, %v8283_v45  ;;  %v4054_v5 = vsel %vm2260_vm0, %v7168_v63, %v3285_v46  ;;  %733 = vperm.xlu0 %5004, %v6396_v52   ;;  %v8294_v46 = vld [vmem:[#allocation137_spill] sm:$0xff] }
 0x560   : > { %v4310_v30 = vadd.f32 %v4054_v5, %v8288_v20 }
 0x561   : > { %1481 = vperm.xlu2 %4974, %v7252_v12   ;;  %4569 = vst.msk [vmem:[%s6043_s13 + $0x5c8] sm:$0xff] %vm4383_vm1, %v4312_v62  ;;  %v8289_v62 = vld [vmem:[#allocation127_spill] sm:$0xff] }
 0x562   : > { %1487 = vperm.xlu1 %4975, %v7252_v12   ;;  %4567 = vst.msk [vmem:[%s6043_s13 + $0x5b8] sm:$0xff] %vm4383_vm1, %v4310_v30 }
 0x564   : > { %v1384_v44 = vpop.permute.xlu1 %1383  ;;  %v1622_v33 = vpop.permute.xlu0 %1621 }
 0x565   : > { %vm2261_vm3 = vcmp.eq.s32.totalorder %v1384_v44, 1  ;;  %vm2517_vm4 = vcmp.eq.s32.totalorder %v1384_v44, 2  ;;  %vm2300_vm5 = vcmp.eq.s32.totalorder %v1622_v33, 1  ;;  %vm2556_vm6 = vcmp.eq.s32.totalorder %v1622_v33, 2 }
 0x566   : > { %v3286_v54 = vsel %vm2517_vm4, %v7162_v23, 0.0  ;;  %v3325_v19 = vsel %vm2556_vm6, %v7162_v23, 0.0 }
 0x567   : > { %v4055_v45 = vsel %vm2261_vm3, %v7168_v63, %v3286_v54  ;;  %v4094_v25 = vsel %vm2300_vm5, %v7168_v63, %v3325_v19  ;;  %978 = vperm.xlu0 %5004, %v6636_v14  }
 0x568   : > { %v4311_v17 = vadd.f32 %v4055_v45, %v8289_v62  ;;  %v4350_v34 = vadd.f32 %v4094_v25, %v8290_v47  ;;  %v8295_v62 = vld [vmem:[#allocation140_spill] sm:$0xff] }
 0x569   : > { %4976 = vset.pattern.permute.xlu2 %v5138_v2 }
 0x56a   : > { %4977 = vset.pattern.permute.xlu1 %v5142_v3  ;;  %4568 = vst.msk [vmem:[%s6043_s13 + $0x5c0] sm:$0xff] %vm4383_vm1, %v4311_v17 }
 0x56b   : > { %v1402_v59 = vpop.permute.xlu2 %1401  ;;  %4607 = vst.msk [vmem:[%s6043_s13 + $0x6f8] sm:$0xff] %vm4383_vm1, %v4350_v34  ;;  %v7353_v34 = vperm.slane %v7024_v4, 2 }
 0x56c   : > { %vm2264_vm14 = vcmp.eq.s32.totalorder %v1402_v59, 1  ;;  %vm2520_vm15 = vcmp.eq.s32.totalorder %v1402_v59, 2  ;;  %v428_v49 = vpop.permute.xlu0 %427 }
 0x56d   : > { %v3289_v41 = vsel %vm2520_vm15, %v7162_v23, 0.0  ;;  %vm2105_vm11 = vcmp.eq.s32.totalorder %v428_v49, 1  ;;  %vm2361_vm12 = vcmp.eq.s32.totalorder %v428_v49, 2 }
 0x56e   : > { %v4058_v28 = vsel %vm2264_vm14, %v7168_v63, %v3289_v41 }
 0x56f   : > { %v4314_v53 = vadd.f32 %v4058_v28, %v8287_v32  ;;  %v3130_v28 = vsel %vm2361_vm12, %v7162_v23, 0.0  ;;  %1223 = vperm.xlu0 %5004, %v6889_v22  }
 0x570   : > { %v3899_v52 = vsel %vm2105_vm11, %v7168_v63, %v3130_v28  ;;  %v8299_v28 = vld [vmem:[#allocation144_spill] sm:$0xff] }
 0x571   : > { %1493 = vperm.xlu2 %4976, %v7252_v12   ;;  %4571 = vst.msk [vmem:[%s6043_s13 + $0x5d8] sm:$0xff] %vm4383_vm1, %v4314_v53  ;;  %v8293_v53 = vld [vmem:[#allocation139_spill] sm:$0xff] }
 0x572   : > { %1505 = vperm.xlu1 %4977, %v7252_v12   ;;  %v4155_v39 = vadd.f32 %v3899_v52, %v8293_v53  ;;  %v8300_v53 = vld [vmem:[#allocation138_spill] sm:$0xff] }
 0x574   : > { %v1396_v59 = vpop.permute.xlu1 %1395  ;;  %4412 = vst.msk [vmem:[%s6043_s13 + $0xe0] sm:$0xff] %vm4383_vm1, %v4155_v39  ;;  %v673_v54 = vpop.permute.xlu0 %672 }
 0x575   : > { %vm2263_vm9 = vcmp.eq.s32.totalorder %v1396_v59, 1  ;;  %vm2519_vm10 = vcmp.eq.s32.totalorder %v1396_v59, 2  ;;  %vm2145_vm15 = vcmp.eq.s32.totalorder %v673_v54, 1  ;;  %vm2401_vm0 = vcmp.eq.s32.totalorder %v673_v54, 2 }
 0x576   : > { %v3288_v57 = vsel %vm2519_vm10, %v7162_v23, 0.0  ;;  %v3170_v14 = vsel %vm2401_vm0, %v7162_v23, 0.0 }
 0x577   : > { %v4057_v26 = vsel %vm2263_vm9, %v7168_v63, %v3288_v57  ;;  %v3939_v30 = vsel %vm2145_vm15, %v7168_v63, %v3170_v14  ;;  %1468 = vperm.xlu0 %5004, %v7176_v55   ;;  %v8298_v57 = vld [vmem:[#allocation141_spill] sm:$0xff]  ;;  %v8301_v14 = vld [vmem:[#allocation147_spill] sm:$0xff] }
 0x578   : > { %v4313_v41 = vadd.f32 %v4057_v26, %v8292_v21  ;;  %v4195_v17 = vadd.f32 %v3939_v30, %v8295_v62  ;;  %v8302_v62 = vld [vmem:[#allocation145_spill] sm:$0xff] }
 0x579   : > { %4978 = vset.pattern.permute.xlu2 %v5164_v8 }
 0x57a   : > { %4979 = vset.pattern.permute.xlu1 %v5171_v9  ;;  %4570 = vst.msk [vmem:[%s6043_s13 + $0x5d0] sm:$0xff] %vm4383_vm1, %v4313_v41 }
 0x57b   : > { %v1420_v61 = vpop.permute.xlu2 %1419  ;;  %4452 = vst.msk [vmem:[%s6043_s13 + $0x220] sm:$0xff] %vm4383_vm1, %v4195_v17 }
 0x57c   : > { %vm2267_vm7 = vcmp.eq.s32.totalorder %v1420_v61, 1  ;;  %vm2523_vm8 = vcmp.eq.s32.totalorder %v1420_v61, 2  ;;  %v8296_v61 = vld [vmem:[#allocation135_spill] sm:$0xff]  ;;  %v918_v25 = vpop.permute.xlu0 %917 }
 0x57d   : > { %v3292_v42 = vsel %vm2523_vm8, %v7162_v23, 0.0  ;;  %vm2185_vm4 = vcmp.eq.s32.totalorder %v918_v25, 1  ;;  %vm2441_vm5 = vcmp.eq.s32.totalorder %v918_v25, 2 }
 0x57e   : > { %v4061_v16 = vsel %vm2267_vm7, %v7168_v63, %v3292_v42  ;;  %v3210_v22 = vsel %vm2441_vm5, %v7162_v23, 0.0 }
 0x57f   : > { %v4317_v56 = vadd.f32 %v4061_v16, %v8291_v37  ;;  %v3979_v47 = vsel %vm2185_vm4, %v7168_v63, %v3210_v22  ;;  %v8297_v37 = vld [vmem:[#allocation143_spill] sm:$0xff]  ;;  %1713 = vperm.xlu0 %5004, %v7273_v27   ;;  %v8303_v22 = vld [vmem:[#allocation148_spill] sm:$0xff] }
 0x581   : > { %1511 = vperm.xlu2 %4978, %v7252_v12   ;;  %4574 = vst.msk [vmem:[%s6043_s13 + $0x5f0] sm:$0xff] %vm4383_vm1, %v4317_v56  ;;  %v4235_v56 = vadd.f32 %v3979_v47, %v8297_v37  ;;  %v8304_v37 = vld [vmem:[#allocation142_spill] sm:$0xff] }
 0x582   : > { %1517 = vperm.xlu1 %4979, %v7252_v12  }
 0x583   : > { %4492 = vst.msk [vmem:[%s6043_s13 + $0x360] sm:$0xff] %vm4383_vm1, %v4235_v56 }
 0x584   : > { %v1414_v20 = vpop.permute.xlu1 %1413  ;;  %v1163_v21 = vpop.permute.xlu0 %1162 }
 0x585   : > { %vm2266_vm2 = vcmp.eq.s32.totalorder %v1414_v20, 1  ;;  %vm2522_vm3 = vcmp.eq.s32.totalorder %v1414_v20, 2  ;;  %vm2225_vm8 = vcmp.eq.s32.totalorder %v1163_v21, 1  ;;  %vm2481_vm9 = vcmp.eq.s32.totalorder %v1163_v21, 2 }
 0x586   : > { %v3291_v45 = vsel %vm2522_vm3, %v7162_v23, 0.0  ;;  %v3250_v55 = vsel %vm2481_vm9, %v7162_v23, 0.0 }
 0x587   : > { %v4060_v33 = vsel %vm2266_vm2, %v7168_v63, %v3291_v45  ;;  %v4019_v49 = vsel %vm2225_vm8, %v7168_v63, %v3250_v55  ;;  %5009 = vset.pattern.permute.xlu0 %v5161_v7 }
 0x588   : > { %v4316_v19 = vadd.f32 %v4060_v33, %v8296_v61  ;;  %v4275_v52 = vadd.f32 %v4019_v49, %v8299_v28 }
 0x589   : > { %4980 = vset.pattern.permute.xlu2 %v5174_v10 }
 0x58a   : > { %4981 = vset.pattern.permute.xlu1 %v5181_v11  ;;  %4573 = vst.msk [vmem:[%s6043_s13 + $0x5e8] sm:$0xff] %vm4383_vm1, %v4316_v19 }
 0x58b   : > { %v1433_v60 = vpop.permute.xlu2 %1432  ;;  %4532 = vst.msk [vmem:[%s6043_s13 + $0x4a0] sm:$0xff] %vm4383_vm1, %v4275_v52 }
 0x58c   : > { %vm2269_vm13 = vcmp.eq.s32.totalorder %v1433_v60, 1  ;;  %vm2525_vm14 = vcmp.eq.s32.totalorder %v1433_v60, 2 }
 0x58d   : > { %v3294_v32 = vsel %vm2525_vm14, %v7162_v23, 0.0 }
 0x58e   : > { %v4063_v44 = vsel %vm2269_vm13, %v7168_v63, %v3294_v32 }
 0x58f   : > { %v4319_v5 = vadd.f32 %v4063_v44, %v8294_v46  ;;  %v1408_v44 = vpop.permute.xlu0 %1407  ;;  %519 = vperm.xlu0 %5009, %v6185_v43  }
 0x590   : > { %vm2265_vm12 = vcmp.eq.s32.totalorder %v1408_v44, 1  ;;  %vm2521_vm13 = vcmp.eq.s32.totalorder %v1408_v44, 2  ;;  %v8307_v44 = vld [vmem:[#allocation152_spill] sm:$0xff] }
 0x591   : > { %1523 = vperm.xlu2 %4980, %v7252_v12   ;;  %4576 = vst.msk [vmem:[%s6043_s13 + $0x600] sm:$0xff] %vm4383_vm1, %v4319_v5  ;;  %v3290_v5 = vsel %vm2521_vm13, %v7162_v23, 0.0 }
 0x592   : > { %1536 = vperm.xlu1 %4981, %v7353_v34   ;;  %v4059_v54 = vsel %vm2265_vm12, %v7168_v63, %v3290_v5 }
 0x593   : > { %v4315_v30 = vadd.f32 %v4059_v54, %v8301_v14  ;;  %v8308_v54 = vld [vmem:[#allocation146_spill] sm:$0xff] }
 0x594   : > { %v1426_v41 = vpop.permute.xlu1 %1425 }
 0x595   : > { %vm2268_vm10 = vcmp.eq.s32.totalorder %v1426_v41, 1  ;;  %vm2524_vm11 = vcmp.eq.s32.totalorder %v1426_v41, 2  ;;  %4572 = vst.msk [vmem:[%s6043_s13 + $0x5e0] sm:$0xff] %vm4383_vm1, %v4315_v30  ;;  %v8305_v41 = vld [vmem:[#allocation151_spill] sm:$0xff] }
 0x596   : > { %v3293_v60 = vsel %vm2524_vm11, %v7162_v23, 0.0 }
 0x597   : > { %v4062_v32 = vsel %vm2268_vm10, %v7168_v63, %v3293_v60  ;;  %v1653_v33 = vpop.permute.xlu0 %1652  ;;  %764 = vperm.xlu0 %5009, %v6441_v50   ;;  %v8306_v60 = vld [vmem:[#allocation149_spill] sm:$0xff] }
 0x598   : > { %v4318_v39 = vadd.f32 %v4062_v32, %v8300_v53  ;;  %vm2305_vm0 = vcmp.eq.s32.totalorder %v1653_v33, 1  ;;  %vm2561_vm2 = vcmp.eq.s32.totalorder %v1653_v33, 2 }
 0x599   : > { %4982 = vset.pattern.permute.xlu2 %v5138_v2  ;;  %v3330_v19 = vsel %vm2561_vm2, %v7162_v23, 0.0 }
 0x59a   : > { %4983 = vset.pattern.permute.xlu1 %v5161_v7  ;;  %4575 = vst.msk [vmem:[%s6043_s13 + $0x5f8] sm:$0xff] %vm4383_vm1, %v4318_v39  ;;  %v4099_v25 = vsel %vm2305_vm0, %v7168_v63, %v3330_v19  ;;  %v8310_v19 = vld [vmem:[#allocation153_spill] sm:$0xff] }
 0x59b   : > { %v1451_v42 = vpop.permute.xlu2 %1450  ;;  %v4355_v47 = vadd.f32 %v4099_v25, %v8303_v22 }
 0x59c   : > { %vm2272_vm6 = vcmp.eq.s32.totalorder %v1451_v42, 1  ;;  %vm2528_vm7 = vcmp.eq.s32.totalorder %v1451_v42, 2 }
 0x59d   : > { %v3297_v16 = vsel %vm2528_vm7, %v7162_v23, 0.0  ;;  %4612 = vst.msk [vmem:[%s6043_s13 + $0x720] sm:$0xff] %vm4383_vm1, %v4355_v47 }
 0x59e   : > { %v4066_v59 = vsel %vm2272_vm6, %v7168_v63, %v3297_v16 }
 0x59f   : > { %v4322_v26 = vadd.f32 %v4066_v59, %v8298_v57  ;;  %v263_v59 = vpop.permute.xlu0 %262  ;;  %1009 = vperm.xlu0 %5009, %v6681_v31  }
 0x5a0   : > { %vm2078_vm5 = vcmp.eq.s32.totalorder %v263_v59, 1  ;;  %vm2334_vm6 = vcmp.eq.s32.totalorder %v263_v59, 2 }
 0x5a1   : > { %1542 = vperm.xlu2 %4982, %v7353_v34   ;;  %4579 = vst.msk [vmem:[%s6043_s13 + $0x618] sm:$0xff] %vm4383_vm1, %v4322_v26  ;;  %v3103_v43 = vsel %vm2334_vm6, %v7162_v23, 0.0 }
 0x5a2   : > { %1548 = vperm.xlu1 %4983, %v7353_v34   ;;  %v3872_v26 = vsel %vm2078_vm5, %v7168_v63, %v3103_v43 }
 0x5a3   : > { %v4128_v55 = vadd.f32 %v3872_v26, %v8305_v41 }
 0x5a4   : > { %v1445_v61 = vpop.permute.xlu1 %1444 }
 0x5a5   : > { %vm2271_vm3 = vcmp.eq.s32.totalorder %v1445_v61, 1  ;;  %vm2527_vm4 = vcmp.eq.s32.totalorder %v1445_v61, 2  ;;  %4385 = vst.msk [vmem:[%s6043_s13 + $0x8] sm:$0xff] %vm4383_vm1, %v4128_v55 }
 0x5a6   : > { %v3296_v42 = vsel %vm2527_vm4, %v7162_v23, 0.0 }
 0x5a7   : > { %v4065_v16 = vsel %vm2271_vm3, %v7168_v63, %v3296_v42  ;;  %v459_v52 = vpop.permute.xlu0 %458  ;;  %1254 = vperm.xlu0 %5009, %v6934_v48  }
 0x5a8   : > { %v4321_v56 = vadd.f32 %v4065_v16, %v8304_v37  ;;  %vm2110_vm9 = vcmp.eq.s32.totalorder %v459_v52, 1  ;;  %vm2366_vm10 = vcmp.eq.s32.totalorder %v459_v52, 2  ;;  %v8311_v37 = vld [vmem:[#allocation156_spill] sm:$0xff] }
 0x5a9   : > { %4984 = vset.pattern.permute.xlu2 %v5142_v3  ;;  %v3135_v50 = vsel %vm2366_vm10, %v7162_v23, 0.0 }
 0x5aa   : > { %4985 = vset.pattern.permute.xlu1 %v5171_v9  ;;  %4578 = vst.msk [vmem:[%s6043_s13 + $0x610] sm:$0xff] %vm4383_vm1, %v4321_v56  ;;  %v3904_v53 = vsel %vm2110_vm9, %v7168_v63, %v3135_v50 }
 0x5ab   : > { %v1463_v46 = vpop.permute.xlu2 %1462 }
 0x5ac   : > { %vm2274_vm14 = vcmp.eq.s32.totalorder %v1463_v46, 1  ;;  %vm2530_vm15 = vcmp.eq.s32.totalorder %v1463_v46, 2  ;;  %v4160_v46 = vadd.f32 %v3904_v53, %v8307_v44 }
 0x5ad   : > { %v3299_v20 = vsel %vm2530_vm15, %v7162_v23, 0.0 }
 0x5ae   : > { %v4068_v45 = vsel %vm2274_vm14, %v7168_v63, %v3299_v20  ;;  %4417 = vst.msk [vmem:[%s6043_s13 + $0x108] sm:$0xff] %vm4383_vm1, %v4160_v46 }
 0x5af   : > { %v4324_v17 = vadd.f32 %v4068_v45, %v8302_v62  ;;  %v704_v14 = vpop.permute.xlu0 %703  ;;  %1499 = vperm.xlu0 %5009, %v7252_v12  }
 0x5b0   : > { %vm2150_vm13 = vcmp.eq.s32.totalorder %v704_v14, 1  ;;  %vm2406_vm14 = vcmp.eq.s32.totalorder %v704_v14, 2 }
 0x5b1   : > { %1554 = vperm.xlu2 %4984, %v7353_v34   ;;  %4581 = vst.msk [vmem:[%s6043_s13 + $0x628] sm:$0xff] %vm4383_vm1, %v4324_v17  ;;  %v3175_v31 = vsel %vm2406_vm14, %v7162_v23, 0.0  ;;  %v8309_v17 = vld [vmem:[#allocation155_spill] sm:$0xff] }
 0x5b2   : > { %1566 = vperm.xlu1 %4985, %v7353_v34   ;;  %v3944_v45 = vsel %vm2150_vm13, %v7168_v63, %v3175_v31 }
 0x5b3   : > { %v4200_v33 = vadd.f32 %v3944_v45, %v8309_v17 }
 0x5b4   : > { %v1457_v32 = vpop.permute.xlu1 %1456 }
 0x5b5   : > { %vm2273_vm11 = vcmp.eq.s32.totalorder %v1457_v32, 1  ;;  %vm2529_vm12 = vcmp.eq.s32.totalorder %v1457_v32, 2  ;;  %4457 = vst.msk [vmem:[%s6043_s13 + $0x248] sm:$0xff] %vm4383_vm1, %v4200_v33  ;;  %v8314_v32 = vld [vmem:[#allocation157_spill] sm:$0xff] }
 0x5b6   : > { %v3298_v39 = vsel %vm2529_vm12, %v7162_v23, 0.0 }
 0x5b7   : > { %v4067_v5 = vsel %vm2273_vm11, %v7168_v63, %v3298_v39  ;;  %v949_v42 = vpop.permute.xlu0 %948 }
 0x5b8   : > { %v4323_v20 = vadd.f32 %v4067_v5, %v8308_v54  ;;  %vm2190_vm2 = vcmp.eq.s32.totalorder %v949_v42, 1  ;;  %vm2446_vm3 = vcmp.eq.s32.totalorder %v949_v42, 2  ;;  %v8315_v54 = vld [vmem:[#allocation160_spill] sm:$0xff] }
 0x5b9   : > { %4986 = vset.pattern.permute.xlu2 %v5174_v10  ;;  %v3215_v48 = vsel %vm2446_vm3, %v7162_v23, 0.0 }
 0x5ba   : > { %4987 = vset.pattern.permute.xlu1 %v5132_v1  ;;  %4580 = vst.msk [vmem:[%s6043_s13 + $0x620] sm:$0xff] %vm4383_vm1, %v4323_v20  ;;  %v3984_v47 = vsel %vm2190_vm2, %v7168_v63, %v3215_v48 }
 0x5bb   : > { %v1482_v57 = vpop.permute.xlu2 %1481  ;;  %v4240_v56 = vadd.f32 %v3984_v47, %v8311_v37  ;;  %v8319_v37 = vld [vmem:[#allocation3_spill] sm:$0xff] }
 0x5bc   : > { %vm2277_vm7 = vcmp.eq.s32.totalorder %v1482_v57, 1  ;;  %vm2533_vm8 = vcmp.eq.s32.totalorder %v1482_v57, 2  ;;  %v8312_v57 = vld [vmem:[#allocation150_spill] sm:$0xff] }
 0x5bd   : > { %v3302_v21 = vsel %vm2533_vm8, %v7162_v23, 0.0  ;;  %4497 = vst.msk [vmem:[%s6043_s13 + $0x388] sm:$0xff] %vm4383_vm1, %v4240_v56  ;;  %v8320_v56 = vld [vmem:[#allocation158_spill] sm:$0xff] }
 0x5be   : > { %v4071_v49 = vsel %vm2277_vm7, %v7168_v63, %v3302_v21  ;;  %v7456_v21 = vperm.slane %v7024_v4, 6 }
 0x5bf   : > { %v4327_v28 = vadd.f32 %v4071_v49, %v8306_v60  ;;  %v1194_v26 = vpop.permute.xlu0 %1193  ;;  %v8313_v60 = vld [vmem:[#allocation159_spill] sm:$0xff] }
 0x5c0   : > { %vm2230_vm6 = vcmp.eq.s32.totalorder %v1194_v26, 1  ;;  %vm2486_vm7 = vcmp.eq.s32.totalorder %v1194_v26, 2  ;;  %1744 = vperm.xlu0 %5009, %v7456_v21   ;;  %v8321_v26 = vld [vmem:[#allocation164_spill] sm:$0xff] }
 0x5c1   : > { %1572 = vperm.xlu2 %4986, %v7353_v34   ;;  %4584 = vst.msk [vmem:[%s6043_s13 + $0x640] sm:$0xff] %vm4383_vm1, %v4327_v28  ;;  %v3255_v41 = vsel %vm2486_vm7, %v7162_v23, 0.0 }
 0x5c2   : > { %1579 = vperm.xlu1 %4987, %v7029_v18   ;;  %v4024_v55 = vsel %vm2230_vm6, %v7168_v63, %v3255_v41 }
 0x5c3   : > { %v4280_v28 = vadd.f32 %v4024_v55, %v8313_v60 }
 0x5c4   : > { %v1475_v22 = vpop.permute.xlu1 %1474 }
 0x5c5   : > { %vm2276_vm4 = vcmp.eq.s32.totalorder %v1475_v22, 1  ;;  %vm2532_vm5 = vcmp.eq.s32.totalorder %v1475_v22, 2  ;;  %4537 = vst.msk [vmem:[%s6043_s13 + $0x4c8] sm:$0xff] %vm4383_vm1, %v4280_v28  ;;  %v8318_v22 = vld [vmem:[#allocation161_spill] sm:$0xff] }
 0x5c6   : > { %v3301_v16 = vsel %vm2532_vm5, %v7162_v23, 0.0 }
 0x5c7   : > { %v4070_v59 = vsel %vm2276_vm4, %v7168_v63, %v3301_v16  ;;  %v1439_v53 = vpop.permute.xlu0 %1438 }
 0x5c8   : > { %v4326_v43 = vadd.f32 %v4070_v59, %v8312_v57  ;;  %vm2270_vm10 = vcmp.eq.s32.totalorder %v1439_v53, 1  ;;  %vm2526_vm11 = vcmp.eq.s32.totalorder %v1439_v53, 2  ;;  %5014 = vset.pattern.permute.xlu0 %v5132_v1  ;;  %v8323_v53 = vld [vmem:[#allocation162_spill] sm:$0xff] }
 0x5c9   : > { %4988 = vset.pattern.permute.xlu2 %v5181_v11  ;;  %v3295_v44 = vsel %vm2526_vm11, %v7162_v23, 0.0 }
 0x5ca   : > { %4990 = vset.pattern.permute.xlu1 %v5161_v7  ;;  %4583 = vst.msk [vmem:[%s6043_s13 + $0x638] sm:$0xff] %vm4383_vm1, %v4326_v43  ;;  %v4064_v46 = vsel %vm2270_vm10, %v7168_v63, %v3295_v44 }
 0x5cb   : > { %v1494_v30 = vpop.permute.xlu2 %1493  ;;  %v4320_v20 = vadd.f32 %v4064_v46, %v8315_v54 }
 0x5cc   : > { %vm2279_vm15 = vcmp.eq.s32.totalorder %v1494_v30, 1  ;;  %vm2535_vm0 = vcmp.eq.s32.totalorder %v1494_v30, 2  ;;  %v8316_v30 = vld [vmem:[#allocation154_spill] sm:$0xff] }
 0x5cd   : > { %v3304_v62 = vsel %vm2535_vm0, %v7162_v23, 0.0  ;;  %4577 = vst.msk [vmem:[%s6043_s13 + $0x608] sm:$0xff] %vm4383_vm1, %v4320_v20 }
 0x5ce   : > { %v4073_v61 = vsel %vm2279_vm15, %v7168_v63, %v3304_v62 }
 0x5cf   : > { %v4329_v25 = vadd.f32 %v4073_v61, %v8310_v19  ;;  %v1684_v45 = vpop.permute.xlu0 %1683  ;;  %v8317_v19 = vld [vmem:[#allocation163_spill] sm:$0xff] }
 0x5d0   : > { %vm2310_vm14 = vcmp.eq.s32.totalorder %v1684_v45, 1  ;;  %vm2566_vm15 = vcmp.eq.s32.totalorder %v1684_v45, 2  ;;  %256 = vperm.xlu0 %5014, %v8275_v51   ;;  %v8325_v45 = vld [vmem:[#allocation167_spill] sm:$0xff] }
 0x5d1   : > { %1585 = vperm.xlu2 %4988, %v7029_v18   ;;  %4586 = vst.msk [vmem:[%s6043_s13 + $0x650] sm:$0xff] %vm4383_vm1, %v4329_v25  ;;  %v3335_v17 = vsel %vm2566_vm15, %v7162_v23, 0.0 }
 0x5d2   : > { %1597 = vperm.xlu1 %4990, %v7029_v18   ;;  %v4104_v33 = vsel %vm2310_vm14, %v7168_v63, %v3335_v17 }
 0x5d3   : > { %v4360_v25 = vadd.f32 %v4104_v33, %v8317_v19 }
 0x5d4   : > { %v1488_v39 = vpop.permute.xlu1 %1487 }
 0x5d5   : > { %vm2278_vm12 = vcmp.eq.s32.totalorder %v1488_v39, 1  ;;  %vm2534_vm13 = vcmp.eq.s32.totalorder %v1488_v39, 2  ;;  %4617 = vst.msk [vmem:[%s6043_s13 + $0x748] sm:$0xff] %vm4383_vm1, %v4360_v25 }
 0x5d6   : > { %v3303_v5 = vsel %vm2534_vm13, %v7162_v23, 0.0 }
 0x5d7   : > { %v4072_v14 = vsel %vm2278_vm12, %v7168_v63, %v3303_v5  ;;  %v489_v41 = vpop.permute.xlu0 %488 }
 0x5d8   : > { %v4328_v31 = vadd.f32 %v4072_v14, %v8316_v30  ;;  %305 = vperm.xlu0 %5014, %v8319_v37   ;;  %vm2115_vm7 = vcmp.eq.s32.totalorder %v489_v41, 1  ;;  %v8324_v14 = vld [vmem:[#allocation169_spill] sm:$0xff] }
 0x5d9   : > { %4991 = vset.pattern.permute.xlu2 %v5142_v3 }
 0x5da   : > { %4992 = vset.pattern.permute.xlu1 %v5164_v8  ;;  %4585 = vst.msk [vmem:[%s6043_s13 + $0x648] sm:$0xff] %vm4383_vm1, %v4328_v31 }
 0x5db   : > { %v1512_v12 = vpop.permute.xlu2 %1511 }
 0x5dc   : > { %vm2282_vm8 = vcmp.eq.s32.totalorder %v1512_v12, 1  ;;  %vm2538_vm9 = vcmp.eq.s32.totalorder %v1512_v12, 2 }
 0x5dd   : > { %v3307_v49 = vsel %vm2538_vm9, %v7162_v23, 0.0 }
 0x5de   : > { %v4076_v52 = vsel %vm2282_vm8, %v7168_v63, %v3307_v49  ;;  %vm2371_vm8 = vcmp.eq.s32.totalorder %v489_v41, 2  ;;  %v8329_v41 = vld [vmem:[#allocation171_spill] sm:$0xff] }
 0x5df   : > { %v4332_v50 = vadd.f32 %v4076_v52, %v8314_v32  ;;  %v3140_v49 = vsel %vm2371_vm8, %v7162_v23, 0.0  ;;  %v8322_v52 = vld [vmem:[#allocation166_spill] sm:$0xff]  ;;  %v734_v44 = vpop.permute.xlu0 %733 }
 0x5e0   : > { %550 = vperm.xlu0 %5014, %v6242_v6   ;;  %v3909_v60 = vsel %vm2115_vm7, %v7168_v63, %v3140_v49  ;;  %vm2155_vm11 = vcmp.eq.s32.totalorder %v734_v44, 1  ;;  %vm2411_vm12 = vcmp.eq.s32.totalorder %v734_v44, 2  ;;  %v8331_v44 = vld [vmem:[#allocation168_spill] sm:$0xff] }
 0x5e1   : > { %1603 = vperm.xlu2 %4991, %v7029_v18   ;;  %4589 = vst.msk [vmem:[%s6043_s13 + $0x668] sm:$0xff] %vm4383_vm1, %v4332_v50  ;;  %v4165_v32 = vadd.f32 %v3909_v60, %v8322_v52  ;;  %v3180_v5 = vsel %vm2411_vm12, %v7162_v23, 0.0 }
 0x5e2   : > { %1609 = vperm.xlu1 %4992, %v7029_v18   ;;  %v3949_v54 = vsel %vm2155_vm11, %v7168_v63, %v3180_v5  ;;  %v7574_v5 = vperm.slane %v7024_v4, 7  ;;  %v7586_v4 = vld [vmem:[%s7932_s2 + $0x1] ss:$0 sm:$0xff] }
 0x5e3   : > { %4422 = vst.msk [vmem:[%s6043_s13 + $0x130] sm:$0xff] %vm4383_vm1, %v4165_v32  ;;  %v4205_v30 = vadd.f32 %v3949_v54, %v8324_v14 }
 0x5e4   : > { %v1506_v47 = vpop.permute.xlu1 %1505 }
 0x5e5   : > { %vm2281_vm3 = vcmp.eq.s32.totalorder %v1506_v47, 1  ;;  %vm2537_vm4 = vcmp.eq.s32.totalorder %v1506_v47, 2  ;;  %4462 = vst.msk [vmem:[%s6043_s13 + $0x270] sm:$0xff] %vm4383_vm1, %v4205_v30  ;;  %v8327_v47 = vld [vmem:[#allocation165_spill] sm:$0xff] }
 0x5e6   : > { %v3306_v16 = vsel %vm2537_vm4, %v7162_v23, 0.0 }
 0x5e7   : > { %v4075_v51 = vsel %vm2281_vm3, %v7168_v63, %v3306_v16  ;;  %v979_v17 = vpop.permute.xlu0 %978 }
 0x5e8   : > { %v4331_v59 = vadd.f32 %v4075_v51, %v8320_v56  ;;  %795 = vperm.xlu0 %5014, %v6498_v38   ;;  %vm2195_vm15 = vcmp.eq.s32.totalorder %v979_v17, 1 }
 0x5e9   : > { %4993 = vset.pattern.permute.xlu2 %v5171_v9 }
 0x5ea   : > { %4995 = vset.pattern.permute.xlu1 %v5132_v1  ;;  %4588 = vst.msk [vmem:[%s6043_s13 + $0x660] sm:$0xff] %vm4383_vm1, %v4331_v59 }
 0x5eb   : > { %v1524_v62 = vpop.permute.xlu2 %1523 }
 0x5ec   : > { %vm2284_vm0 = vcmp.eq.s32.totalorder %v1524_v62, 1  ;;  %vm2540_vm2 = vcmp.eq.s32.totalorder %v1524_v62, 2 }
 0x5ed   : > { %v3309_v61 = vsel %vm2540_vm2, %v7162_v23, 0.0 }
 0x5ee   : > { %v4078_v42 = vsel %vm2284_vm0, %v7168_v63, %v3309_v61  ;;  %vm2451_vm0 = vcmp.eq.s32.totalorder %v979_v17, 2  ;;  %v8333_v17 = vld [vmem:[#allocation175_spill] sm:$0xff] }
 0x5ef   : > { %v4334_v48 = vadd.f32 %v4078_v42, %v8318_v22  ;;  %v3220_v61 = vsel %vm2451_vm0, %v7162_v23, 0.0  ;;  %v8326_v42 = vld [vmem:[#allocation170_spill] sm:$0xff]  ;;  %v1224_v51 = vpop.permute.xlu0 %1223 }
 0x5f0   : > { %1040 = vperm.xlu0 %5014, %v6751_v36   ;;  %v3989_v19 = vsel %vm2195_vm15, %v7168_v63, %v3220_v61  ;;  %vm2235_vm4 = vcmp.eq.s32.totalorder %v1224_v51, 1 }
 0x5f1   : > { %1615 = vperm.xlu2 %4993, %v7029_v18   ;;  %4591 = vst.msk [vmem:[%s6043_s13 + $0x678] sm:$0xff] %vm4383_vm1, %v4334_v48  ;;  %v4245_v22 = vadd.f32 %v3989_v19, %v8326_v42 }
 0x5f2   : > { %1628 = vperm.xlu1 %4995, %v7155_v0  }
 0x5f3   : > { %4502 = vst.msk [vmem:[%s6043_s13 + $0x3b0] sm:$0xff] %vm4383_vm1, %v4245_v22  ;;  %v8334_v22 = vld [vmem:[#allocation178_spill] sm:$0xff] }
 0x5f4   : > { %v1518_v55 = vpop.permute.xlu1 %1517 }
 0x5f5   : > { %vm2283_vm9 = vcmp.eq.s32.totalorder %v1518_v55, 1  ;;  %vm2539_vm10 = vcmp.eq.s32.totalorder %v1518_v55, 2 }
 0x5f6   : > { %v3308_v28 = vsel %vm2539_vm10, %v7162_v23, 0.0 }
 0x5f7   : > { %v4077_v50 = vsel %vm2283_vm9, %v7168_v63, %v3308_v28  ;;  %v1469_v49 = vpop.permute.xlu0 %1468 }
 0x5f8   : > { %v4333_v39 = vadd.f32 %v4077_v50, %v8323_v53  ;;  %1285 = vperm.xlu0 %5014, %v6991_v58   ;;  %vm2275_vm8 = vcmp.eq.s32.totalorder %v1469_v49, 1  ;;  %vm2531_vm9 = vcmp.eq.s32.totalorder %v1469_v49, 2  ;;  %v8330_v50 = vld [vmem:[#allocation174_spill] sm:$0xff] }
 0x5f9   : > { %4996 = vset.pattern.permute.xlu2 %v5181_v11  ;;  %v3300_v28 = vsel %vm2531_vm9, %v7162_v23, 0.0 }
 0x5fa   : > { %4997 = vset.pattern.permute.xlu1 %v5138_v2  ;;  %4590 = vst.msk [vmem:[%s6043_s13 + $0x670] sm:$0xff] %vm4383_vm1, %v4333_v39  ;;  %v4069_v52 = vsel %vm2275_vm8, %v7168_v63, %v3300_v28 }
 0x5fb   : > { %v1543_v18 = vpop.permute.xlu2 %1542  ;;  %v4325_v53 = vadd.f32 %v4069_v52, %v8330_v50  ;;  %v8338_v50 = vld [vmem:[#allocation182_spill] sm:$0xff] }
 0x5fc   : > { %vm2287_vm5 = vcmp.eq.s32.totalorder %v1543_v18, 1  ;;  %vm2543_vm6 = vcmp.eq.s32.totalorder %v1543_v18, 2 }
 0x5fd   : > { %v3312_v57 = vsel %vm2543_vm6, %v7162_v23, 0.0  ;;  %4582 = vst.msk [vmem:[%s6043_s13 + $0x630] sm:$0xff] %vm4383_vm1, %v4325_v53 }
 0x5fe   : > { %v4081_v43 = vsel %vm2287_vm5, %v7168_v63, %v3312_v57  ;;  %vm2491_vm5 = vcmp.eq.s32.totalorder %v1224_v51, 2 }
 0x5ff   : > { %v4337_v12 = vadd.f32 %v4081_v43, %v8321_v26  ;;  %v3260_v59 = vsel %vm2491_vm5, %v7162_v23, 0.0  ;;  %v8328_v43 = vld [vmem:[#allocation173_spill] sm:$0xff]  ;;  %v1714_v54 = vpop.permute.xlu0 %1713 }
 0x600   : > { %v4029_v18 = vsel %vm2235_vm4, %v7168_v63, %v3260_v59  ;;  %1530 = vperm.xlu0 %5014, %v7353_v34   ;;  %vm2315_vm12 = vcmp.eq.s32.totalorder %v1714_v54, 1 }
 0x601   : > { %1634 = vperm.xlu2 %4996, %v7155_v0   ;;  %4594 = vst.msk [vmem:[%s6043_s13 + $0x690] sm:$0xff] %vm4383_vm1, %v4337_v12  ;;  %v4285_v26 = vadd.f32 %v4029_v18, %v8328_v43 }
 0x602   : > { %1640 = vperm.xlu1 %4997, %v7155_v0  }
 0x603   : > { %4542 = vst.msk [vmem:[%s6043_s13 + $0x4f0] sm:$0xff] %vm4383_vm1, %v4285_v26  ;;  %v8336_v26 = vld [vmem:[#allocation181_spill] sm:$0xff] }
 0x604   : > { %v1537_v33 = vpop.permute.xlu1 %1536 }
 0x605   : > { %vm2286_vm2 = vcmp.eq.s32.totalorder %v1537_v33, 1  ;;  %vm2542_vm3 = vcmp.eq.s32.totalorder %v1537_v33, 2 }
 0x606   : > { %v3311_v25 = vsel %vm2542_vm3, %v7162_v23, 0.0 }
 0x607   : > { %v4080_v48 = vsel %vm2286_vm2, %v7168_v63, %v3311_v25  ;;  %v520_v61 = vpop.permute.xlu0 %519 }
 0x608   : > { %v4336_v16 = vadd.f32 %v4080_v48, %v8327_v47  ;;  %1775 = vperm.xlu0 %5014, %v7574_v5   ;;  %vm2120_vm0 = vcmp.eq.s32.totalorder %v520_v61, 1  ;;  %vm2376_vm2 = vcmp.eq.s32.totalorder %v520_v61, 2 }
 0x609   : > { %4998 = vset.pattern.permute.xlu2 %v5161_v7  ;;  %v3145_v25 = vsel %vm2376_vm2, %v7586_v4, 0.0 }
 0x60a   : > { %5000 = vset.pattern.permute.xlu1 %v5164_v8  ;;  %4593 = vst.msk [vmem:[%s6043_s13 + $0x688] sm:$0xff] %vm4383_vm1, %v4336_v16  ;;  %v8335_v16 = vld [vmem:[#allocation172_spill] sm:$0xff] }
 0x60b   : > { %v1555_v46 = vpop.permute.xlu2 %1554 }
 0x60c   : > { %vm2289_vm13 = vcmp.eq.s32.totalorder %v1555_v46, 1  ;;  %vm2545_vm14 = vcmp.eq.s32.totalorder %v1555_v46, 2 }
 0x60d   : > { %v3314_v20 = vsel %vm2545_vm14, %v7162_v23, 0.0 }
 0x60e   : > { %v4083_v31 = vsel %vm2289_vm13, %v7168_v63, %v3314_v20  ;;  %vm2571_vm13 = vcmp.eq.s32.totalorder %v1714_v54, 2  ;;  %v7592_v20 = vld [vmem:[%s7932_s2] ss:$0 sm:$0xff] }
 0x60f   : > { %v4339_v62 = vadd.f32 %v4083_v31, %v8325_v45  ;;  %v8332_v31 = vld [vmem:[#allocation177_spill] sm:$0xff]  ;;  %v3914_v42 = vsel %vm2120_vm0, %v7592_v20, %v3145_v25 }
 0x610   : > { %5019 = vset.pattern.permute.xlu0 %v5164_v8  ;;  %v4170_v48 = vadd.f32 %v3914_v42, %v8334_v22  ;;  %v8342_v42 = vld [vmem:[#allocation186_spill] sm:$0xff] }
 0x611   : > { %1646 = vperm.xlu2 %4998, %v7155_v0   ;;  %4596 = vst.msk [vmem:[%s6043_s13 + $0x6a0] sm:$0xff] %vm4383_vm1, %v4339_v62 }
 0x612   : > { %1658 = vperm.xlu1 %5000, %v7155_v0   ;;  %4427 = vst.msk [vmem:[%s6043_s13 + $0x158] sm:$0xff] %vm4383_vm1, %v4170_v48  ;;  %v8343_v48 = vld [vmem:[#allocation180_spill] sm:$0xff] }
 0x614   : > { %v1549_v60 = vpop.permute.xlu1 %1548 }
 0x615   : > { %vm2288_vm10 = vcmp.eq.s32.totalorder %v1549_v60, 1  ;;  %vm2544_vm11 = vcmp.eq.s32.totalorder %v1549_v60, 2 }
 0x616   : > { %v3313_v32 = vsel %vm2544_vm11, %v7162_v23, 0.0 }
 0x617   : > { %v4082_v39 = vsel %vm2288_vm10, %v7168_v63, %v3313_v32 }
 0x618   : > { %v4338_v46 = vadd.f32 %v4082_v39, %v8331_v44  ;;  %335 = vperm.xlu0 %5019, %v8319_v37   ;;  %v8339_v44 = vld [vmem:[#allocation176_spill] sm:$0xff] }
 0x619   : > { %5001 = vset.pattern.permute.xlu2 %v5171_v9 }
 0x61a   : > { %5002 = vset.pattern.permute.xlu1 %v5174_v10  ;;  %4595 = vst.msk [vmem:[%s6043_s13 + $0x698] sm:$0xff] %vm4383_vm1, %v4338_v46 }
 0x61b   : > { %v1573_v56 = vpop.permute.xlu2 %1572 }
 0x61c   : > { %vm2292_vm6 = vcmp.eq.s32.totalorder %v1573_v56, 1  ;;  %vm2548_vm7 = vcmp.eq.s32.totalorder %v1573_v56, 2  ;;  %v765_v56 = vpop.permute.xlu0 %764 }
 0x61d   : > { %v3317_v57 = vsel %vm2548_vm7, %v7162_v23, 0.0  ;;  %vm2160_vm5 = vcmp.eq.s32.totalorder %v765_v56, 1 }
 0x61e   : > { %v4086_v12 = vsel %vm2292_vm6, %v7168_v63, %v3317_v57  ;;  %v3340_v63 = vsel %vm2571_vm13, %v7586_v4, 0.0  ;;  %vm2416_vm6 = vcmp.eq.s32.totalorder %v765_v56, 2 }
 0x61f   : > { %v4342_v55 = vadd.f32 %v4086_v12, %v8329_v41  ;;  %v4109_v14 = vsel %vm2315_vm12, %v7592_v20, %v3340_v63  ;;  %v3185_v18 = vsel %vm2416_vm6, %v7586_v4, 0.0 }
 0x620   : > { %v4365_v45 = vadd.f32 %v4109_v14, %v8332_v31  ;;  %v3954_v57 = vsel %vm2160_vm5, %v7592_v20, %v3185_v18  ;;  %580 = vperm.xlu0 %5019, %v6242_v6   ;;  %v8344_v18 = vld [vmem:[#allocation189_spill] sm:$0xff] }
 0x621   : > { %1664 = vperm.xlu2 %5001, %v7155_v0   ;;  %4599 = vst.msk [vmem:[%s6043_s13 + $0x6b8] sm:$0xff] %vm4383_vm1, %v4342_v55  ;;  %v4210_v12 = vadd.f32 %v3954_v57, %v8336_v26  ;;  %v8337_v55 = vld [vmem:[#allocation179_spill] sm:$0xff] }
 0x622   : > { %4622 = vst.msk [vmem:[%s6043_s13 + $0x770] sm:$0xff] %vm4383_vm1, %v4365_v45  ;;  %1670 = vperm.xlu1 %5002, %v7155_v0  }
 0x623   : > { %4467 = vst.msk [vmem:[%s6043_s13 + $0x298] sm:$0xff] %vm4383_vm1, %v4210_v12 }
 0x624   : > { %v1567_v19 = vpop.permute.xlu1 %1566  ;;  %v1010_v37 = vpop.permute.xlu0 %1009 }
 0x625   : > { %vm2291_vm3 = vcmp.eq.s32.totalorder %v1567_v19, 1  ;;  %vm2547_vm4 = vcmp.eq.s32.totalorder %v1567_v19, 2  ;;  %vm2200_vm9 = vcmp.eq.s32.totalorder %v1010_v37, 1  ;;  %vm2456_vm10 = vcmp.eq.s32.totalorder %v1010_v37, 2 }
 0x626   : > { %v3316_v0 = vsel %vm2547_vm4, %v7586_v4, 0.0  ;;  %v3225_v28 = vsel %vm2456_vm10, %v7586_v4, 0.0 }
 0x627   : > { %v4085_v47 = vsel %vm2291_vm3, %v7592_v20, %v3316_v0  ;;  %v3994_v52 = vsel %vm2200_vm9, %v7592_v20, %v3225_v28  ;;  %v8347_v28 = vld [vmem:[#allocation184_spill] sm:$0xff] }
 0x628   : > { %v4341_v51 = vadd.f32 %v4085_v47, %v8335_v16  ;;  %v4250_v53 = vadd.f32 %v3994_v52, %v8338_v50  ;;  %825 = vperm.xlu0 %5019, %v6498_v38  }
 0x629   : > { %5003 = vset.pattern.permute.xlu2 %v5132_v1 }
 0x62a   : > { %5005 = vset.pattern.permute.xlu1 %v5138_v2  ;;  %4598 = vst.msk [vmem:[%s6043_s13 + $0x6b0] sm:$0xff] %vm4383_vm1, %v4341_v51 }
 0x62b   : > { %v1586_v23 = vpop.permute.xlu2 %1585  ;;  %4507 = vst.msk [vmem:[%s6043_s13 + $0x3d8] sm:$0xff] %vm4383_vm1, %v4250_v53 }
 0x62c   : > { %vm2294_vm14 = vcmp.eq.s32.totalorder %v1586_v23, 1  ;;  %vm2550_vm15 = vcmp.eq.s32.totalorder %v1586_v23, 2  ;;  %v1255_v6 = vpop.permute.xlu0 %1254 }
 0x62d   : > { %v3319_v30 = vsel %vm2550_vm15, %v7586_v4, 0.0  ;;  %vm2240_vm13 = vcmp.eq.s32.totalorder %v1255_v6, 1 }
 0x62e   : > { %v4088_v62 = vsel %vm2294_vm14, %v7592_v20, %v3319_v30  ;;  %vm2496_vm14 = vcmp.eq.s32.totalorder %v1255_v6, 2  ;;  %v8340_v30 = vld [vmem:[#allocation185_spill] sm:$0xff] }
 0x62f   : > { %v4344_v33 = vadd.f32 %v4088_v62, %v8333_v17  ;;  %v3265_v23 = vsel %vm2496_vm14, %v7586_v4, 0.0  ;;  %v8341_v62 = vld [vmem:[#allocation183_spill] sm:$0xff] }
 0x630   : > { %v4034_v63 = vsel %vm2240_vm13, %v7592_v20, %v3265_v23  ;;  %1070 = vperm.xlu0 %5019, %v6751_v36  }
 0x631   : > { %1677 = vperm.xlu2 %5003, %v7273_v27   ;;  %4601 = vst.msk [vmem:[%s6043_s13 + $0x6c8] sm:$0xff] %vm4383_vm1, %v4344_v33  ;;  %v4290_v31 = vadd.f32 %v4034_v63, %v8340_v30 }
 0x632   : > { %1689 = vperm.xlu1 %5005, %v7273_v27  }
 0x633   : > { %4547 = vst.msk [vmem:[%s6043_s13 + $0x518] sm:$0xff] %vm4383_vm1, %v4290_v31 }
 0x634   : > { %v1580_v60 = vpop.permute.xlu1 %1579  ;;  %v1500_v38 = vpop.permute.xlu0 %1499 }
 0x635   : > { %vm2293_vm11 = vcmp.eq.s32.totalorder %v1580_v60, 1  ;;  %vm2549_vm12 = vcmp.eq.s32.totalorder %v1580_v60, 2  ;;  %vm2280_vm2 = vcmp.eq.s32.totalorder %v1500_v38, 1  ;;  %vm2536_vm3 = vcmp.eq.s32.totalorder %v1500_v38, 2 }
 0x636   : > { %v3318_v32 = vsel %vm2549_vm12, %v7586_v4, 0.0  ;;  %v3305_v61 = vsel %vm2536_vm3, %v7586_v4, 0.0 }
 0x637   : > { %v4087_v39 = vsel %vm2293_vm11, %v7592_v20, %v3318_v32  ;;  %v4074_v19 = vsel %vm2280_vm2, %v7592_v20, %v3305_v61 }
 0x638   : > { %v4343_v46 = vadd.f32 %v4087_v39, %v8339_v44  ;;  %v4330_v0 = vadd.f32 %v4074_v19, %v8342_v42  ;;  %1315 = vperm.xlu0 %5019, %v6991_v58   ;;  %v8348_v44 = vld [vmem:[#allocation193_spill] sm:$0xff] }
 0x639   : > { %5006 = vset.pattern.permute.xlu2 %v5161_v7 }
 0x63a   : > { %5007 = vset.pattern.permute.xlu1 %v5142_v3  ;;  %4600 = vst.msk [vmem:[%s6043_s13 + $0x6c0] sm:$0xff] %vm4383_vm1, %v4343_v46 }
 0x63b   : > { %v1604_v59 = vpop.permute.xlu2 %1603  ;;  %4587 = vst.msk [vmem:[%s6043_s13 + $0x658] sm:$0xff] %vm4383_vm1, %v4330_v0 }
 0x63c   : > { %vm2297_vm7 = vcmp.eq.s32.totalorder %v1604_v59, 1  ;;  %vm2553_vm8 = vcmp.eq.s32.totalorder %v1604_v59, 2  ;;  %v1745_v36 = vpop.permute.xlu0 %1744 }
 0x63d   : > { %v3322_v43 = vsel %vm2553_vm8, %v7586_v4, 0.0  ;;  %vm2320_vm6 = vcmp.eq.s32.totalorder %v1745_v36, 1 }
 0x63e   : > { %v4091_v41 = vsel %vm2297_vm7, %v7592_v20, %v3322_v43  ;;  %vm2576_vm7 = vcmp.eq.s32.totalorder %v1745_v36, 2  ;;  %v8345_v43 = vld [vmem:[#allocation187_spill] sm:$0xff] }
 0x63f   : > { %v4347_v49 = vadd.f32 %v4091_v41, %v8337_v55  ;;  %v3345_v51 = vsel %vm2576_vm7, %v7586_v4, 0.0 }
 0x640   : > { %v4114_v56 = vsel %vm2320_vm6, %v7592_v20, %v3345_v51  ;;  %1560 = vperm.xlu0 %5019, %v7353_v34  }
 0x641   : > { %1695 = vperm.xlu2 %5006, %v7273_v27   ;;  %4604 = vst.msk [vmem:[%s6043_s13 + $0x6e0] sm:$0xff] %vm4383_vm1, %v4347_v49  ;;  %v4370_v57 = vadd.f32 %v4114_v56, %v8344_v18  ;;  %v8346_v49 = vld [vmem:[#allocation190_spill] sm:$0xff] }
 0x642   : > { %1701 = vperm.xlu1 %5007, %v7273_v27  }
 0x643   : > { %4627 = vst.msk [vmem:[%s6043_s13 + $0x798] sm:$0xff] %vm4383_vm1, %v4370_v57 }
 0x644   : > { %v1598_v33 = vpop.permute.xlu1 %1597  ;;  %v257_v58 = vpop.permute.xlu0 %256 }
 0x645   : > { %vm2296_vm4 = vcmp.eq.s32.totalorder %v1598_v33, 1  ;;  %vm2552_vm5 = vcmp.eq.s32.totalorder %v1598_v33, 2  ;;  %vm2077_vm10 = vcmp.eq.s32.totalorder %v257_v58, 1  ;;  %vm2333_vm11 = vcmp.eq.s32.totalorder %v257_v58, 2  ;;  %v8351_v33 = vld [vmem:[#allocation188_spill] sm:$0xff] }
 0x646   : > { %v3321_v25 = vsel %vm2552_vm5, %v7586_v4, 0.0  ;;  %v3102_v41 = vsel %vm2333_vm11, %v7586_v4, 0.0  ;;  %v8355_v58 = vld [vmem:[#allocation192_spill] sm:$0xff] }
 0x647   : > { %v4090_v22 = vsel %vm2296_vm4, %v7592_v20, %v3321_v25  ;;  %v3871_v55 = vsel %vm2077_vm10, %v7592_v20, %v3102_v41 }
 0x648   : > { %v4346_v47 = vadd.f32 %v4090_v22, %v8343_v48  ;;  %v4127_v37 = vadd.f32 %v3871_v55, %v8346_v49  ;;  %1805 = vperm.xlu0 %5019, %v7574_v5   ;;  %v8352_v48 = vld [vmem:[#allocation197_spill] sm:$0xff] }
 0x649   : > { %5008 = vset.pattern.permute.xlu2 %v5164_v8 }
 0x64a   : > { %5010 = vset.pattern.permute.xlu1 %v5174_v10  ;;  %4603 = vst.msk [vmem:[%s6043_s13 + $0x6d8] sm:$0xff] %vm4383_vm1, %v4346_v47 }
 0x64b   : > { %v1616_v54 = vpop.permute.xlu2 %1615  ;;  %4384 = vst.msk [vmem:[%s6043_s13] sm:$0xff] %vm4383_vm1, %v4127_v37 }
 0x64c   : > { %vm2299_vm15 = vcmp.eq.s32.totalorder %v1616_v54, 1  ;;  %vm2555_vm0 = vcmp.eq.s32.totalorder %v1616_v54, 2  ;;  %v306_v34 = vpop.permute.xlu0 %305  ;;  %v8349_v54 = vld [vmem:[#allocation191_spill] sm:$0xff] }
 0x64d   : > { %v3324_v14 = vsel %vm2555_vm0, %v7586_v4, 0.0  ;;  %vm2085_vm14 = vcmp.eq.s32.totalorder %v306_v34, 1 }
 0x64e   : > { %v4093_v45 = vsel %vm2299_vm15, %v7592_v20, %v3324_v14  ;;  %vm2341_vm15 = vcmp.eq.s32.totalorder %v306_v34, 2  ;;  %v8357_v34 = vld [vmem:[#allocation199_spill] sm:$0xff] }
 0x64f   : > { %v4349_v17 = vadd.f32 %v4093_v45, %v8341_v62  ;;  %v3110_v50 = vsel %vm2341_vm15, %v7586_v4, 0.0  ;;  %v8350_v62 = vld [vmem:[#allocation194_spill] sm:$0xff] }
 0x650   : > { %v3879_v53 = vsel %vm2085_vm14, %v7592_v20, %v3110_v50  ;;  %5026 = vset.pattern.permute.xlu0 %v5174_v10 }
 0x651   : > { %1707 = vperm.xlu2 %5008, %v7273_v27   ;;  %4606 = vst.msk [vmem:[%s6043_s13 + $0x6f0] sm:$0xff] %vm4383_vm1, %v4349_v17  ;;  %v4135_v46 = vadd.f32 %v3879_v53, %v8348_v44 }
 0x652   : > { %1719 = vperm.xlu1 %5010, %v7273_v27  }
 0x653   : > { %4392 = vst.msk [vmem:[%s6043_s13 + $0x40] sm:$0xff] %vm4383_vm1, %v4135_v46 }
 0x654   : > { %v1610_v12 = vpop.permute.xlu1 %1609  ;;  %v551_v63 = vpop.permute.xlu0 %550 }
 0x655   : > { %vm2298_vm12 = vcmp.eq.s32.totalorder %v1610_v12, 1  ;;  %vm2554_vm13 = vcmp.eq.s32.totalorder %v1610_v12, 2  ;;  %vm2125_vm3 = vcmp.eq.s32.totalorder %v551_v63, 1  ;;  %vm2381_vm4 = vcmp.eq.s32.totalorder %v551_v63, 2 }
 0x656   : > { %v3323_v27 = vsel %vm2554_vm13, %v7586_v4, 0.0  ;;  %v3150_v30 = vsel %vm2381_vm4, %v7586_v4, 0.0 }
 0x657   : > { %v4092_v60 = vsel %vm2298_vm12, %v7592_v20, %v3323_v27  ;;  %v3919_v31 = vsel %vm2125_vm3, %v7592_v20, %v3150_v30 }
 0x658   : > { %v4348_v52 = vadd.f32 %v4092_v60, %v8347_v28  ;;  %v4175_v17 = vadd.f32 %v3919_v31, %v8350_v62  ;;  %v8356_v60 = vld [vmem:[#allocation201_spill] sm:$0xff] }
 0x659   : > { %5011 = vset.pattern.permute.xlu2 %v5132_v1 }
 0x65a   : > { %5012 = vset.pattern.permute.xlu1 %v5181_v11  ;;  %4605 = vst.msk [vmem:[%s6043_s13 + $0x6e8] sm:$0xff] %vm4383_vm1, %v4348_v52 }
 0x65b   : > { %v1635_v16 = vpop.permute.xlu2 %1634  ;;  %4432 = vst.msk [vmem:[%s6043_s13 + $0x180] sm:$0xff] %vm4383_vm1, %v4175_v17  ;;  %v8360_v17 = vld [vmem:[#allocation203_spill] sm:$0xff] }
 0x65c   : > { %vm2302_vm8 = vcmp.eq.s32.totalorder %v1635_v16, 1  ;;  %vm2558_vm9 = vcmp.eq.s32.totalorder %v1635_v16, 2  ;;  %v796_v19 = vpop.permute.xlu0 %795 }
 0x65d   : > { %v3327_v59 = vsel %vm2558_vm9, %v7586_v4, 0.0  ;;  %vm2165_vm7 = vcmp.eq.s32.totalorder %v796_v19, 1 }
 0x65e   : > { %v4096_v1 = vsel %vm2302_vm8, %v7592_v20, %v3327_v59  ;;  %vm2421_vm8 = vcmp.eq.s32.totalorder %v796_v19, 2 }
 0x65f   : > { %v4352_v26 = vadd.f32 %v4096_v1, %v8345_v43  ;;  %v3190_v42 = vsel %vm2421_vm8, %v7586_v4, 0.0  ;;  %v8354_v1 = vld [vmem:[#allocation198_spill] sm:$0xff] }
 0x660   : > { %v3959_v0 = vsel %vm2165_vm7, %v7592_v20, %v3190_v42  ;;  %v8362_v42 = vld [vmem:[#allocation200_spill] sm:$0xff] }
 0x661   : > { %1726 = vperm.xlu2 %5011, %v7456_v21   ;;  %4609 = vst.msk [vmem:[%s6043_s13 + $0x708] sm:$0xff] %vm4383_vm1, %v4352_v26  ;;  %v4215_v47 = vadd.f32 %v3959_v0, %v8352_v48 }
 0x662   : > { %1732 = vperm.xlu1 %5012, %v7456_v21  }
 0x663   : > { %4472 = vst.msk [vmem:[%s6043_s13 + $0x2c0] sm:$0xff] %vm4383_vm1, %v4215_v47 }
 0x664   : > { %v1629_v14 = vpop.permute.xlu1 %1628  ;;  %v1041_v51 = vpop.permute.xlu0 %1040 }
 0x665   : > { %vm2301_vm5 = vcmp.eq.s32.totalorder %v1629_v14, 1  ;;  %vm2557_vm6 = vcmp.eq.s32.totalorder %v1629_v14, 2  ;;  %vm2205_vm11 = vcmp.eq.s32.totalorder %v1041_v51, 1  ;;  %vm2461_vm12 = vcmp.eq.s32.totalorder %v1041_v51, 2  ;;  %v8364_v51 = vld [vmem:[#allocation208_spill] sm:$0xff] }
 0x666   : > { %v3326_v45 = vsel %vm2557_vm6, %v7586_v4, 0.0  ;;  %v3230_v59 = vsel %vm2461_vm12, %v7586_v4, 0.0 }
 0x667   : > { %v4095_v38 = vsel %vm2301_vm5, %v7592_v20, %v3326_v45  ;;  %v3999_v18 = vsel %vm2205_vm11, %v7592_v20, %v3230_v59 }
 0x668   : > { %v4351_v61 = vadd.f32 %v4095_v38, %v8351_v33  ;;  %v4255_v43 = vadd.f32 %v3999_v18, %v8354_v1  ;;  %v8361_v38 = vld [vmem:[#allocation205_spill] sm:$0xff]  ;;  %v8365_v1 = vld [vmem:[#allocation204_spill] sm:$0xff] }
 0x669   : > { %5013 = vset.pattern.permute.xlu2 %v5138_v2 }
 0x66a   : > { %5015 = vset.pattern.permute.xlu1 %v5142_v3  ;;  %4608 = vst.msk [vmem:[%s6043_s13 + $0x700] sm:$0xff] %vm4383_vm1, %v4351_v61 }
 0x66b   : > { %v1647_v32 = vpop.permute.xlu2 %1646  ;;  %4512 = vst.msk [vmem:[%s6043_s13 + $0x400] sm:$0xff] %vm4383_vm1, %v4255_v43 }
 0x66c   : > { %vm2304_vm0 = vcmp.eq.s32.totalorder %v1647_v32, 1  ;;  %vm2560_vm2 = vcmp.eq.s32.totalorder %v1647_v32, 2  ;;  %v1286_v41 = vpop.permute.xlu0 %1285 }
 0x66d   : > { %v3329_v39 = vsel %vm2560_vm2, %v7586_v4, 0.0  ;;  %vm2245_vm15 = vcmp.eq.s32.totalorder %v1286_v41, 1 }
 0x66e   : > { %v4098_v6 = vsel %vm2304_vm0, %v7592_v20, %v3329_v39  ;;  %vm2501_vm0 = vcmp.eq.s32.totalorder %v1286_v41, 2 }
 0x66f   : > { %v4354_v23 = vadd.f32 %v4098_v6, %v8349_v54  ;;  %v3270_v27 = vsel %vm2501_vm0, %v7586_v4, 0.0  ;;  %v8358_v6 = vld [vmem:[#allocation202_spill] sm:$0xff] }
 0x670   : > { %v4039_v49 = vsel %vm2245_vm15, %v7592_v20, %v3270_v27 }
 0x671   : > { %1738 = vperm.xlu2 %5013, %v7456_v21   ;;  %4611 = vst.msk [vmem:[%s6043_s13 + $0x718] sm:$0xff] %vm4383_vm1, %v4354_v23  ;;  %v4295_v28 = vadd.f32 %v4039_v49, %v8356_v60 }
 0x672   : > { %1750 = vperm.xlu1 %5015, %v7456_v21  }
 0x673   : > { %4552 = vst.msk [vmem:[%s6043_s13 + $0x540] sm:$0xff] %vm4383_vm1, %v4295_v28 }
 0x674   : > { %v1641_v56 = vpop.permute.xlu1 %1640  ;;  %v1531_v50 = vpop.permute.xlu0 %1530 }
 0x675   : > { %vm2303_vm13 = vcmp.eq.s32.totalorder %v1641_v56, 1  ;;  %vm2559_vm14 = vcmp.eq.s32.totalorder %v1641_v56, 2  ;;  %vm2285_vm4 = vcmp.eq.s32.totalorder %v1531_v50, 1  ;;  %vm2541_vm5 = vcmp.eq.s32.totalorder %v1531_v50, 2 }
 0x676   : > { %v3328_v57 = vsel %vm2559_vm14, %v7586_v4, 0.0  ;;  %v3310_v39 = vsel %vm2541_vm5, %v7586_v4, 0.0 }
 0x677   : > { %v4097_v26 = vsel %vm2303_vm13, %v7592_v20, %v3328_v57  ;;  %v4079_v44 = vsel %vm2285_vm4, %v7592_v20, %v3310_v39 }
 0x678   : > { %v4353_v12 = vadd.f32 %v4097_v26, %v8355_v58  ;;  %v4335_v54 = vadd.f32 %v4079_v44, %v8358_v6 }
 0x679   : > { %5016 = vset.pattern.permute.xlu2 %v5164_v8  ;;  %v8353_v8 = vld [vmem:[#allocation195_spill] sm:$0xff] }
 0x67a   : > { %5017 = vset.pattern.permute.xlu1 %v5171_v9  ;;  %4610 = vst.msk [vmem:[%s6043_s13 + $0x710] sm:$0xff] %vm4383_vm1, %v4353_v12 }
 0x67b   : > { %v1665_v25 = vpop.permute.xlu2 %1664  ;;  %4592 = vst.msk [vmem:[%s6043_s13 + $0x680] sm:$0xff] %vm4383_vm1, %v4335_v54 }
 0x67c   : > { %vm2307_vm9 = vcmp.eq.s32.totalorder %v1665_v25, 1  ;;  %vm2563_vm10 = vcmp.eq.s32.totalorder %v1665_v25, 2  ;;  %v1776_v30 = vpop.permute.xlu0 %1775 }
 0x67d   : > { %v3332_v22 = vsel %vm2563_vm10, %v7586_v4, 0.0  ;;  %vm2325_vm10 = vcmp.eq.s32.totalorder %v1776_v30, 1  ;;  %vm2581_vm11 = vcmp.eq.s32.totalorder %v1776_v30, 2 }
 0x67e   : > { %v4101_v36 = vsel %vm2307_vm9, %v7592_v20, %v3332_v22  ;;  %v3350_v62 = vsel %vm2581_vm11, %v7586_v4, 0.0 }
 0x67f   : > { %v4357_v16 = vadd.f32 %v4101_v36, %v8353_v8 }
 0x681   : > { %1756 = vperm.xlu2 %5016, %v7456_v21   ;;  %4614 = vst.msk [vmem:[%s6043_s13 + $0x730] sm:$0xff] %vm4383_vm1, %v4357_v16  ;;  %v8363_v16 = vld [vmem:[#allocation206_spill] sm:$0xff] }
 0x682   : > { %1762 = vperm.xlu1 %5017, %v7456_v21  }
 0x684   : > { %v1659_v53 = vpop.permute.xlu1 %1658 }
 0x685   : > { %vm2306_vm6 = vcmp.eq.s32.totalorder %v1659_v53, 1  ;;  %vm2562_vm7 = vcmp.eq.s32.totalorder %v1659_v53, 2 }
 0x686   : > { %v3331_v46 = vsel %vm2562_vm7, %v7586_v4, 0.0 }
 0x687   : > { %v4100_v23 = vsel %vm2306_vm6, %v7592_v20, %v3331_v46  ;;  %v8368_v46 = vld [vmem:[#allocation213_spill] sm:$0xff] }
 0x689   : > { %5018 = vset.pattern.permute.xlu2 %v5174_v10 }
 0x68a   : > { %5020 = vset.pattern.permute.xlu1 %v5181_v11  ;;  %v336_v48 = vpop.permute.xlu0 %335 }
 0x68b   : > { %v1678_v55 = vpop.permute.xlu2 %1677  ;;  %vm2090_vm0 = vcmp.eq.s32.totalorder %v336_v48, 1 }
 0x68c   : > { %vm2309_vm2 = vcmp.eq.s32.totalorder %v1678_v55, 1  ;;  %vm2565_vm3 = vcmp.eq.s32.totalorder %v1678_v55, 2 }
 0x68d   : > { %v3334_v37 = vsel %vm2565_vm3, %v7586_v4, 0.0 }
 0x68e   : > { %v4103_v52 = vsel %vm2309_vm2, %v7592_v20, %v3334_v37  ;;  %vm2346_vm2 = vcmp.eq.s32.totalorder %v336_v48, 2 }
 0x68f   : > { %v4359_v32 = vadd.f32 %v4103_v52, %v8357_v34  ;;  %v3115_v8 = vsel %vm2346_vm2, %v7586_v4, 0.0 }
 0x691   : > { %1768 = vperm.xlu2 %5018, %v7456_v21   ;;  %4616 = vst.msk [vmem:[%s6043_s13 + $0x740] sm:$0xff] %vm4383_vm1, %v4359_v32  ;;  %v8359_v21 = vld [vmem:[#allocation196_spill] sm:$0xff] }
 0x692   : > { %v4356_v63 = vadd.f32 %v4100_v23, %v8359_v21  ;;  %1781 = vperm.xlu1 %5020, %v7574_v5   ;;  %v581_v26 = vpop.permute.xlu0 %580  ;;  %v8369_v21 = vld [vmem:[#allocation211_spill] sm:$0xff] }
 0x693   : > { %vm2130_vm5 = vcmp.eq.s32.totalorder %v581_v26, 1  ;;  %vm2386_vm6 = vcmp.eq.s32.totalorder %v581_v26, 2 }
 0x694   : > { %4613 = vst.msk [vmem:[%s6043_s13 + $0x728] sm:$0xff] %vm4383_vm1, %v4356_v63  ;;  %v1671_v61 = vpop.permute.xlu1 %1670  ;;  %v3155_v58 = vsel %vm2386_vm6, %v7586_v4, 0.0 }
 0x695   : > { %vm2308_vm12 = vcmp.eq.s32.totalorder %v1671_v61, 1  ;;  %vm2564_vm13 = vcmp.eq.s32.totalorder %v1671_v61, 2  ;;  %v3924_v12 = vsel %vm2130_vm5, %v7592_v20, %v3155_v58  ;;  %v8375_v58 = vld [vmem:[#allocation218_spill] sm:$0xff] }
 0x696   : > { %v3333_v19 = vsel %vm2564_vm13, %v7586_v4, 0.0  ;;  %v4180_v55 = vadd.f32 %v3924_v12, %v6001_v13 }
 0x697   : > { %v4102_v25 = vsel %vm2308_vm12, %v7592_v20, %v3333_v19 }
 0x698   : > { %v4358_v0 = vadd.f32 %v4102_v25, %v8362_v42  ;;  %4437 = vst.msk [vmem:[%s6043_s13 + $0x1a8] sm:$0xff] %vm4383_vm1, %v4180_v55 }
 0x699   : > { %5021 = vset.pattern.permute.xlu2 %v5138_v2  ;;  %v4119_v2 = vsel %vm2325_vm10, %v7592_v20, %v3350_v62  ;;  %v8370_v62 = vld [vmem:[#allocation214_spill] sm:$0xff] }
 0x69a   : > { %v4375_v33 = vadd.f32 %v4119_v2, %v8361_v38  ;;  %5022 = vset.pattern.permute.xlu1 %v5161_v7  ;;  %4615 = vst.msk [vmem:[%s6043_s13 + $0x738] sm:$0xff] %vm4383_vm1, %v4358_v0  ;;  %v826_v37 = vpop.permute.xlu0 %825  ;;  %v8371_v38 = vld [vmem:[#allocation210_spill] sm:$0xff] }
 0x69b   : > { %v1696_v14 = vpop.permute.xlu2 %1695  ;;  %vm2426_vm10 = vcmp.eq.s32.totalorder %v826_v37, 2 }
 0x69c   : > { %vm2312_vm8 = vcmp.eq.s32.totalorder %v1696_v14, 1  ;;  %vm2568_vm9 = vcmp.eq.s32.totalorder %v1696_v14, 2  ;;  %4632 = vst.msk [vmem:[%s6043_s13 + $0x7c0] sm:$0xff] %vm4383_vm1, %v4375_v33  ;;  %v3195_v13 = vsel %vm2426_vm10, %v7586_v4, 0.0 }
 0x69d   : > { %v3337_v31 = vsel %vm2568_vm9, %v7586_v4, 0.0  ;;  %vm2170_vm9 = vcmp.eq.s32.totalorder %v826_v37, 1 }
 0x69e   : > { %v4106_v45 = vsel %vm2312_vm8, %v7592_v20, %v3337_v31  ;;  %v3964_v60 = vsel %vm2170_vm9, %v7592_v20, %v3195_v13 }
 0x69f   : > { %v4362_v11 = vadd.f32 %v4106_v45, %v8360_v17  ;;  %v4220_v52 = vadd.f32 %v3964_v60, %v6004_v24  ;;  %v8377_v60 = vld [vmem:[#allocation220_spill] sm:$0xff] }
 0x6a1   : > { %1787 = vperm.xlu2 %5021, %v7574_v5   ;;  %4619 = vst.msk [vmem:[%s6043_s13 + $0x758] sm:$0xff] %vm4383_vm1, %v4362_v11 }
 0x6a2   : > { %1793 = vperm.xlu1 %5022, %v7574_v5   ;;  %4477 = vst.msk [vmem:[%s6043_s13 + $0x2e8] sm:$0xff] %vm4383_vm1, %v4220_v52  ;;  %v1071_v53 = vpop.permute.xlu0 %1070 }
 0x6a3   : > { %vm2210_vm13 = vcmp.eq.s32.totalorder %v1071_v53, 1 }
 0x6a4   : > { %v1690_v59 = vpop.permute.xlu1 %1689 }
 0x6a5   : > { %vm2311_vm3 = vcmp.eq.s32.totalorder %v1690_v59, 1  ;;  %vm2567_vm4 = vcmp.eq.s32.totalorder %v1690_v59, 2 }
 0x6a6   : > { %v3336_v18 = vsel %vm2567_vm4, %v7586_v4, 0.0 }
 0x6a7   : > { %v4105_v57 = vsel %vm2311_vm3, %v7592_v20, %v3336_v18  ;;  %v8374_v18 = vld [vmem:[#allocation212_spill] sm:$0xff] }
 0x6a8   : > { %v4361_v43 = vadd.f32 %v4105_v57, %v8365_v1 }
 0x6a9   : > { %5023 = vset.pattern.permute.xlu2 %v5142_v3  ;;  %v3884_v3 = vsel %vm2090_vm0, %v7592_v20, %v3115_v8 }
 0x6aa   : > { %v4140_v56 = vadd.f32 %v3884_v3, %v8364_v51  ;;  %5024 = vset.pattern.permute.xlu1 %v5171_v9  ;;  %4618 = vst.msk [vmem:[%s6043_s13 + $0x750] sm:$0xff] %vm4383_vm1, %v4361_v43  ;;  %v1316_v14 = vpop.permute.xlu0 %1315  ;;  %v8373_v3 = vld [vmem:[#allocation217_spill] sm:$0xff] }
 0x6ab   : > { %v1708_v22 = vpop.permute.xlu2 %1707  ;;  %vm2250_vm2 = vcmp.eq.s32.totalorder %v1316_v14, 1  ;;  %vm2506_vm3 = vcmp.eq.s32.totalorder %v1316_v14, 2 }
 0x6ac   : > { %vm2314_vm14 = vcmp.eq.s32.totalorder %v1708_v22, 1  ;;  %vm2570_vm15 = vcmp.eq.s32.totalorder %v1708_v22, 2  ;;  %4397 = vst.msk [vmem:[%s6043_s13 + $0x68] sm:$0xff] %vm4383_vm1, %v4140_v56  ;;  %v3275_v30 = vsel %vm2506_vm3, %v7586_v4, 0.0 }
 0x6ad   : > { %v3339_v47 = vsel %vm2570_vm15, %v7586_v4, 0.0  ;;  %v4044_v31 = vsel %vm2250_vm2, %v7592_v20, %v3275_v30 }
 0x6ae   : > { %v4108_v36 = vsel %vm2314_vm14, %v7592_v20, %v3339_v47  ;;  %vm2466_vm14 = vcmp.eq.s32.totalorder %v1071_v53, 2  ;;  %v4300_v17 = vadd.f32 %v4044_v31, %v8370_v62  ;;  %v8372_v47 = vld [vmem:[#allocation215_spill] sm:$0xff] }
 0x6af   : > { %v4364_v7 = vadd.f32 %v4108_v36, %v8363_v16  ;;  %v3235_v39 = vsel %vm2466_vm14, %v7586_v4, 0.0 }
 0x6b0   : > { %v4004_v24 = vsel %vm2210_vm13, %v7592_v20, %v3235_v39  ;;  %4557 = vst.msk [vmem:[%s6043_s13 + $0x568] sm:$0xff] %vm4383_vm1, %v4300_v17  ;;  %v8380_v17 = vld [vmem:[#allocation222_spill] sm:$0xff] }
 0x6b1   : > { %1799 = vperm.xlu2 %5023, %v7574_v5   ;;  %4621 = vst.msk [vmem:[%s6043_s13 + $0x768] sm:$0xff] %vm4383_vm1, %v4364_v7  ;;  %v4260_v6 = vadd.f32 %v4004_v24, %v8368_v46 }
 0x6b2   : > { %1811 = vperm.xlu1 %5024, %v7574_v5   ;;  %v1561_v61 = vpop.permute.xlu0 %1560 }
 0x6b3   : > { %4517 = vst.msk [vmem:[%s6043_s13 + $0x428] sm:$0xff] %vm4383_vm1, %v4260_v6  ;;  %vm2290_vm6 = vcmp.eq.s32.totalorder %v1561_v61, 1 }
 0x6b4   : > { %v1702_v28 = vpop.permute.xlu1 %1701 }
 0x6b5   : > { %vm2313_vm11 = vcmp.eq.s32.totalorder %v1702_v28, 1  ;;  %vm2569_vm12 = vcmp.eq.s32.totalorder %v1702_v28, 2 }
 0x6b6   : > { %v3338_v34 = vsel %vm2569_vm12, %v7586_v4, 0.0 }
 0x6b7   : > { %v4107_v32 = vsel %vm2313_vm11, %v7592_v20, %v3338_v34 }
 0x6b9   : > { %5025 = vset.pattern.permute.xlu2 %v5174_v10  ;;  %v8366_v10 = vld [vmem:[#allocation209_spill] sm:$0xff] }
 0x6ba   : > { %v1806_v8 = vpop.permute.xlu0 %1805 }
 0x6bb   : > { %v1727_v41 = vpop.permute.xlu2 %1726  ;;  %vm2330_vm10 = vcmp.eq.s32.totalorder %v1806_v8, 1  ;;  %vm2586_vm11 = vcmp.eq.s32.totalorder %v1806_v8, 2 }
 0x6bc   : > { %vm2317_vm7 = vcmp.eq.s32.totalorder %v1727_v41, 1  ;;  %vm2573_vm8 = vcmp.eq.s32.totalorder %v1727_v41, 2  ;;  %v3355_v16 = vsel %vm2586_vm11, %v7586_v4, 0.0 }
 0x6bd   : > { %v3342_v27 = vsel %vm2573_vm8, %v7586_v4, 0.0 }
 0x6be   : > { %v4111_v9 = vsel %vm2317_vm7, %v7592_v20, %v3342_v27  ;;  %vm2546_vm7 = vcmp.eq.s32.totalorder %v1561_v61, 2 }
 0x6bf   : > { %v4367_v49 = vadd.f32 %v4111_v9, %v8366_v10  ;;  %v3315_v19 = vsel %vm2546_vm7, %v7586_v4, 0.0  ;;  %v8376_v9 = vld [vmem:[#allocation216_spill] sm:$0xff] }
 0x6c0   : > { %v4084_v25 = vsel %vm2290_vm6, %v7592_v20, %v3315_v19 }
 0x6c1   : > { %1817 = vperm.xlu2 %5025, %v7574_v5   ;;  %4624 = vst.msk [vmem:[%s6043_s13 + $0x780] sm:$0xff] %vm4383_vm1, %v4367_v49  ;;  %v8367_v5 = vld [vmem:[#allocation207_spill] sm:$0xff]  ;;  %v4340_v0 = vadd.f32 %v4084_v25, %v6033_v15  ;;  %v4124_v15 = vsel %vm2330_vm10, %v7592_v20, %v3355_v16 }
 0x6c2   : > { %v4363_v50 = vadd.f32 %v4107_v32, %v8367_v5  ;;  %v4380_v51 = vadd.f32 %v4124_v15, %v8373_v3  ;;  %v8378_v5 = vld [vmem:[#allocation219_spill] sm:$0xff] }
 0x6c3   : > { %4597 = vst.msk [vmem:[%s6043_s13 + $0x6a8] sm:$0xff] %vm4383_vm1, %v4340_v0 }
 0x6c4   : > { %4620 = vst.msk [vmem:[%s6043_s13 + $0x760] sm:$0xff] %vm4383_vm1, %v4363_v50  ;;  %v1720_v45 = vpop.permute.xlu1 %1719 }
 0x6c5   : > { %vm2316_vm4 = vcmp.eq.s32.totalorder %v1720_v45, 1  ;;  %vm2572_vm5 = vcmp.eq.s32.totalorder %v1720_v45, 2  ;;  %4637 = vst.msk [vmem:[%s6043_s13 + $0x7e8] sm:$0xff] %vm4383_vm1, %v4380_v51 }
 0x6c6   : > { %v3341_v11 = vsel %vm2572_vm5, %v7586_v4, 0.0 }
 0x6c7   : > { %v4110_v2 = vsel %vm2316_vm4, %v7592_v20, %v3341_v11 }
 0x6c8   : > { %v4366_v33 = vadd.f32 %v4110_v2, %v8371_v38 }
 0x6ca   : > { %4623 = vst.msk [vmem:[%s6043_s13 + $0x778] sm:$0xff] %vm4383_vm1, %v4366_v33 }
 0x6cb   : > { %v1739_v44 = vpop.permute.xlu2 %1738 }
 0x6cc   : > { %vm2319_vm15 = vcmp.eq.s32.totalorder %v1739_v44, 1  ;;  %vm2575_vm0 = vcmp.eq.s32.totalorder %v1739_v44, 2 }
 0x6cd   : > { %v3344_v54 = vsel %vm2575_vm0, %v7586_v4, 0.0 }
 0x6ce   : > { %v4113_v23 = vsel %vm2319_vm15, %v7592_v20, %v3344_v54 }
 0x6cf   : > { %v4369_v63 = vadd.f32 %v4113_v23, %v8369_v21  ;;  %v8379_v23 = vld [vmem:[#allocation221_spill] sm:$0xff] }
 0x6d1   : > { %4626 = vst.msk [vmem:[%s6043_s13 + $0x790] sm:$0xff] %vm4383_vm1, %v4369_v63 }
 0x6d4   : > { %v1733_v7 = vpop.permute.xlu1 %1732 }
 0x6d5   : > { %vm2318_vm12 = vcmp.eq.s32.totalorder %v1733_v7, 1  ;;  %vm2574_vm13 = vcmp.eq.s32.totalorder %v1733_v7, 2 }
 0x6d6   : > { %v3343_v56 = vsel %vm2574_vm13, %v7586_v4, 0.0 }
 0x6d7   : > { %v4112_v59 = vsel %vm2318_vm12, %v7592_v20, %v3343_v56 }
 0x6d8   : > { %v4368_v57 = vadd.f32 %v4112_v59, %v8374_v18 }
 0x6da   : > { %4625 = vst.msk [vmem:[%s6043_s13 + $0x788] sm:$0xff] %vm4383_vm1, %v4368_v57 }
 0x6db   : > { %v1757_v42 = vpop.permute.xlu2 %1756 }
 0x6dc   : > { %vm2322_vm8 = vcmp.eq.s32.totalorder %v1757_v42, 1  ;;  %vm2578_vm9 = vcmp.eq.s32.totalorder %v1757_v42, 2 }
 0x6dd   : > { %v3347_v22 = vsel %vm2578_vm9, %v7586_v4, 0.0 }
 0x6de   : > { %v4116_v48 = vsel %vm2322_vm8, %v7592_v20, %v3347_v22 }
 0x6df   : > { %v4372_v36 = vadd.f32 %v4116_v48, %v8372_v47 }
 0x6e1   : > { %4629 = vst.msk [vmem:[%s6043_s13 + $0x7a8] sm:$0xff] %vm4383_vm1, %v4372_v36 }
 0x6e4   : > { %v1751_v41 = vpop.permute.xlu1 %1750 }
 0x6e5   : > { %vm2321_vm0 = vcmp.eq.s32.totalorder %v1751_v41, 1  ;;  %vm2577_vm2 = vcmp.eq.s32.totalorder %v1751_v41, 2 }
 0x6e6   : > { %v3346_v55 = vsel %vm2577_vm2, %v7586_v4, 0.0 }
 0x6e7   : > { %v4115_v27 = vsel %vm2321_vm0, %v7592_v20, %v3346_v55 }
 0x6e8   : > { %v4371_v10 = vadd.f32 %v4115_v27, %v8376_v9 }
 0x6ea   : > { %4628 = vst.msk [vmem:[%s6043_s13 + $0x7a0] sm:$0xff] %vm4383_vm1, %v4371_v10 }
 0x6eb   : > { %v1769_v1 = vpop.permute.xlu2 %1768 }
 0x6ec   : > { %vm2324_vm14 = vcmp.eq.s32.totalorder %v1769_v1, 1  ;;  %vm2580_vm15 = vcmp.eq.s32.totalorder %v1769_v1, 2 }
 0x6ed   : > { %v3349_v43 = vsel %vm2580_vm15, %v7586_v4, 0.0 }
 0x6ee   : > { %v4118_v26 = vsel %vm2324_vm14, %v7592_v20, %v3349_v43 }
 0x6ef   : > { %v4374_v12 = vadd.f32 %v4118_v26, %v8375_v58 }
 0x6f1   : > { %4631 = vst.msk [vmem:[%s6043_s13 + $0x7b8] sm:$0xff] %vm4383_vm1, %v4374_v12 }
 0x6f4   : > { %v1763_v52 = vpop.permute.xlu1 %1762 }
 0x6f5   : > { %vm2323_vm5 = vcmp.eq.s32.totalorder %v1763_v52, 1  ;;  %vm2579_vm6 = vcmp.eq.s32.totalorder %v1763_v52, 2 }
 0x6f6   : > { %v3348_v34 = vsel %vm2579_vm6, %v7586_v4, 0.0 }
 0x6f7   : > { %v4117_v32 = vsel %vm2323_vm5, %v7592_v20, %v3348_v34 }
 0x6f8   : > { %v4373_v50 = vadd.f32 %v4117_v32, %v8378_v5 }
 0x6fa   : > { %4630 = vst.msk [vmem:[%s6043_s13 + $0x7b0] sm:$0xff] %vm4383_vm1, %v4373_v50 }
 0x6fb   : > { %v1788_v49 = vpop.permute.xlu2 %1787 }
 0x6fc   : > { %vm2327_vm3 = vcmp.eq.s32.totalorder %v1788_v49, 1  ;;  %vm2583_vm4 = vcmp.eq.s32.totalorder %v1788_v49, 2 }
 0x6fd   : > { %v3352_v37 = vsel %vm2583_vm4, %v7586_v4, 0.0 }
 0x6fe   : > { %v4121_v13 = vsel %vm2327_vm3, %v7592_v20, %v3352_v37 }
 0x6ff   : > { %v4377_v28 = vadd.f32 %v4121_v13, %v8377_v60 }
 0x701   : > { %4634 = vst.msk [vmem:[%s6043_s13 + $0x7d0] sm:$0xff] %vm4383_vm1, %v4377_v28 }
 0x704   : > { %v1782_v46 = vpop.permute.xlu1 %1781 }
 0x705   : > { %vm2326_vm9 = vcmp.eq.s32.totalorder %v1782_v46, 1  ;;  %vm2582_vm10 = vcmp.eq.s32.totalorder %v1782_v46, 2 }
 0x706   : > { %v3351_v6 = vsel %vm2582_vm10, %v7586_v4, 0.0 }
 0x707   : > { %v4120_v54 = vsel %vm2326_vm9, %v7592_v20, %v3351_v6 }
 0x708   : > { %v4376_v21 = vadd.f32 %v4120_v54, %v8379_v23 }
 0x70a   : > { %4633 = vst.msk [vmem:[%s6043_s13 + $0x7c8] sm:$0xff] %vm4383_vm1, %v4376_v21 }
 0x70b   : > { %v1800_v53 = vpop.permute.xlu2 %1799 }
 0x70c   : > { %vm2329_vm7 = vcmp.eq.s32.totalorder %v1800_v53, 1  ;;  %vm2585_vm8 = vcmp.eq.s32.totalorder %v1800_v53, 2 }
 0x70d   : > { %v3354_v39 = vsel %vm2585_vm8, %v7586_v4, 0.0 }
 0x70e   : > { %v4123_v24 = vsel %vm2329_vm7, %v7592_v20, %v3354_v39 }
 0x70f   : > { %v4379_v44 = vadd.f32 %v4123_v24, %v6078_v35 }
 0x711   : > { %4636 = vst.msk [vmem:[%s6043_s13 + $0x7e0] sm:$0xff] %vm4383_vm1, %v4379_v44 }
 0x714   : > { %v1794_v31 = vpop.permute.xlu1 %1793 }
 0x715   : > { %vm2328_vm13 = vcmp.eq.s32.totalorder %v1794_v31, 1  ;;  %vm2584_vm14 = vcmp.eq.s32.totalorder %v1794_v31, 2 }
 0x716   : > { %v3353_v45 = vsel %vm2584_vm14, %v7586_v4, 0.0 }
 0x717   : > { %v4122_v62 = vsel %vm2328_vm13, %v7592_v20, %v3353_v45 }
 0x718   : > { %v4378_v11 = vadd.f32 %v4122_v62, %v8380_v17 }
 0x71a   : > { %4635 = vst.msk [vmem:[%s6043_s13 + $0x7d8] sm:$0xff] %vm4383_vm1, %v4378_v11 }
 0x71b   : > { %v1818_v63 = vpop.permute.xlu2 %1817 }
 0x71c   : > { %vm2332_vm11 = vcmp.eq.s32.totalorder %v1818_v63, 1  ;;  %vm2588_vm12 = vcmp.eq.s32.totalorder %v1818_v63, 2 }
 0x71d   : > { %v3357_v14 = vsel %vm2588_vm12, %v7586_v4, 0.0 }
 0x71e   : > { %v4126_v35 = vsel %vm2332_vm11, %v7592_v20, %v3357_v14 }
 0x71f   : > { %v4382_v30 = vadd.f32 %v4126_v35, %v6089_v40 }
 0x721   : > { %4639 = vst.msk [vmem:[%s6043_s13 + $0x7f8] sm:$0xff] %vm4383_vm1, %v4382_v30 }
 0x724   : > { %v1812_v2 = vpop.permute.xlu1 %1811 }
 0x725   : > { %vm2331_vm15 = vcmp.eq.s32.totalorder %v1812_v2, 1  ;;  %vm2587_vm0 = vcmp.eq.s32.totalorder %v1812_v2, 2 }
 0x726   : > { %v3356_v38 = vsel %vm2587_vm0, %v7586_v4, 0.0 }
 0x727   : > { %v4125_v40 = vsel %vm2331_vm15, %v7592_v20, %v3356_v38 }
 0x728   : > { %v4381_v33 = vadd.f32 %v4125_v40, %v6092_v29 }
 0x72a   : > { %4638 = vst.msk [vmem:[%s6043_s13 + $0x7f0] sm:$0xff] %vm4383_vm1, %v4381_v33 }
 0x72b PF: > { %s13_s16 = sadd.s32 1, %s5077_s16   ;;  %s8381_s12 = smov %s5069_s14 }
 0x72c   : > { %p10_p8 = scmp.ge.s32.totalorder %s13_s16, 6   ;;  %s8382_s13 = smov %s5073_s15 }
 0x72d   : > { %s8383_s14 = smov %s8386_s17  ;;  %s8384_s15 = smov %s8390_s18 }
 0x72e   :  { %12 = sbr.rel (!%p10_p8) target bundleno = 3 (0x3), region = 65 }

</bundles_post_ra>
